<compile_context>
chip_gen: v6e
topology: v6e:2x2x1
jax: 0.10.0
libtpu: 0.0.40
codegen_flags: <defaults>
</compile_context>

<pallas_src>
import jax
import jax.numpy as jnp
from jax.experimental import pallas as pl
from jax.experimental.pallas import tpu as pltpu


LANES = 128  # TPU lane width


def _round_up(x, m):
    return (x + m - 1) // m * m


def _feature_tile_budget_bytes():
    # ~4 MiB per feature block (~8 MiB double-buffered) sits at >=85% of the
    # measured HBM roofline on v5e/v6e/v7x while staying well inside every
    # generation's scoped-VMEM limit.  Larger blocks buy <5% more.
    return 4 * 1024 * 1024


def _pick_hw_tile(hw, c, itemsize, num_splits, max_chunks=16):
    """Largest 128-multiple tile within the VMEM budget / unroll cap / per-split size."""
    budget = _feature_tile_budget_bytes()
    by_vmem = max(LANES, (budget // (c * itemsize)) // LANES * LANES)
    by_unroll = max_chunks * LANES
    per_split = _round_up(-(-hw // num_splits), LANES)
    return max(LANES, min(by_vmem, by_unroll, per_split))


def _pool_sum_kernel(feat_ref, partial_ref, acc_ref):
    """Streamed global-spatial-sum.  grid = (N, splits, k); k is the reduction axis.

    feat_ref    : [1, C, hw_tile]    encoder features (native NCHW, flattened HW)
    partial_ref : [1, 1, 1, C] f32   per-(n, split) spatial SUM (not yet the mean)
    acc_ref     : [C, 128]     f32   lane-partial running sums (VMEM scratch)
    """
    k = pl.program_id(2)

    @pl.when(k == 0)
    def _init():
        acc_ref[...] = jnp.zeros_like(acc_ref)

    # Lane-partial accumulation on the VPU: add 128-lane chunks elementwise
    # (static 128-aligned slices along the lane axis -> no relayout, no per-tile
    # cross-lane XLU reduction).  Accumulate in f32 even for bf16 streams.
    hw_tile = feat_ref.shape[2]
    for j in range(hw_tile // LANES):
        acc_ref[...] += feat_ref[0, :, j * LANES:(j + 1) * LANES].astype(jnp.float32)

    # Single deferred cross-lane reduction per (n, split).
    @pl.when(k == pl.num_programs(2) - 1)
    def _finalize():
        partial_ref[0, 0] = jnp.sum(acc_ref[...], axis=1)[None, :]   # (1, C)


def _head_kernel(pooled_ref, w_bn_ref, w_bg_ref, x_ref, params_ref):
    """Tiny epilogue: bottleneck 1x1 conv + all beta/gamma 1x1 convs (full blocks).

    pooled_ref : [N, C]        global-average-pooled features
    w_bn_ref   : [C, Bp]       bottleneck weight (zero-padded cols)
    w_bg_ref   : [Bp, Tp]      concatenated beta/gamma weights (zero-padded)
    x_ref      : [N, Bp]       bottleneck output
    params_ref : [N, Tp]       concatenated beta/gamma outputs
    """
    x = jnp.dot(pooled_ref[...], w_bn_ref[...], preferred_element_type=jnp.float32)
    x_ref[...] = x
    params_ref[...] = jnp.dot(x, w_bg_ref[...], preferred_element_type=jnp.float32)


class StylePrediction:
    """JAX/Pallas equivalent of the PyTorch StylePrediction head."""

    def __init__(self, activation_names, activation_depths,
                 style_prediction_bottleneck=100, *, key):
        assert len(activation_names) == len(activation_depths)
        self.activation_names = list(activation_names)
        self.activation_depths = list(activation_depths)
        self.bottleneck = style_prediction_bottleneck
        self.in_channels = 768  # InceptionV3 mixed-6e feature depth

        n_layers = 1 + 2 * len(activation_depths)
        keys = jax.random.split(key, n_layers)

        # nn.Conv2d(768, B, 1, bias=False): weight [B,768,1,1] -> matmul [768, B]
        self.w_bottleneck = (0.02 * jax.random.normal(
            keys[0], (self.in_channels, self.bottleneck))).astype(jnp.float32)

        # beta[i]/gamma[i]: nn.Conv2d(B, depth_i, 1, bias=False) -> [B, depth_i]
        self.w_beta, self.w_gamma = [], []
        for i, d in enumerate(self.activation_depths):
            self.w_beta.append((0.02 * jax.random.normal(
                keys[1 + 2 * i], (self.bottleneck, d))).astype(jnp.float32))
            self.w_gamma.append((0.02 * jax.random.normal(
                keys[2 + 2 * i], (self.bottleneck, d))).astype(jnp.float32))

        # Concatenate every beta/gamma weight column-wise: one [B, T] matmul.
        cols, self._layout = [], []
        off = 0
        for name, wb, wg in zip(self.activation_names, self.w_beta, self.w_gamma):
            cols.append(wb); off_b = off; off += wb.shape[1]
            cols.append(wg); off_g = off; off += wg.shape[1]
            self._layout.append((name, off_b, off_g, wb.shape[1]))
        w_bg = jnp.concatenate(cols, axis=1)                  # [B, T]
        self.total_out = off

        # 128-align matmul output dims for lane-dense MXU tiles / stores.
        self.bottleneck_padded = _round_up(self.bottleneck, 128)
        self.total_out_padded = _round_up(self.total_out, 128)
        self._w_bn_padded = jnp.pad(
            self.w_bottleneck,
            ((0, 0), (0, self.bottleneck_padded - self.bottleneck)))
        self._w_bg_padded = jnp.pad(
            w_bg, ((0, self.bottleneck_padded - self.bottleneck),
                   (0, self.total_out_padded - self.total_out)))

    def __call__(self, feats_nchw, *, hw_tile=None, num_splits=1):
        """feats_nchw: [N, 768, H, W] encoder output (PyTorch NCHW, f32 or bf16).

        num_splits > 1 splits the HW reduction across an extra "parallel" grid
        axis (useful on v7x dual-TC chips when N is 1 or odd); per-split partial
        sums are combined in the wrapper.
        """
        N, C, H, W = feats_nchw.shape
        assert C == self.in_channels
        HW = H * W
        # No transpose: pooling is layout-agnostic, so keep native NCHW and
        # only flatten the contiguous spatial dims (free reshape, no HBM pass).
        feat = feats_nchw.reshape(N, C, HW)
        itemsize = jnp.dtype(feat.dtype).itemsize

        if hw_tile is None:
            hw_tile = _pick_hw_tile(HW, C, itemsize, num_splits)
        assert hw_tile > 0 and hw_tile % LANES == 0

        # Pad HW to a tile multiple: zeros are neutral for the pooled SUM;
        # the mean below divides by the true HW.
        hw_block = hw_tile * num_splits
        HW_pad = _round_up(HW, hw_block)
        if HW_pad != HW:
            feat = jnp.pad(feat, ((0, 0), (0, 0), (0, HW_pad - HW)))
        k_steps = HW_pad // hw_block

        # Explicit scoped-VMEM limit sized from the real working set:
        # double-buffered feature block + f32 accumulator + headroom.
        feat_block_bytes = C * hw_tile * itemsize
        vmem_limit = max(int(2 * feat_block_bytes + C * LANES * 4 + 4 * 1024 * 1024),
                         16 * 1024 * 1024)

        cost = pl.CostEstimate(
            flops=N * C * HW_pad, transcendentals=0,
            bytes_accessed=N * C * HW_pad * itemsize + N * num_splits * C * 4)

        # NOTE: the VMEM-scratch accumulator relies on the reduction axis k
        # (innermost, "arbitrary") running sequentially per (n, split) on a
        # single core; the leading "parallel" axes are safe because each core
        # still owns whole k-sequences.
        partial = pl.pallas_call(
            _pool_sum_kernel,
            grid=(N, num_splits, k_steps),
            in_specs=[pl.BlockSpec((1, C, hw_tile),
                                   lambda n, s, k: (n, 0, s * k_steps + k))],
            out_specs=pl.BlockSpec((1, 1, 1, C), lambda n, s, k: (n, s, 0, 0)),
            out_shape=jax.ShapeDtypeStruct((N, num_splits, 1, C), jnp.float32),
            scratch_shapes=[pltpu.VMEM((C, LANES), jnp.float32)],
            compiler_params=pltpu.CompilerParams(
                dimension_semantics=("parallel", "parallel", "arbitrary"),
                vmem_limit_bytes=vmem_limit),
            cost_estimate=cost,
        )(feat)

        # Combine per-split partial sums and turn the sum into the mean.
        pooled = jnp.sum(partial.reshape(N, num_splits, C), axis=1) * (1.0 / HW)

        # Tiny full-block epilogue kernel: x = pooled @ W_bn; params = x @ W_bg.
        x_pad, params_pad = pl.pallas_call(
            _head_kernel,
            out_shape=(jax.ShapeDtypeStruct((N, self.bottleneck_padded), jnp.float32),
                       jax.ShapeDtypeStruct((N, self.total_out_padded), jnp.float32)),
        )(pooled, self._w_bn_padded, self._w_bg_padded)

        # Slice off alignment padding, re-assemble PyTorch-shaped outputs.
        x = x_pad[:, :self.bottleneck].reshape(N, self.bottleneck, 1, 1)
        style_params = {}
        for name, off_b, off_g, d in self._layout:
            style_params[name + "/beta"] = (
                params_pad[:, off_b:off_b + d].reshape(N, d, 1, 1))
            style_params[name + "/gamma"] = (
                params_pad[:, off_g:off_g + d].reshape(N, d, 1, 1))
        return style_params, x


def _reference(feats_nchw, model):
    """Pure-jnp reference (unfused, unpadded weights)."""
    hi = jax.lax.Precision.HIGHEST
    pooled = jnp.mean(feats_nchw.astype(jnp.float32), axis=(2, 3))   # [N, C]
    x = jnp.dot(pooled, model.w_bottleneck, precision=hi)            # [N, B]
    params = {}
    for i, name in enumerate(model.activation_names):
        params[name + "/beta"] = jnp.dot(
            x, model.w_beta[i], precision=hi)[:, :, None, None]
        params[name + "/gamma"] = jnp.dot(
            x, model.w_gamma[i], precision=hi)[:, :, None, None]
    return params, x[:, :, None, None]


if __name__ == "__main__":
    key = jax.random.PRNGKey(0)
    k_feat, k_model = jax.random.split(key)

    # Small, module-consistent shapes: batch=2, encoder channels=768, 16x16 spatial.
    N, C, H, W = 2, 768, 16, 16
    activation_names = ["expand/conv1", "residual/res1"]
    activation_depths = [32, 64]

    # Encoder features streamed in bf16 (halves the dominant HBM read).
    feats = jax.random.normal(
        k_feat, (N, C, H, W), dtype=jnp.float32).astype(jnp.bfloat16)

    model = StylePrediction(activation_names, activation_depths,
                            style_prediction_bottleneck=100, key=k_model)
    ref_params, ref_x = _reference(feats, model)

    def check(style_params, x, tag):
        assert jnp.allclose(x, ref_x, atol=1e-3, rtol=1e-3), (
            tag, float(jnp.max(jnp.abs(x - ref_x))))
        for name in ref_params:
            assert style_params[name].shape == ref_params[name].shape, (tag, name)
            assert jnp.allclose(style_params[name], ref_params[name],
                                atol=1e-3, rtol=1e-3), (tag, name)

    # 1) auto tile policy (single reduction step at this spatial size).
    sp, x = model(feats)
    jax.block_until_ready(x)
    check(sp, x, "auto")

    # 2) explicit small tile -> exercises the streamed multi-step accumulator.
    sp, x = model(feats, hw_tile=128)
    jax.block_until_ready(x)
    check(sp, x, "hw_tile=128")

    # 3) split the reduction across two "parallel" grid slots (v7x dual-TC path
    #    for tiny batches); per-split partial sums combined in the wrapper.
    sp, x = model(feats, hw_tile=128, num_splits=2)
    jax.block_until_ready(x)
    check(sp, x, "num_splits=2")

    print("KERNEL_OK")
</pallas_src>

<mosaic_0001>
module attributes {stable_mosaic.version = 11 : i64} {
  func.func @_pool_sum_kernel(%arg0: i32, %arg1: i32, %arg2: i32, %arg3: memref<1x768x256xbf16, #tpu.memory_space<vmem>>, %arg4: memref<1x1x1x768xf32, #tpu.memory_space<vmem>>, %arg5: memref<768x128xf32, #tpu.memory_space<vmem>>) attributes {dimension_semantics = [#tpu.dimension_semantics<parallel>, #tpu.dimension_semantics<parallel>, #tpu.dimension_semantics<arbitrary>], iteration_bounds = array<i64: 2, 1, 1>, scalar_prefetch = 0 : i64, scratch_operands = 1 : i64, tpu.core_type = #tpu.core_type<tc>, window_params = [{transform_indices = @transform_0, window_bounds = array<i64: 1, 768, 256>}, {transform_indices = @transform_1, window_bounds = array<i64: 1, 1, 1, 768>}]} {
    %c0_i32 = arith.constant 0 : i32
    %0 = arith.cmpi eq, %arg2, %c0_i32 : i32
    %1 = arith.extui %0 : i1 to i32
    %c0_i32_0 = arith.constant 0 : i32
    %2 = arith.cmpi ne, %1, %c0_i32_0 : i32
    scf.if %2 {
      %cst = arith.constant 0.000000e+00 : f32
      %18 = vector.broadcast %cst : f32 to vector<768x128xf32>
      %c0_15 = arith.constant 0 : index
      %c0_16 = arith.constant 0 : index
      %19 = vector.load %arg5[%c0_15, %c0_16] : memref<768x128xf32, #tpu.memory_space<vmem>>, vector<768x128xf32>
      tpu.vector_store %arg5[%c0_15, %c0_16], %18 {strides = array<i32>} : memref<768x128xf32, #tpu.memory_space<vmem>>, vector<768x128xf32>,
    } else {
    }
    %c0 = arith.constant 0 : index
    %c0_1 = arith.constant 0 : index
    %3 = vector.load %arg5[%c0, %c0_1] : memref<768x128xf32, #tpu.memory_space<vmem>>, vector<768x128xf32>
    %c0_2 = arith.constant 0 : index
    %c0_3 = arith.constant 0 : index
    %c0_4 = arith.constant 0 : index
    %4 = vector.load %arg3[%c0_2, %c0_3, %c0_4] : memref<1x768x256xbf16, #tpu.memory_space<vmem>>, vector<1x768x128xbf16>
    %5 = vector.shape_cast %4 : vector<1x768x128xbf16> to vector<768x128xbf16>
    %6 = arith.extf %5 : vector<768x128xbf16> to vector<768x128xf32>
    %7 = arith.addf %3, %6 : vector<768x128xf32>
    %c0_5 = arith.constant 0 : index
    %c0_6 = arith.constant 0 : index
    %8 = vector.load %arg5[%c0_5, %c0_6] : memref<768x128xf32, #tpu.memory_space<vmem>>, vector<768x128xf32>
    tpu.vector_store %arg5[%c0_5, %c0_6], %7 {strides = array<i32>} : memref<768x128xf32, #tpu.memory_space<vmem>>, vector<768x128xf32>,
    %c0_7 = arith.constant 0 : index
    %c0_8 = arith.constant 0 : index
    %9 = vector.load %arg5[%c0_7, %c0_8] : memref<768x128xf32, #tpu.memory_space<vmem>>, vector<768x128xf32>
    %c0_9 = arith.constant 0 : index
    %c0_10 = arith.constant 0 : index
    %c128 = arith.constant 128 : index
    %10 = vector.load %arg3[%c0_9, %c0_10, %c128] : memref<1x768x256xbf16, #tpu.memory_space<vmem>>, vector<1x768x128xbf16>
    %11 = vector.shape_cast %10 : vector<1x768x128xbf16> to vector<768x128xbf16>
    %12 = arith.extf %11 : vector<768x128xbf16> to vector<768x128xf32>
    %13 = arith.addf %9, %12 : vector<768x128xf32>
    %c0_11 = arith.constant 0 : index
    %c0_12 = arith.constant 0 : index
    %14 = vector.load %arg5[%c0_11, %c0_12] : memref<768x128xf32, #tpu.memory_space<vmem>>, vector<768x128xf32>
    tpu.vector_store %arg5[%c0_11, %c0_12], %13 {strides = array<i32>} : memref<768x128xf32, #tpu.memory_space<vmem>>, vector<768x128xf32>,
    %c0_i32_13 = arith.constant 0 : i32
    %15 = arith.cmpi eq, %arg2, %c0_i32_13 : i32
    %16 = arith.extui %15 : i1 to i32
    %c0_i32_14 = arith.constant 0 : i32
    %17 = arith.cmpi ne, %16, %c0_i32_14 : i32
    scf.if %17 {
      %c0_15 = arith.constant 0 : index
      %c0_16 = arith.constant 0 : index
      %18 = vector.load %arg5[%c0_15, %c0_16] : memref<768x128xf32, #tpu.memory_space<vmem>>, vector<768x128xf32>
      %cst = arith.constant dense<0.000000e+00> : vector<768xf32>
      %19 = vector.multi_reduction <add>, %18, %cst [1] : vector<768x128xf32> to vector<768xf32>
      %20 = vector.shape_cast %19 : vector<768xf32> to vector<1x768xf32>
      %c0_17 = arith.constant 0 : index
      %c0_18 = arith.constant 0 : index
      %c0_19 = arith.constant 0 : index
      %c0_20 = arith.constant 0 : index
      %21 = vector.load %arg4[%c0_17, %c0_18, %c0_19, %c0_20] : memref<1x1x1x768xf32, #tpu.memory_space<vmem>>, vector<1x1x1x768xf32>
      %22 = vector.shape_cast %21 : vector<1x1x1x768xf32> to vector<1x768xf32>
      %23 = vector.shape_cast %20 : vector<1x768xf32> to vector<1x1x1x768xf32>
      tpu.vector_store %arg4[%c0_17, %c0_18, %c0_19, %c0_20], %23 {strides = array<i32>} : memref<1x1x1x768xf32, #tpu.memory_space<vmem>>, vector<1x1x1x768xf32>,
    } else {
    }
    return
  }
  func.func @transform_0(%arg0: i32, %arg1: i32, %arg2: i32) -> (i32, i32, i32) {
    %c1_i32 = arith.constant 1 : i32
    %0 = arith.muli %arg1, %c1_i32 : i32
    %1 = arith.addi %0, %arg2 : i32
    %c0_i32 = arith.constant 0 : i32
    %c0_i32_0 = arith.constant 0 : i32
    return %arg0, %c0_i32, %1 : i32, i32, i32
  }
  func.func @transform_1(%arg0: i32, %arg1: i32, %arg2: i32) -> (i32, i32, i32, i32) {
    %c0_i32 = arith.constant 0 : i32
    %c0_i32_0 = arith.constant 0 : i32
    %c0_i32_1 = arith.constant 0 : i32
    return %arg0, %arg1, %c0_i32, %c0_i32_0 : i32, i32, i32, i32
  }
}

</mosaic_0001>

<bundles_post_ra>
// kernel: tpu_custom_call.1
= control target key start
LH: loop header
LB: loop body
LE: loop exit
PB: predicated region body
PF: predicated region fallthrough
CT: control target
= control target key end

     0   :  { %6 = vsyncpa [#allocation4], 0  ;;  %s13411_s0 = inlined_call_operand.hbm [shape: bf16[2,768,256], index: 0, kind: input, shape index: {}]   ;;  %s13412_s1 = inlined_call_operand.hbm [shape: f32[2,1,1,768], index: 1, kind: output, shape index: {}]  }
   0x1   :  { %8 = vsyncpa [#allocation4 + $0x1], 0 }
   0x2   :  { %9 = vsyncpa [#allocation5], 0 }
   0x3   :  { %11 = vsyncpa [#allocation5 + $0x1], 0  ;;  %s10541_s6 = smov 0   ;;  %s10543_s7 = smov 0  }
   0x4   :  { %s10545_s8 = smov 0   ;;  %s10547_s9 = smov 0  }
   0x5   :  { %s10549_s10 = smov 0   ;;  %s10551_s11 = smov 0  }
   0x6 LB: > { %s10333_s12 = sadd.s32 4294967295, %s10523_s11   ;;  %s10334_s13 = sadd.s32 4294967294, %s10523_s11   ;;  %s10523_s11 = sphi %s10551_s11, %s17_s11   ;;  %s10519_s10 = sphi %s10549_s10, %s13489_s10   ;;  %s10515_s9 = sphi %s10547_s9, %s13488_s9   ;;  %s10511_s8 = sphi %s10545_s8, %s13487_s8   ;;  %s10507_s7 = sphi %s10543_s7, %s13486_s7   ;;  %s10503_s6 = sphi %s10541_s6, %s13485_s6  }
   0x7   : > { %s36_s14 = sadd.s32 1, %s10519_s10  ;;  %s47_s15 = sadd.s32 1, %s10511_s8 }
   0x8   : > { %p38_p0 = scmp.ge.s32.totalorder %s36_s14, 2  ;;  %p54_p1 = scmp.ne.s32.totalorder %s10511_s8, %s10507_s7 }
   0x9   : > { %p55_p2 = scmp.eq.s32.totalorder %s10523_s11, 0  ;;  %p60_p3 = scmp.ne.s32.totalorder %s10507_s7, %s10503_s6 }
   0xa   : > { %s13491_s14 = smov (%p38_p0, %s36_s14), 0  ;;  %p61_p5 = scmp.eq.s32.totalorder %s10333_s12, 0 }
   0xb   : > { %p10582_p4 = por %p55_p2, %p54_p1  ;;  %s42_s17 = ssub.s32 %s10519_s10, %s13491_s14 }
   0xc   : > { %p86_p6 = scmp.eq.s32.totalorder %s10333_s12, 1  ;;  %p45_p7 = scmp.eq.s32.totalorder %s42_s17, 0 }
   0xd   : > { %p10588_p8 = por %p61_p5, %p60_p3  ;;  %p92_p10 = scmp.eq.s32.totalorder %s10334_s13, 1 }
   0xe   : > { %p10592_p9 = por %p86_p6, %p54_p1  ;;  %p10359_p13 = scmp.lt.s32.totalorder %s10523_s11, 2 }
   0xf   : > { %s10597_s20 = scalar_select %p45_p7, %s10511_s8, %s47_s15  }
  0x10   : > { %p10599_p11 = por %p92_p10, %p60_p3  ;;  %s112_s22 = sand.u32 1, %s10511_s8  }
  0x11   : > { %s10342_s23 = smul.u32 768, %s112_s22  ;;  %p10609_p0 = pnand %p10359_p13, %p10582_p4 }
  0x12   : > { %s10343_s24 = smul.u32 12288, %s10519_s10  ;;  %p10338_p1 = scmp.ge.s32.totalorder %s10523_s11, 1 }
  0x13   : > { %s116_s29 = scalar_lea.vmem [#allocation3], %s10342_s23  ;;  %s113_s2 = scalar_lea.sflag [#allocation4], %s112_s22 }
  0x14   : > { %s125_s28 = scalar_lea.hbm %s13411_s0, %s10343_s24  ;;  %s126_s30 = sshll.u32 %s116_s29, 4  ;;  %s127_s30 = int_to_ptr.vmem [resolvable:$true] %s126_s30 }
  0x15   : > { %p10417_p2 = pneg %p10609_p0  ;;  %s10428_s3 = scalar_lea.vmem %s127_s30, 12288 }
  0x16   : > { %p10429_p3 = scmp.ne.s32.totalorder %s127_s30, %s10428_s3  ;;  %s10525_s4 = smov [#allocation3]  }
  0x17   : > { %s10433_s5 = sshll.u32 %s10525_s4, 4  ;;  %s10434_s5 = int_to_ptr.vmem [resolvable:$false] %s10433_s5 }
  0x18   : > { %p10431_p5 = pnand %p10429_p3, %p10417_p2  ;;  %s10435_s12 = scalar_lea.vmem %s10434_s5, 24576 }
  0x19   : > { %p10436_p4 = scmp.lt.s32.totalorder %s127_s30, %s10434_s5  ;;  %p10437_p7 = scmp.lt.s32.totalorder %s10435_s12, %s10428_s3 }
  0x1a   : > { %p10432_p6 = pneg %p10431_p5 }
  0x1b   : > { %p10438_p10 = por %p10437_p7, %p10436_p4 }
  0x1d   : > { %p10439_p13 = pnand %p10438_p10, %p10432_p6 }
  0x1f   : > { %10442 = shalt.err (!%p10439_p13)
}
  0x20   : > { %s10526_s13 = smov 128   ;;  %s10527_s15 = smov 8  }
  0x21   : > { %10354 = dma.hbm_to_vmem [thread:$0]  (!%p10609_p0), %s125_s28, 12288, %s127_s30, %s113_s2, %s10526_s13, %s10526_s13, %s10527_s15  }
  0x22   : > { %p134_p12 = scmp.lt.s32.totalorder %s10523_s11, 3 }
  0x24   : > { %p135_p2 = pnand %p10338_p1, %p134_p12 }
  0x26   : > { %138 = sbr.rel (%p135_p2) target bundleno = 854 (0x356), region = 24 }
  0x2b   : > { %s10625_s16 = sand.u32 1, %s10507_s7  }
  0x2c   : > { %s10344_s17 = smul.u32 768, %s10625_s16  ;;  %s141_s22 = scalar_lea.sflag [#allocation4], %s10625_s16 }
  0x2e   : > { %s10629_s23 = scalar_lea.vmem [#allocation3], %s10344_s17 }
  0x2f   : > { %10494 = dma.done.wait (%p10588_p8), %s141_s22, 12288  }
  0x30   : > { %10496 = vsyncadd (%p10588_p8), %s141_s22, 4294955008  ;;  %v363_v0 = vld [vmem:[%s10629_s23 + $0x10] sm:$0xff]   ;;  %v361_v1 = vld [vmem:[%s10629_s23] sm:$0xff]   ;;  %vm9687_vm0 = vcmask 130112   ;;  %vm9694_vm1 = vcmask 195712   ;;  %vm9701_vm2 = vcmask 261312  }
  0x31   : > { %v364_v2 = vld [vmem:[%s10629_s23 + $0x18] sm:$0xff]   ;;  %v459_v3 = vunpack.c.l.bf16 %v363_v0  ;;  %v939_v4 = vunpack.c.h.bf16 %v363_v0  ;;  %v457_v5 = vunpack.c.l.bf16 %v361_v1  ;;  %v937_v6 = vunpack.c.h.bf16 %v361_v1  ;;  %v362_v7 = vld [vmem:[%s10629_s23 + $0x8] sm:$0xff]   ;;  %v365_v13 = vld [vmem:[%s10629_s23 + $0x20] sm:$0xff]   ;;  %s10345_s18 = smul.u32 6, %s10625_s16  ;;  %s10229_s30 = scalar_lea.sflag [#allocation5], %s10625_s16 }
  0x32   : > { %v366_v8 = vld [vmem:[%s10629_s23 + $0x28] sm:$0xff]   ;;  %v460_v9 = vunpack.c.l.bf16 %v364_v2  ;;  %v940_v10 = vunpack.c.h.bf16 %v364_v2  ;;  %v458_v11 = vunpack.c.l.bf16 %v362_v7  ;;  %v938_v12 = vunpack.c.h.bf16 %v362_v7  ;;  %v368_v22 = vld [vmem:[%s10629_s23 + $0x38] sm:$0xff]   ;;  %v367_v23 = vld [vmem:[%s10629_s23 + $0x30] sm:$0xff]   ;;  %s10346_s24 = smul.u32 96, %s10515_s9  ;;  %s10530_s9 = smov [#allocation6]  }
  0x33   : > { %v1035_v14 = vadd.f32 %v939_v4, %v459_v3  ;;  %v1033_v15 = vadd.f32 %v937_v6, %v457_v5  ;;  %v462_v16 = vunpack.c.l.bf16 %v366_v8  ;;  %v942_v17 = vunpack.c.h.bf16 %v366_v8  ;;  %v370_v30 = vld [vmem:[%s10629_s23 + $0x48] sm:$0xff]   ;;  %v369_v31 = vld [vmem:[%s10629_s23 + $0x40] sm:$0xff]   ;;  %v372_v38 = vld [vmem:[%s10629_s23 + $0x58] sm:$0xff]   ;;  %s162_s25 = scalar_lea.vmem [#allocation6], %s10345_s18  ;;  %s10447_s3 = sshll.u32 %s10530_s9, 4  ;;  %s10448_s3 = int_to_ptr.vmem [resolvable:$false] %s10447_s3 }
  0x34   : > { %v1036_v18 = vadd.f32 %v940_v10, %v460_v9  ;;  %v1034_v19 = vadd.f32 %v938_v12, %v458_v11  ;;  %v461_v20 = vunpack.c.l.bf16 %v365_v13  ;;  %v941_v21 = vunpack.c.h.bf16 %v365_v13  ;;  %v371_v39 = vld [vmem:[%s10629_s23 + $0x50] sm:$0xff]   ;;  %v374_v46 = vld [vmem:[%s10629_s23 + $0x68] sm:$0xff]   ;;  %v373_v47 = vld [vmem:[%s10629_s23 + $0x60] sm:$0xff]   ;;  %s10245_s26 = sshll.u32 %s162_s25, 4  ;;  %s10243_s29 = scalar_lea.hbm %s13412_s1, %s10346_s24  ;;  %s10246_s26 = int_to_ptr.vmem [resolvable:$true] %s10245_s26 }
  0x35   : > { %1328 = vadd.xlane.f32.xlu1 %v1035_v14  ;;  %1324 = vadd.xlane.f32.xlu0 %v1033_v15  ;;  %v1038_v24 = vadd.f32 %v942_v17, %v462_v16  ;;  %v464_v25 = vunpack.c.l.bf16 %v368_v22  ;;  %v944_v27 = vunpack.c.h.bf16 %v368_v22  ;;  %v463_v28 = vunpack.c.l.bf16 %v367_v23  ;;  %v376_v54 = vld [vmem:[%s10629_s23 + $0x78] sm:$0xff]   ;;  %v375_v55 = vld [vmem:[%s10629_s23 + $0x70] sm:$0xff]   ;;  %v378_v62 = vld [vmem:[%s10629_s23 + $0x88] sm:$0xff]   ;;  %s10443_s2 = scalar_lea.vmem %s10246_s26, 96  ;;  %s10449_s4 = scalar_lea.vmem %s10448_s3, 192 }
  0x36   : > { %v1037_v26 = vadd.f32 %v941_v21, %v461_v20  ;;  %v943_v29 = vunpack.c.h.bf16 %v367_v23  ;;  %v466_v32 = vunpack.c.l.bf16 %v370_v30  ;;  %v946_v33 = vunpack.c.h.bf16 %v370_v30  ;;  %v377_v63 = vld [vmem:[%s10629_s23 + $0x80] sm:$0xff]   ;;  %v380_v6 = vld [vmem:[%s10629_s23 + $0x98] sm:$0xff]   ;;  %v379_v7 = vld [vmem:[%s10629_s23 + $0x90] sm:$0xff]   ;;  %p10444_p8 = scmp.ne.s32.totalorder %s10246_s26, %s10443_s2  ;;  %p10450_p1 = scmp.lt.s32.totalorder %s10246_s26, %s10448_s3 }
  0x37   : > { %v1040_v34 = vadd.f32 %v944_v27, %v464_v25  ;;  %v465_v36 = vunpack.c.l.bf16 %v369_v31  ;;  %v945_v37 = vunpack.c.h.bf16 %v369_v31  ;;  %v468_v41 = vunpack.c.l.bf16 %v372_v38  ;;  %v382_v14 = vld [vmem:[%s10629_s23 + $0xa8] sm:$0xff]   ;;  %v381_v15 = vld [vmem:[%s10629_s23 + $0xa0] sm:$0xff]   ;;  %v384_v22 = vld [vmem:[%s10629_s23 + $0xb8] sm:$0xff]   ;;  %p10451_p3 = scmp.lt.s32.totalorder %s10449_s4, %s10443_s2 }
  0x38   : > { %v1039_v35 = vadd.f32 %v943_v29, %v463_v28  ;;  %v1042_v40 = vadd.f32 %v946_v33, %v466_v32  ;;  %v948_v43 = vunpack.c.h.bf16 %v372_v38  ;;  %v467_v44 = vunpack.c.l.bf16 %v371_v39  ;;  %v383_v23 = vld [vmem:[%s10629_s23 + $0xb0] sm:$0xff]   ;;  %v386_v30 = vld [vmem:[%s10629_s23 + $0xc8] sm:$0xff]   ;;  %v385_v31 = vld [vmem:[%s10629_s23 + $0xc0] sm:$0xff]   ;;  %p10445_p12 = pnand %p10444_p8, %p10592_p9 }
  0x39   : > { %1330 = vadd.xlane.f32.xlu1 %v1036_v18  ;;  %1326 = vadd.xlane.f32.xlu0 %v1034_v19  ;;  %v1041_v42 = vadd.f32 %v945_v37, %v465_v36  ;;  %v947_v45 = vunpack.c.h.bf16 %v371_v39  ;;  %v470_v48 = vunpack.c.l.bf16 %v374_v46  ;;  %v950_v49 = vunpack.c.h.bf16 %v374_v46  ;;  %v388_v38 = vld [vmem:[%s10629_s23 + $0xd8] sm:$0xff]   ;;  %v387_v39 = vld [vmem:[%s10629_s23 + $0xd0] sm:$0xff]   ;;  %v390_v46 = vld [vmem:[%s10629_s23 + $0xe8] sm:$0xff]   ;;  %p10452_p5 = por %p10451_p3, %p10450_p1 }
  0x3a   : > { %v1044_v50 = vadd.f32 %v948_v43, %v468_v41  ;;  %v469_v52 = vunpack.c.l.bf16 %v373_v47  ;;  %v949_v53 = vunpack.c.h.bf16 %v373_v47  ;;  %v472_v57 = vunpack.c.l.bf16 %v376_v54  ;;  %v389_v47 = vld [vmem:[%s10629_s23 + $0xe0] sm:$0xff]   ;;  %p10446_p0 = pneg %p10445_p12 }
  0x3b   : > { %v1043_v51 = vadd.f32 %v947_v45, %v467_v44  ;;  %v1046_v56 = vadd.f32 %v950_v49, %v470_v48  ;;  %v952_v59 = vunpack.c.h.bf16 %v376_v54  ;;  %v471_v60 = vunpack.c.l.bf16 %v375_v55  ;;  %v392_v54 = vld [vmem:[%s10629_s23 + $0xf8] sm:$0xff]  }
  0x3c   : > { %v1045_v58 = vadd.f32 %v949_v53, %v469_v52  ;;  %v951_v61 = vunpack.c.h.bf16 %v375_v55  ;;  %v474_v0 = vunpack.c.l.bf16 %v378_v62  ;;  %v954_v1 = vunpack.c.h.bf16 %v378_v62  ;;  %v391_v55 = vld [vmem:[%s10629_s23 + $0xf0] sm:$0xff]   ;;  %v394_v62 = vld [vmem:[%s10629_s23 + $0x108] sm:$0xff]   ;;  %p10453_p6 = pnand %p10452_p5, %p10446_p0 }
  0x3d   : > { %1334 = vadd.xlane.f32.xlu1 %v1038_v24  ;;  %1332 = vadd.xlane.f32.xlu0 %v1037_v26  ;;  %v1048_v2 = vadd.f32 %v952_v59, %v472_v57  ;;  %v473_v4 = vunpack.c.l.bf16 %v377_v63  ;;  %v953_v5 = vunpack.c.h.bf16 %v377_v63  ;;  %v476_v9 = vunpack.c.l.bf16 %v380_v6  ;;  %v393_v63 = vld [vmem:[%s10629_s23 + $0x100] sm:$0xff]  }
  0x3e   : > { %v1047_v3 = vadd.f32 %v951_v61, %v471_v60  ;;  %v1050_v8 = vadd.f32 %v954_v1, %v474_v0  ;;  %v956_v11 = vunpack.c.h.bf16 %v380_v6  ;;  %v475_v12 = vunpack.c.l.bf16 %v379_v7  ;;  %v396_v6 = vld [vmem:[%s10629_s23 + $0x118] sm:$0xff]  }
  0x3f   : > { %v1049_v10 = vadd.f32 %v953_v5, %v473_v4  ;;  %v955_v13 = vunpack.c.h.bf16 %v379_v7  ;;  %v478_v16 = vunpack.c.l.bf16 %v382_v14  ;;  %v958_v17 = vunpack.c.h.bf16 %v382_v14  ;;  %v395_v7 = vld [vmem:[%s10629_s23 + $0x110] sm:$0xff]   ;;  %v398_v14 = vld [vmem:[%s10629_s23 + $0x128] sm:$0xff]  }
  0x40   : > { %v1052_v18 = vadd.f32 %v956_v11, %v476_v9  ;;  %v477_v20 = vunpack.c.l.bf16 %v381_v15  ;;  %v957_v21 = vunpack.c.h.bf16 %v381_v15  ;;  %v480_v25 = vunpack.c.l.bf16 %v384_v22  ;;  %v397_v15 = vld [vmem:[%s10629_s23 + $0x120] sm:$0xff]  }
  0x41   : > { %1338 = vadd.xlane.f32.xlu1 %v1040_v34  ;;  %1336 = vadd.xlane.f32.xlu0 %v1039_v35  ;;  %v1051_v19 = vadd.f32 %v955_v13, %v475_v12  ;;  %v1054_v24 = vadd.f32 %v958_v17, %v478_v16  ;;  %v960_v27 = vunpack.c.h.bf16 %v384_v22  ;;  %v479_v28 = vunpack.c.l.bf16 %v383_v23  ;;  %v400_v22 = vld [vmem:[%s10629_s23 + $0x138] sm:$0xff]  }
  0x42   : > { %v1053_v26 = vadd.f32 %v957_v21, %v477_v20  ;;  %v959_v29 = vunpack.c.h.bf16 %v383_v23  ;;  %v482_v32 = vunpack.c.l.bf16 %v386_v30  ;;  %v962_v33 = vunpack.c.h.bf16 %v386_v30  ;;  %v399_v23 = vld [vmem:[%s10629_s23 + $0x130] sm:$0xff]   ;;  %v402_v30 = vld [vmem:[%s10629_s23 + $0x148] sm:$0xff]  }
  0x43   : > { %v1056_v34 = vadd.f32 %v960_v27, %v480_v25  ;;  %v481_v36 = vunpack.c.l.bf16 %v385_v31  ;;  %v961_v37 = vunpack.c.h.bf16 %v385_v31  ;;  %v484_v41 = vunpack.c.l.bf16 %v388_v38  ;;  %v401_v31 = vld [vmem:[%s10629_s23 + $0x140] sm:$0xff]  }
  0x44   : > { %v1055_v35 = vadd.f32 %v959_v29, %v479_v28  ;;  %v964_v43 = vunpack.c.h.bf16 %v388_v38  ;;  %v483_v44 = vunpack.c.l.bf16 %v387_v39  ;;  %v963_v45 = vunpack.c.h.bf16 %v387_v39  ;;  %v404_v38 = vld [vmem:[%s10629_s23 + $0x158] sm:$0xff]   ;;  %v403_v39 = vld [vmem:[%s10629_s23 + $0x150] sm:$0xff]  }
  0x45   : > { %1342 = vadd.xlane.f32.xlu1 %v1042_v40  ;;  %1340 = vadd.xlane.f32.xlu0 %v1041_v42  ;;  %v1058_v40 = vadd.f32 %v962_v33, %v482_v32  ;;  %v1057_v42 = vadd.f32 %v961_v37, %v481_v36  ;;  %v486_v48 = vunpack.c.l.bf16 %v390_v46  ;;  %v966_v49 = vunpack.c.h.bf16 %v390_v46 }
  0x46   : > { %v485_v52 = vunpack.c.l.bf16 %v389_v47  ;;  %v965_v53 = vunpack.c.h.bf16 %v389_v47  ;;  %v488_v57 = vunpack.c.l.bf16 %v392_v54  ;;  %v968_v59 = vunpack.c.h.bf16 %v392_v54  ;;  %v406_v47 = vld [vmem:[%s10629_s23 + $0x168] sm:$0xff]  }
  0x47   : > { %v487_v60 = vunpack.c.l.bf16 %v391_v55  ;;  %v967_v61 = vunpack.c.h.bf16 %v391_v55  ;;  %v490_v0 = vunpack.c.l.bf16 %v394_v62  ;;  %v970_v1 = vunpack.c.h.bf16 %v394_v62  ;;  %v408_v55 = vld [vmem:[%s10629_s23 + $0x178] sm:$0xff]  }
  0x48   : > { %v489_v4 = vunpack.c.l.bf16 %v393_v63  ;;  %v969_v5 = vunpack.c.h.bf16 %v393_v63  ;;  %v492_v9 = vunpack.c.l.bf16 %v396_v6  ;;  %v972_v11 = vunpack.c.h.bf16 %v396_v6  ;;  %v410_v63 = vld [vmem:[%s10629_s23 + $0x188] sm:$0xff]  }
  0x49   : > { %1346 = vadd.xlane.f32.xlu1 %v1044_v50  ;;  %1344 = vadd.xlane.f32.xlu0 %v1043_v51  ;;  %v1060_v50 = vadd.f32 %v964_v43, %v484_v41  ;;  %v1059_v51 = vadd.f32 %v963_v45, %v483_v44  ;;  %v491_v12 = vunpack.c.l.bf16 %v395_v7  ;;  %v971_v13 = vunpack.c.h.bf16 %v395_v7  ;;  %v412_v7 = vld [vmem:[%s10629_s23 + $0x198] sm:$0xff]  }
  0x4a   : > { %v494_v16 = vunpack.c.l.bf16 %v398_v14  ;;  %v974_v17 = vunpack.c.h.bf16 %v398_v14  ;;  %v493_v20 = vunpack.c.l.bf16 %v397_v15  ;;  %v973_v21 = vunpack.c.h.bf16 %v397_v15  ;;  %v414_v15 = vld [vmem:[%s10629_s23 + $0x1a8] sm:$0xff]  }
  0x4b   : > { %v496_v25 = vunpack.c.l.bf16 %v400_v22  ;;  %v976_v27 = vunpack.c.h.bf16 %v400_v22  ;;  %v495_v28 = vunpack.c.l.bf16 %v399_v23  ;;  %v975_v29 = vunpack.c.h.bf16 %v399_v23  ;;  %v416_v23 = vld [vmem:[%s10629_s23 + $0x1b8] sm:$0xff]  }
  0x4c   : > { %v498_v32 = vunpack.c.l.bf16 %v402_v30  ;;  %v978_v33 = vunpack.c.h.bf16 %v402_v30  ;;  %v497_v36 = vunpack.c.l.bf16 %v401_v31  ;;  %v977_v37 = vunpack.c.h.bf16 %v401_v31 }
  0x4d   : > { %1350 = vadd.xlane.f32.xlu1 %v1046_v56  ;;  %1348 = vadd.xlane.f32.xlu0 %v1045_v58  ;;  %v1062_v56 = vadd.f32 %v966_v49, %v486_v48  ;;  %v1061_v58 = vadd.f32 %v965_v53, %v485_v52  ;;  %v980_v44 = vunpack.c.h.bf16 %v404_v38  ;;  %v499_v45 = vunpack.c.l.bf16 %v403_v39  ;;  %v405_v48 = vld [vmem:[%s10629_s23 + $0x160] sm:$0xff]  }
  0x4e   : > { %v1074_v41 = vadd.f32 %v978_v33, %v498_v32  ;;  %v1073_v43 = vadd.f32 %v977_v37, %v497_v36  ;;  %v979_v46 = vunpack.c.h.bf16 %v403_v39  ;;  %v502_v49 = vunpack.c.l.bf16 %v406_v47  ;;  %v422_v39 = vld [vmem:[%s10629_s23 + $0x1e8] sm:$0xff]  }
  0x4f   : > { %v501_v53 = vunpack.c.l.bf16 %v405_v48  ;;  %v981_v54 = vunpack.c.h.bf16 %v405_v48  ;;  %v423_v48 = vld [vmem:[%s10629_s23 + $0x1f0] sm:$0xff]   ;;  %vm9708_vm3 = vcmask 326912   ;;  %vm9715_vm4 = vcmask 392512  }
  0x50   : > { %v1075_v52 = vadd.f32 %v979_v46, %v499_v45  ;;  %vm9722_vm5 = vcmask 458112   ;;  %vm9729_vm6 = vcmask 523712   ;;  %vm9736_vm7 = vcmask 589312  }
  0x51   : > { %1354 = vadd.xlane.f32.xlu1 %v1048_v2  ;;  %1352 = vadd.xlane.f32.xlu0 %v1047_v3  ;;  %v1064_v2 = vadd.f32 %v968_v59, %v488_v57  ;;  %v1063_v3 = vadd.f32 %v967_v61, %v487_v60  ;;  %v1077_v59 = vadd.f32 %v981_v54, %v501_v53  ;;  %v984_v60 = vunpack.c.h.bf16 %v408_v55  ;;  %v425_v54 = vld [vmem:[%s10629_s23 + $0x200] sm:$0xff]  }
  0x52   : > { %v998_v53 = vunpack.c.h.bf16 %v422_v39  ;;  %vm9743_vm8 = vcmask 654912   ;;  %vm9750_vm9 = vcmask 720512   ;;  %vm9757_vm10 = vcmask 786112  }
  0x53   : > { %vm9764_vm11 = vcmask 851712   ;;  %vm9771_vm12 = vcmask 917312   ;;  %vm9778_vm13 = vcmask 982912   ;;  %vm9785_vm14 = vcmask 1048512  }
  0x55   : > { %1358 = vadd.xlane.f32.xlu1 %v1050_v8  ;;  %1356 = vadd.xlane.f32.xlu0 %v1049_v10  ;;  %v1066_v8 = vadd.f32 %v970_v1, %v490_v0  ;;  %v1065_v10 = vadd.f32 %v969_v5, %v489_v4  ;;  %v409_v0 = vld [vmem:[%s10629_s23 + $0x180] sm:$0xff]   ;;  %v506_v1 = vunpack.c.l.bf16 %v410_v63 }
  0x56   : > { %v505_v5 = vunpack.c.l.bf16 %v409_v0  ;;  %v985_v6 = vunpack.c.h.bf16 %v409_v0 }
  0x59   : > { %1362 = vadd.xlane.f32.xlu1 %v1052_v18  ;;  %1360 = vadd.xlane.f32.xlu0 %v1051_v19  ;;  %v1068_v18 = vadd.f32 %v972_v11, %v492_v9  ;;  %v1067_v19 = vadd.f32 %v971_v13, %v491_v12  ;;  %v1081_v11 = vadd.f32 %v985_v6, %v505_v5  ;;  %v988_v12 = vunpack.c.h.bf16 %v412_v7 }
  0x5d   : > { %1366 = vadd.xlane.f32.xlu1 %v1054_v24  ;;  %1364 = vadd.xlane.f32.xlu0 %v1053_v26  ;;  %v1070_v24 = vadd.f32 %v974_v17, %v494_v16  ;;  %v1069_v26 = vadd.f32 %v973_v21, %v493_v20  ;;  %v413_v16 = vld [vmem:[%s10629_s23 + $0x1a0] sm:$0xff]   ;;  %v510_v17 = vunpack.c.l.bf16 %v414_v15 }
  0x5e   : > { %v509_v21 = vunpack.c.l.bf16 %v413_v16  ;;  %v989_v22 = vunpack.c.h.bf16 %v413_v16 }
  0x60   : > { %v1085_v31 = vadd.f32 %v989_v22, %v509_v21  ;;  %v434_v22 = vld [vmem:[%s10629_s23 + $0x248] sm:$0xff]  }
  0x61   : > { %1370 = vadd.xlane.f32.xlu1 %v1056_v34  ;;  %1368 = vadd.xlane.f32.xlu0 %v1055_v35  ;;  %v1072_v34 = vadd.f32 %v976_v27, %v496_v25  ;;  %v1071_v35 = vadd.f32 %v975_v29, %v495_v28  ;;  %v418_v25 = vld [vmem:[%s10629_s23 + $0x1c8] sm:$0xff]   ;;  %v512_v28 = vunpack.c.l.bf16 %v416_v23  ;;  %v992_v29 = vunpack.c.h.bf16 %v416_v23  ;;  %v433_v23 = vld [vmem:[%s10629_s23 + $0x240] sm:$0xff]  }
  0x62   : > { %v514_v33 = vunpack.c.l.bf16 %v418_v25 }
  0x65   : > { %1374 = vadd.xlane.f32.xlu1 %v1058_v40  ;;  %1372 = vadd.xlane.f32.xlu0 %v1057_v42  ;;  %v10528_v40 = vmov 0   ;;  %v500_v42 = vunpack.c.l.bf16 %v404_v38  ;;  %v419_v38 = vld [vmem:[%s10629_s23 + $0x1d0] sm:$0xff]  }
  0x66   : > { %10414 = vset.pattern.permute.xlu1 %v10528_v40  ;;  %10413 = vset.pattern.permute.xlu0 %v10528_v40  ;;  %v1088_v40 = vadd.f32 %v992_v29, %v512_v28  ;;  %v436_v28 = vld [vmem:[%s10629_s23 + $0x258] sm:$0xff]   ;;  %v435_v29 = vld [vmem:[%s10629_s23 + $0x250] sm:$0xff]  }
  0x69   : > { %1378 = vadd.xlane.f32.xlu1 %v1060_v50  ;;  %1376 = vadd.xlane.f32.xlu0 %v1059_v51  ;;  %v982_v50 = vunpack.c.h.bf16 %v406_v47  ;;  %v1076_v51 = vadd.f32 %v980_v44, %v500_v42  ;;  %v421_v42 = vld [vmem:[%s10629_s23 + $0x1e0] sm:$0xff]   ;;  %v515_v47 = vunpack.c.l.bf16 %v419_v38 }
  0x6b   : > { %v1078_v57 = vadd.f32 %v982_v50, %v502_v49  ;;  %v426_v49 = vld [vmem:[%s10629_s23 + $0x208] sm:$0xff]  }
  0x6c   : > { %v1002_v0 = vunpack.c.h.bf16 %v426_v49 }
  0x6d   : > { %1382 = vadd.xlane.f32.xlu1 %v1062_v56  ;;  %1380 = vadd.xlane.f32.xlu0 %v1061_v58  ;;  %v407_v56 = vld [vmem:[%s10629_s23 + $0x170] sm:$0xff]   ;;  %v504_v58 = vunpack.c.l.bf16 %v408_v55  ;;  %v428_v55 = vld [vmem:[%s10629_s23 + $0x218] sm:$0xff]  }
  0x6e   : > { %v503_v61 = vunpack.c.l.bf16 %v407_v56  ;;  %v983_v62 = vunpack.c.h.bf16 %v407_v56  ;;  %v517_v56 = vunpack.c.l.bf16 %v421_v42  ;;  %v1004_v5 = vunpack.c.h.bf16 %v428_v55 }
  0x70   : > { %v1079_v4 = vadd.f32 %v983_v62, %v503_v61  ;;  %v519_v61 = vunpack.c.l.bf16 %v423_v48  ;;  %v999_v62 = vunpack.c.h.bf16 %v423_v48 }
  0x71   : > { %1386 = vadd.xlane.f32.xlu1 %v1064_v2  ;;  %1384 = vadd.xlane.f32.xlu0 %v1063_v3  ;;  %v986_v2 = vunpack.c.h.bf16 %v410_v63  ;;  %v1080_v3 = vadd.f32 %v984_v60, %v504_v58  ;;  %v427_v60 = vld [vmem:[%s10629_s23 + $0x210] sm:$0xff]   ;;  %v522_v63 = vunpack.c.l.bf16 %v426_v49 }
  0x72   : > { %v523_v6 = vunpack.c.l.bf16 %v427_v60 }
  0x73   : > { %v1082_v9 = vadd.f32 %v986_v2, %v506_v1  ;;  %v430_v1 = vld [vmem:[%s10629_s23 + $0x228] sm:$0xff]   ;;  %v521_v2 = vunpack.c.l.bf16 %v425_v54 }
  0x75   : > { %1390 = vadd.xlane.f32.xlu1 %v1066_v8  ;;  %1388 = vadd.xlane.f32.xlu0 %v1065_v10  ;;  %v411_v8 = vld [vmem:[%s10629_s23 + $0x190] sm:$0xff]   ;;  %v508_v10 = vunpack.c.l.bf16 %v412_v7  ;;  %v1003_v7 = vunpack.c.h.bf16 %v427_v60  ;;  %v444_v60 = vld [vmem:[%s10629_s23 + $0x298] sm:$0xff]  }
  0x76   : > { %v507_v13 = vunpack.c.l.bf16 %v411_v8  ;;  %v987_v14 = vunpack.c.h.bf16 %v411_v8 }
  0x78   : > { %v1083_v20 = vadd.f32 %v987_v14, %v507_v13  ;;  %v432_v13 = vld [vmem:[%s10629_s23 + $0x238] sm:$0xff]  }
  0x79   : > { %1394 = vadd.xlane.f32.xlu1 %v1068_v18  ;;  %1392 = vadd.xlane.f32.xlu0 %v1067_v19  ;;  %v990_v18 = vunpack.c.h.bf16 %v414_v15  ;;  %v1084_v19 = vadd.f32 %v988_v12, %v508_v10  ;;  %v526_v10 = vunpack.c.l.bf16 %v430_v1  ;;  %v429_v12 = vld [vmem:[%s10629_s23 + $0x220] sm:$0xff]  }
  0x7b   : > { %v1086_v27 = vadd.f32 %v990_v18, %v510_v17  ;;  %v10708_v17 = vadd.f32 %v999_v62, %v519_v61  ;;  %v431_v18 = vld [vmem:[%s10629_s23 + $0x230] sm:$0xff]  }
  0x7d   : > { %1398 = vadd.xlane.f32.xlu1 %v1070_v24  ;;  %1396 = vadd.xlane.f32.xlu0 %v1069_v26  ;;  %v415_v24 = vld [vmem:[%s10629_s23 + $0x1b0] sm:$0xff]   ;;  %v417_v26 = vld [vmem:[%s10629_s23 + $0x1c0] sm:$0xff]  }
  0x7e   : > { %v511_v30 = vunpack.c.l.bf16 %v415_v24  ;;  %v991_v32 = vunpack.c.h.bf16 %v415_v24  ;;  %v513_v36 = vunpack.c.l.bf16 %v417_v26  ;;  %v993_v37 = vunpack.c.h.bf16 %v417_v26 }
  0x7f   : > { %v10719_v24 = vadd.f32 %v1003_v7, %v523_v6  ;;  %v1005_v26 = vunpack.c.h.bf16 %v429_v12  ;;  %v445_v6 = vld [vmem:[%s10629_s23 + $0x2a0] sm:$0xff]  }
  0x80   : > { %v1087_v44 = vadd.f32 %v991_v32, %v511_v30  ;;  %v1089_v50 = vadd.f32 %v993_v37, %v513_v36  ;;  %v527_v32 = vunpack.c.l.bf16 %v431_v18  ;;  %v530_v36 = vunpack.c.l.bf16 %v434_v22 }
  0x81   : > { %1402 = vadd.xlane.f32.xlu1 %v1072_v34  ;;  %1400 = vadd.xlane.f32.xlu0 %v1071_v35  ;;  %v994_v34 = vunpack.c.h.bf16 %v418_v25  ;;  %v420_v35 = vld [vmem:[%s10629_s23 + $0x1d8] sm:$0xff]   ;;  %v525_v25 = vunpack.c.l.bf16 %v429_v12  ;;  %v1010_v37 = vunpack.c.h.bf16 %v434_v22  ;;  %v447_v12 = vld [vmem:[%s10629_s23 + $0x2b0] sm:$0xff]   ;;  %v450_v22 = vld [vmem:[%s10629_s23 + $0x2c8] sm:$0xff]  }
  0x82   : > { %v996_v46 = vunpack.c.h.bf16 %v420_v35 }
  0x83   : > { %v1090_v45 = vadd.f32 %v994_v34, %v514_v33  ;;  %v1007_v33 = vunpack.c.h.bf16 %v431_v18  ;;  %v438_v34 = vld [vmem:[%s10629_s23 + $0x268] sm:$0xff]  }
  0x85   : > { %1406 = vadd.xlane.f32.xlu1 %v1074_v41  ;;  %1404 = vadd.xlane.f32.xlu0 %v1073_v43  ;;  %v516_v41 = vunpack.c.l.bf16 %v420_v35  ;;  %v424_v43 = vld [vmem:[%s10629_s23 + $0x1f8] sm:$0xff]   ;;  %v437_v35 = vld [vmem:[%s10629_s23 + $0x260] sm:$0xff]  }
  0x86   : > { %v520_v58 = vunpack.c.l.bf16 %v424_v43  ;;  %v533_v48 = vunpack.c.l.bf16 %v437_v35  ;;  %v1013_v49 = vunpack.c.h.bf16 %v437_v35  ;;  %v1026_v35 = vunpack.c.h.bf16 %v450_v22 }
  0x87   : > { %v1092_v8 = vadd.f32 %v996_v46, %v516_v41  ;;  %v532_v41 = vunpack.c.l.bf16 %v436_v28  ;;  %v534_v46 = vunpack.c.l.bf16 %v438_v34 }
  0x89   : > { %1410 = vadd.xlane.f32.xlu1 %v1076_v51  ;;  %1408 = vadd.xlane.f32.xlu0 %v1075_v52  ;;  %v995_v51 = vunpack.c.h.bf16 %v419_v38  ;;  %v518_v52 = vunpack.c.l.bf16 %v422_v39  ;;  %v529_v38 = vunpack.c.l.bf16 %v433_v23  ;;  %v1009_v39 = vunpack.c.h.bf16 %v433_v23 }
  0x8b   : > { %v1094_v14 = vadd.f32 %v998_v53, %v518_v52  ;;  %v10740_v61 = vadd.f32 %v1009_v39, %v529_v38 }
  0x8d   : > { %1414 = vadd.xlane.f32.xlu1 %v1078_v57  ;;  %1412 = vadd.xlane.f32.xlu0 %v1077_v59  ;;  %v997_v57 = vunpack.c.h.bf16 %v421_v42  ;;  %v1000_v59 = vunpack.c.h.bf16 %v424_v43  ;;  %v1012_v42 = vunpack.c.h.bf16 %v436_v28  ;;  %v531_v43 = vunpack.c.l.bf16 %v435_v29  ;;  %v449_v28 = vld [vmem:[%s10629_s23 + $0x2c0] sm:$0xff]  }
  0x8e   : > { %v545_v38 = vunpack.c.l.bf16 %v449_v28  ;;  %v1025_v39 = vunpack.c.h.bf16 %v449_v28 }
  0x8f   : > { %v1093_v15 = vadd.f32 %v997_v57, %v517_v56  ;;  %v10706_v16 = vadd.f32 %v1000_v59, %v520_v58  ;;  %v10736_v56 = vadd.f32 %v1010_v37, %v530_v36  ;;  %v441_v59 = vld [vmem:[%s10629_s23 + $0x280] sm:$0xff]   ;;  %v10742_v62 = vadd.f32 %v1012_v42, %v532_v41  ;;  %v452_v36 = vld [vmem:[%s10629_s23 + $0x2d8] sm:$0xff]  }
  0x90   : > { %v13413_v37 = vlaneseq }
  0x91   : > { %1418 = vadd.xlane.f32.xlu1 %v1080_v3  ;;  %1416 = vadd.xlane.f32.xlu0 %v1079_v4  ;;  %v1001_v3 = vunpack.c.h.bf16 %v425_v54  ;;  %v524_v4 = vunpack.c.l.bf16 %v428_v55  ;;  %v442_v54 = vld [vmem:[%s10629_s23 + $0x288] sm:$0xff]   ;;  %v10734_v55 = vadd.f32 %v1007_v33, %v527_v32  ;;  %v543_v32 = vunpack.c.l.bf16 %v447_v12 }
  0x92   : > { %v1023_v33 = vunpack.c.h.bf16 %v447_v12 }
  0x93   : > { %v10715_v21 = vadd.f32 %v1004_v5, %v524_v4  ;;  %v1018_v4 = vunpack.c.h.bf16 %v442_v54  ;;  %v446_v5 = vld [vmem:[%s10629_s23 + $0x2a8] sm:$0xff]  }
  0x94   : > { %v542_v23 = vunpack.c.l.bf16 %v446_v5 }
  0x95   : > { %1422 = vadd.xlane.f32.xlu1 %v1082_v9  ;;  %1420 = vadd.xlane.f32.xlu0 %v1081_v11  ;;  %v1091_v9 = vadd.f32 %v995_v51, %v515_v47  ;;  %v1006_v11 = vunpack.c.h.bf16 %v430_v1  ;;  %v1014_v47 = vunpack.c.h.bf16 %v438_v34  ;;  %v546_v34 = vunpack.c.l.bf16 %v450_v22 }
  0x97   : > { %v10723_v30 = vadd.f32 %v1006_v11, %v526_v10  ;;  %v10747_v1 = vadd.f32 %v1014_v47, %v534_v46  ;;  %v540_v10 = vunpack.c.l.bf16 %v444_v60  ;;  %v448_v11 = vld [vmem:[%s10629_s23 + $0x2b8] sm:$0xff]   ;;  %v548_v47 = vunpack.c.l.bf16 %v452_v36 }
  0x99   : > { %1426 = vadd.xlane.f32.xlu1 %v1084_v19  ;;  %1424 = vadd.xlane.f32.xlu0 %v1083_v20  ;;  %v10711_v19 = vadd.f32 %v1002_v0, %v522_v63  ;;  %v10713_v20 = vadd.f32 %v1001_v3, %v521_v2  ;;  %v443_v0 = vld [vmem:[%s10629_s23 + $0x290] sm:$0xff]   ;;  %v10749_v2 = vadd.f32 %v1013_v49, %v533_v48  ;;  %v538_v3 = vunpack.c.l.bf16 %v442_v54  ;;  %v453_v48 = vld [vmem:[%s10629_s23 + $0x2e0] sm:$0xff]   ;;  %v456_v49 = vld [vmem:[%s10629_s23 + $0x2f8] sm:$0xff]  }
  0x9a   : > { %v1019_v18 = vunpack.c.h.bf16 %v443_v0  ;;  %v1028_v54 = vunpack.c.h.bf16 %v452_v36 }
  0x9d   : > { %1430 = vadd.xlane.f32.xlu1 %v1086_v27  ;;  %1428 = vadd.xlane.f32.xlu0 %v1085_v31  ;;  %v528_v27 = vunpack.c.l.bf16 %v432_v13  ;;  %v1008_v31 = vunpack.c.h.bf16 %v432_v13 }
  0x9f   : > { %v10731_v51 = vadd.f32 %v1008_v31, %v528_v27  ;;  %v1021_v27 = vunpack.c.h.bf16 %v445_v6  ;;  %v1024_v31 = vunpack.c.h.bf16 %v448_v11 }
  0xa1   : > { %1434 = vadd.xlane.f32.xlu1 %v1088_v40  ;;  %1432 = vadd.xlane.f32.xlu0 %v1087_v44  ;;  %v440_v40 = vld [vmem:[%s10629_s23 + $0x278] sm:$0xff]   ;;  %v1011_v44 = vunpack.c.h.bf16 %v435_v29  ;;  %v544_v29 = vunpack.c.l.bf16 %v448_v11 }
  0xa2   : > { %v536_v52 = vunpack.c.l.bf16 %v440_v40  ;;  %v1016_v53 = vunpack.c.h.bf16 %v440_v40 }
  0xa3   : > { %v10744_v63 = vadd.f32 %v1011_v44, %v531_v43  ;;  %v451_v43 = vld [vmem:[%s10629_s23 + $0x2d0] sm:$0xff]   ;;  %v454_v44 = vld [vmem:[%s10629_s23 + $0x2e8] sm:$0xff]   ;;  %v10780_v46 = vadd.f32 %v1024_v31, %v544_v29 }
  0xa4   : > { %v10753_v7 = vadd.f32 %v1016_v53, %v536_v52  ;;  %v10529_v52 = vmov 1966171168   ;;  %v10784_v53 = vadd.f32 %v1023_v33, %v543_v32 }
  0xa5   : > { %1438 = vadd.xlane.f32.xlu1 %v1090_v45  ;;  %1436 = vadd.xlane.f32.xlu0 %v1089_v50  ;;  %v439_v45 = vld [vmem:[%s10629_s23 + $0x270] sm:$0xff]   ;;  %v10729_v50 = vadd.f32 %v1005_v26, %v525_v25  ;;  %v1022_v25 = vunpack.c.h.bf16 %v446_v5  ;;  %v541_v26 = vunpack.c.l.bf16 %v445_v6  ;;  %v549_v5 = vunpack.c.l.bf16 %v453_v48 }
  0xa6   : > { %v535_v57 = vunpack.c.l.bf16 %v439_v45  ;;  %v1015_v58 = vunpack.c.h.bf16 %v439_v45  ;;  %v1029_v6 = vunpack.c.h.bf16 %v453_v48 }
  0xa7   : > { %v10774_v42 = vadd.f32 %v1022_v25, %v542_v23  ;;  %v10778_v45 = vadd.f32 %v1021_v27, %v541_v26  ;;  %v10822_v26 = vadd.f32 %v1028_v54, %v548_v47 }
  0xa8   : > { %v10757_v13 = vadd.f32 %v1015_v58, %v535_v57  ;;  %v455_v57 = vld [vmem:[%s10629_s23 + $0x2f0] sm:$0xff]   ;;  %v10790_v58 = vshrl.u32 %v13413_v37, 7  ;;  %v10830_v32 = vadd.f32 %v1029_v6, %v549_v5 }
  0xa9   : > { %1442 = vadd.xlane.f32.xlu1 %v1092_v8  ;;  %1440 = vadd.xlane.f32.xlu0 %v1091_v9  ;;  %v537_v8 = vunpack.c.l.bf16 %v441_v59  ;;  %v1017_v9 = vunpack.c.h.bf16 %v441_v59  ;;  %v10792_v59 = vadd.f32 %v1025_v39, %v545_v38  ;;  %v1031_v11 = vunpack.c.h.bf16 %v455_v57 }
  0xaa   : > { %v10812_v22 = vsub.s32 5, %v10790_v58  ;;  %v10815_v23 = vsub.s32 6, %v10790_v58  ;;  %v10818_v25 = vsub.s32 7, %v10790_v58 }
  0xad   : > { %1446 = vadd.xlane.f32.xlu1 %v1094_v14  ;;  %1444 = vadd.xlane.f32.xlu0 %v1093_v15  ;;  %v1020_v14 = vunpack.c.h.bf16 %v444_v60  ;;  %v539_v15 = vunpack.c.l.bf16 %v443_v0  ;;  %v547_v60 = vunpack.c.l.bf16 %v451_v43  ;;  %v1027_v0 = vunpack.c.h.bf16 %v451_v43 }
  0xaf   : > { %v10770_v40 = vadd.f32 %v1020_v14, %v540_v10  ;;  %v10772_v41 = vadd.f32 %v1019_v18, %v539_v15  ;;  %v551_v10 = vunpack.c.l.bf16 %v455_v57  ;;  %v10797_v14 = vsub.s32 0, %v10790_v58 }
  0xb0   : > { %v10800_v15 = vsub.s32 1, %v10790_v58  ;;  %v10803_v18 = vsub.s32 2, %v10790_v58  ;;  %v10824_v27 = vadd.f32 %v1027_v0, %v547_v60 }
  0xb1   : > { %1450 = vadd.xlane.f32.xlu1 %v10706_v16  ;;  %1448 = vadd.xlane.f32.xlu0 %v10708_v17  ;;  %v10764_v16 = vadd.f32 %v1018_v4, %v538_v3  ;;  %v10766_v17 = vadd.f32 %v1017_v9, %v537_v8  ;;  %v550_v3 = vunpack.c.l.bf16 %v454_v44  ;;  %v1030_v4 = vunpack.c.h.bf16 %v454_v44 }
  0xb2   : > { %v552_v8 = vunpack.c.l.bf16 %v456_v49  ;;  %v1032_v9 = vunpack.c.h.bf16 %v456_v49 }
  0xb3   : > { %v10826_v28 = vadd.f32 %v1030_v4, %v550_v3 }
  0xb4   : > { %v10832_v33 = vadd.f32 %v1032_v9, %v552_v8 }
  0xb5   : > { %1454 = vadd.xlane.f32.xlu1 %v10711_v19  ;;  %1452 = vadd.xlane.f32.xlu0 %v10713_v20  ;;  %v4689_v19 = vunpack.c.l.s4 %v10529_v52  ;;  %v10786_v20 = vadd.f32 %v1026_v35, %v546_v34  ;;  %v10834_v34 = vadd.f32 %v1031_v11, %v551_v10 }
  0xb7   : > { %v4690_v12 = vunpack.c.0.s8 %v4689_v19 }
  0xb9   : > { %1458 = vadd.xlane.f32.xlu1 %v10715_v21  ;;  %1456 = vadd.xlane.f32.xlu0 %v10719_v24  ;;  %v10806_v21 = vsub.s32 3, %v10790_v58  ;;  %v10809_v24 = vsub.s32 4, %v10790_v58  ;;  %v10837_v35 = vsub.s32 %v4690_v12, %v10790_v58 }
  0xbb   : > { %13424 = vst [vmem:[#allocation9_spill] sm:$0xff] %v10837_v35 }
  0xbd   : > { %1462 = vadd.xlane.f32.xlu1 %v10723_v30  ;;  %1460 = vadd.xlane.f32.xlu0 %v10729_v50 }
  0xbe   : > { %v1329_v29 = vpop.xlane.xlu1 %1328  ;;  %v10828_v31 = vpop.xlane.xlu0 %1324 }
  0xbf   : > { %v1679_v30 = vrot.slane %v1329_v29, %v10797_v14  ;;  %v1683_v50 = vrot.slane %v1329_v29, %v10800_v15  ;;  %v1687_v36 = vrot.slane %v1329_v29, %v10803_v18  ;;  %v1691_v38 = vrot.slane %v1329_v29, %v10806_v21 }
  0xc0   : > { %v1695_v39 = vrot.slane %v1329_v29, %v10809_v24  ;;  %v1699_v43 = vrot.slane %v1329_v29, %v10812_v22  ;;  %v1703_v44 = vrot.slane %v1329_v29, %v10815_v23  ;;  %v1707_v47 = vrot.slane %v1329_v29, %v10818_v25 }
  0xc1   : > { %1466 = vadd.xlane.f32.xlu1 %v10731_v51  ;;  %1464 = vadd.xlane.f32.xlu0 %v10734_v55  ;;  %v4782_v48 = vcombine.low %v1679_v30, %v1683_v50  ;;  %v4783_v49 = vcombine.low %v1687_v36, %v1691_v38  ;;  %v1615_v52 = vrot.slane %v10828_v31, %v10797_v14 }
  0xc2   : > { %v10851_v19 = vpop.xlane.xlu1 %1330  ;;  %v1327_v54 = vpop.xlane.xlu0 %1326  ;;  %v4784_v57 = vcombine.low %v1695_v39, %v1699_v43  ;;  %v4785_v60 = vcombine.low %v1703_v44, %v1707_v47  ;;  %v1619_v0 = vrot.slane %v10828_v31, %v10800_v15  ;;  %v1623_v3 = vrot.slane %v10828_v31, %v10803_v18 }
  0xc3   : > { %v1647_v51 = vrot.slane %v1327_v54, %v10797_v14  ;;  %v1651_v55 = vrot.slane %v1327_v54, %v10800_v15  ;;  %v1655_v4 = vrot.slane %v1327_v54, %v10803_v18  ;;  %v1659_v5 = vrot.slane %v1327_v54, %v10806_v21 }
  0xc4   : > { %v1663_v6 = vrot.slane %v1327_v54, %v10809_v24  ;;  %v1667_v8 = vrot.slane %v1327_v54, %v10812_v22  ;;  %v1671_v9 = vrot.slane %v1327_v54, %v10815_v23  ;;  %v1675_v10 = vrot.slane %v1327_v54, %v10818_v25 }
  0xc5   : > { %1470 = vadd.xlane.f32.xlu1 %v10736_v56  ;;  %1468 = vadd.xlane.f32.xlu0 %v10740_v61  ;;  %v4733_v11 = vcombine.low %v1647_v51, %v1651_v55  ;;  %v4734_v12 = vcombine.low %v1655_v4, %v1659_v5  ;;  %v4792_v29 = vrot.slane %v4782_v48, %v10837_v35 }
  0xc6   : > { %v10868_v30 = vpop.xlane.xlu1 %1334  ;;  %v4735_v50 = vcombine.low %v1663_v6, %v1667_v8  ;;  %v4736_v36 = vcombine.low %v1671_v9, %v1675_v10  ;;  %v4799_v38 = vrot.slane %v4783_v49, %v10837_v35  ;;  %v4806_v39 = vrot.slane %v4784_v57, %v10837_v35 }
  0xc7   : > { %v4743_v43 = vrot.slane %v4733_v11, %v10837_v35  ;;  %v4750_v44 = vrot.slane %v4734_v12, %v10837_v35  ;;  %v4813_v56 = vrot.slane %v4785_v60, %v10837_v35  ;;  %v1627_v61 = vrot.slane %v10828_v31, %v10806_v21 }
  0xc8   : > { %v4757_v47 = vrot.slane %v4735_v50, %v10837_v35  ;;  %v4764_v48 = vrot.slane %v4736_v36, %v10837_v35  ;;  %v4814_v54 = vcombine.low %v4792_v29, %v4799_v38  ;;  %v1631_v51 = vrot.slane %v10828_v31, %v10809_v24 }
  0xc9   : > { %1474 = vadd.xlane.f32.xlu1 %v10742_v62  ;;  %1472 = vadd.xlane.f32.xlu0 %v10744_v63  ;;  %v4765_v49 = vcombine.low %v4743_v43, %v4750_v44  ;;  %v4815_v57 = vcombine.low %v4806_v39, %v4813_v56  ;;  %v1635_v60 = vrot.slane %v10828_v31, %v10812_v22 }
  0xca   : > { %v10885_v55 = vpop.xlane.xlu1 %1338  ;;  %v4766_v4 = vcombine.low %v4757_v47, %v4764_v48  ;;  %v4822_v5 = vrot.slane %v4814_v54, %v10837_v35  ;;  %v1639_v6 = vrot.slane %v10828_v31, %v10815_v23  ;;  %v1643_v8 = vrot.slane %v10828_v31, %v10818_v25 }
  0xcb   : > { %v4773_v62 = vrot.slane %v4765_v49, %v10837_v35  ;;  %v4829_v63 = vrot.slane %v4815_v57, %v10837_v35  ;;  %v4684_v9 = vcombine.low %v1615_v52, %v1619_v0  ;;  %v4685_v10 = vcombine.low %v1623_v3, %v1627_v61 }
  0xcc   : > { %v4780_v11 = vrot.slane %v4766_v4, %v10837_v35  ;;  %v4686_v12 = vcombine.low %v1631_v51, %v1635_v60  ;;  %v4687_v29 = vcombine.low %v1639_v6, %v1643_v8  ;;  %v1711_v50 = vrot.slane %v10851_v19, %v10797_v14 }
  0xcd   : > { %1478 = vadd.xlane.f32.xlu1 %v10747_v1  ;;  %1476 = vadd.xlane.f32.xlu0 %v10749_v2  ;;  %v10899_v36 = vcombine.low %v4822_v5, %v4829_v63  ;;  %v4694_v31 = vrot.slane %v4684_v9, %v10837_v35  ;;  %v4701_v38 = vrot.slane %v4685_v10, %v10837_v35 }
  0xce   : > { %v10903_v39 = vcombine.low %v4773_v62, %v4780_v11  ;;  %v4708_v52 = vrot.slane %v4686_v12, %v10837_v35  ;;  %v4715_v0 = vrot.slane %v4687_v29, %v10837_v35  ;;  %v1715_v3 = vrot.slane %v10851_v19, %v10800_v15  ;;  %v1343_v43 = vpop.xlane.xlu1 %1342 }
  0xcf   : > { %v4716_v44 = vcombine.low %v4694_v31, %v4701_v38  ;;  %v1719_v1 = vrot.slane %v10851_v19, %v10803_v18  ;;  %v1723_v2 = vrot.slane %v10851_v19, %v10806_v21  ;;  %v1727_v56 = vrot.slane %v10851_v19, %v10809_v24 }
  0xd0   : > { %v4717_v61 = vcombine.low %v4708_v52, %v4715_v0  ;;  %v1731_v47 = vrot.slane %v10851_v19, %v10812_v22  ;;  %v1735_v48 = vrot.slane %v10851_v19, %v10815_v23  ;;  %v1739_v54 = vrot.slane %v10851_v19, %v10818_v25 }
  0xd1   : > { %1482 = vadd.xlane.f32.xlu1 %v10753_v7  ;;  %1480 = vadd.xlane.f32.xlu0 %v10757_v13  ;;  %v4724_v51 = vrot.slane %v4716_v44, %v10837_v35  ;;  %v4831_v49 = vcombine.low %v1711_v50, %v1715_v3  ;;  %v4832_v57 = vcombine.low %v1719_v1, %v1723_v2  ;;  %v1333_v50 = vpop.xlane.xlu0 %1332 }
  0xd2   : > { %v4731_v60 = vrot.slane %v4717_v61, %v10837_v35  ;;  %v4833_v4 = vcombine.low %v1727_v56, %v1731_v47  ;;  %v4834_v5 = vcombine.low %v1735_v48, %v1739_v54  ;;  %v1903_v6 = vrot.slane %v1343_v43, %v10797_v14  ;;  %v1347_v47 = vpop.xlane.xlu1 %1346 }
  0xd3   : > { %v4841_v8 = vrot.slane %v4831_v49, %v10837_v35  ;;  %v4848_v62 = vrot.slane %v4832_v57, %v10837_v35  ;;  %v1907_v19 = vrot.slane %v1343_v43, %v10800_v15  ;;  %v1911_v7 = vrot.slane %v1343_v43, %v10803_v18 }
  0xd4   : > { %v10930_v63 = vcombine.low %v4724_v51, %v4731_v60  ;;  %v4855_v13 = vrot.slane %v4833_v4, %v10837_v35  ;;  %v4862_v9 = vrot.slane %v4834_v5, %v10837_v35  ;;  %v1915_v10 = vrot.slane %v1343_v43, %v10806_v21 }
  0xd5   : > { %1486 = vadd.xlane.f32.xlu1 %v10764_v16  ;;  %1484 = vadd.xlane.f32.xlu0 %v10766_v17  ;;  %v4863_v11 = vcombine.low %v4841_v8, %v4848_v62  ;;  %v1919_v12 = vrot.slane %v1343_v43, %v10809_v24  ;;  %v1923_v29 = vrot.slane %v1343_v43, %v10812_v22 }
  0xd6   : > { %v4864_v31 = vcombine.low %v4855_v13, %v4862_v9  ;;  %v1927_v38 = vrot.slane %v1343_v43, %v10815_v23  ;;  %v1931_v52 = vrot.slane %v1343_v43, %v10818_v25  ;;  %v5125_v0 = vcombine.low %v1903_v6, %v1907_v19 }
  0xd7   : > { %v4871_v3 = vrot.slane %v4863_v11, %v10837_v35  ;;  %v5126_v44 = vcombine.low %v1911_v7, %v1915_v10  ;;  %v5127_v1 = vcombine.low %v1919_v12, %v1923_v29  ;;  %v1743_v16 = vrot.slane %v1333_v50, %v10797_v14 }
  0xd8   : > { %v4878_v17 = vrot.slane %v4864_v31, %v10837_v35  ;;  %v5128_v2 = vcombine.low %v1927_v38, %v1931_v52  ;;  %v5135_v56 = vrot.slane %v5125_v0, %v10837_v35  ;;  %v1747_v61 = vrot.slane %v1333_v50, %v10800_v15 }
  0xd9   : > { %1490 = vadd.xlane.f32.xlu1 %v10770_v40  ;;  %1488 = vadd.xlane.f32.xlu0 %v10772_v41  ;;  %v5142_v43 = vrot.slane %v5126_v44, %v10837_v35  ;;  %v5149_v48 = vrot.slane %v5127_v1, %v10837_v35  ;;  %v1751_v54 = vrot.slane %v1333_v50, %v10803_v18 }
  0xda   : > { %v10951_v51 = vcombine.low %v4871_v3, %v4878_v17  ;;  %v5156_v49 = vrot.slane %v5128_v2, %v10837_v35  ;;  %v1755_v57 = vrot.slane %v1333_v50, %v10806_v21  ;;  %v1759_v60 = vrot.slane %v1333_v50, %v10809_v24 }
  0xdb   : > { %v5157_v4 = vcombine.low %v5135_v56, %v5142_v43  ;;  %v1763_v5 = vrot.slane %v1333_v50, %v10812_v22  ;;  %v1767_v40 = vrot.slane %v1333_v50, %v10815_v23  ;;  %v1771_v41 = vrot.slane %v1333_v50, %v10818_v25 }
  0xdc   : > { %v5158_v6 = vcombine.low %v5149_v48, %v5156_v49  ;;  %v4880_v8 = vcombine.low %v1743_v16, %v1747_v61  ;;  %v4881_v62 = vcombine.low %v1751_v54, %v1755_v57  ;;  %v1967_v19 = vrot.slane %v1347_v47, %v10797_v14 }
  0xdd   : > { %1494 = vadd.xlane.f32.xlu1 %v10774_v42  ;;  %1492 = vadd.xlane.f32.xlu0 %v10778_v45  ;;  %v5165_v7 = vrot.slane %v5157_v4, %v10837_v35  ;;  %v4882_v13 = vcombine.low %v1759_v60, %v1763_v5  ;;  %v4883_v9 = vcombine.low %v1767_v40, %v1771_v41  ;;  %v1351_v60 = vpop.xlane.xlu1 %1350 }
  0xde   : > { %v5172_v10 = vrot.slane %v5158_v6, %v10837_v35  ;;  %v4890_v11 = vrot.slane %v4880_v8, %v10837_v35  ;;  %v4897_v12 = vrot.slane %v4881_v62, %v10837_v35  ;;  %v1971_v29 = vrot.slane %v1347_v47, %v10800_v15 }
  0xdf   : > { %v4904_v50 = vrot.slane %v4882_v13, %v10837_v35  ;;  %v4911_v31 = vrot.slane %v4883_v9, %v10837_v35  ;;  %v1975_v42 = vrot.slane %v1347_v47, %v10803_v18  ;;  %v1979_v45 = vrot.slane %v1347_v47, %v10806_v21 }
  0xe0   : > { %v10971_v38 = vcombine.low %v5165_v7, %v5172_v10  ;;  %v4912_v52 = vcombine.low %v4890_v11, %v4897_v12  ;;  %v1983_v0 = vrot.slane %v1347_v47, %v10809_v24  ;;  %v1987_v3 = vrot.slane %v1347_v47, %v10812_v22 }
  0xe1   : > { %1498 = vadd.xlane.f32.xlu1 %v10780_v46  ;;  %1496 = vadd.xlane.f32.xlu0 %v10784_v53  ;;  %v4913_v44 = vcombine.low %v4904_v50, %v4911_v31  ;;  %v1991_v1 = vrot.slane %v1347_v47, %v10815_v23  ;;  %v1995_v16 = vrot.slane %v1347_v47, %v10818_v25 }
  0xe2   : > { %v4920_v17 = vrot.slane %v4912_v52, %v10837_v35  ;;  %v5223_v2 = vcombine.low %v1967_v19, %v1971_v29  ;;  %v5224_v56 = vcombine.low %v1975_v42, %v1979_v45  ;;  %v5225_v61 = vcombine.low %v1983_v0, %v1987_v3 }
  0xe3   : > { %v4927_v43 = vrot.slane %v4913_v44, %v10837_v35  ;;  %v5226_v48 = vcombine.low %v1991_v1, %v1995_v16  ;;  %v1775_v54 = vrot.slane %v10868_v30, %v10797_v14  ;;  %v1779_v46 = vrot.slane %v10868_v30, %v10800_v15 }
  0xe4   : > { %v5233_v53 = vrot.slane %v5223_v2, %v10837_v35  ;;  %v5240_v49 = vrot.slane %v5224_v56, %v10837_v35  ;;  %v5247_v47 = vrot.slane %v5225_v61, %v10837_v35  ;;  %v1783_v57 = vrot.slane %v10868_v30, %v10803_v18 }
  0xe5   : > { %1502 = vadd.xlane.f32.xlu1 %v10786_v20  ;;  %1500 = vadd.xlane.f32.xlu0 %v10792_v59  ;;  %v10992_v4 = vcombine.low %v4920_v17, %v4927_v43  ;;  %v5254_v5 = vrot.slane %v5226_v48, %v10837_v35  ;;  %v1787_v40 = vrot.slane %v10868_v30, %v10806_v21  ;;  %v1337_v17 = vpop.xlane.xlu0 %1336 }
  0xe6   : > { %v5255_v41 = vcombine.low %v5233_v53, %v5240_v49  ;;  %v1791_v6 = vrot.slane %v10868_v30, %v10809_v24  ;;  %v1795_v8 = vrot.slane %v10868_v30, %v10812_v22  ;;  %v1799_v62 = vrot.slane %v10868_v30, %v10815_v23 }
  0xe7   : > { %v5256_v20 = vcombine.low %v5247_v47, %v5254_v5  ;;  %v1803_v59 = vrot.slane %v10868_v30, %v10818_v25  ;;  %v4929_v19 = vcombine.low %v1775_v54, %v1779_v46  ;;  %v4930_v7 = vcombine.low %v1783_v57, %v1787_v40  ;;  %v1355_v57 = vpop.xlane.xlu1 %1354 }
  0xe8   : > { %v5263_v13 = vrot.slane %v5255_v41, %v10837_v35  ;;  %v4931_v9 = vcombine.low %v1791_v6, %v1795_v8  ;;  %v2031_v10 = vrot.slane %v1351_v60, %v10797_v14  ;;  %v2035_v11 = vrot.slane %v1351_v60, %v10800_v15 }
  0xe9   : > { %1506 = vadd.xlane.f32.xlu1 %v10822_v26  ;;  %1504 = vadd.xlane.f32.xlu0 %v10824_v27  ;;  %v5270_v12 = vrot.slane %v5256_v20, %v10837_v35  ;;  %v4932_v29 = vcombine.low %v1799_v62, %v1803_v59  ;;  %v4939_v50 = vrot.slane %v4929_v19, %v10837_v35 }
  0xea   : > { %v4946_v30 = vrot.slane %v4930_v7, %v10837_v35  ;;  %v4953_v31 = vrot.slane %v4931_v9, %v10837_v35  ;;  %v2039_v42 = vrot.slane %v1351_v60, %v10803_v18  ;;  %v2043_v45 = vrot.slane %v1351_v60, %v10806_v21 }
  0xeb   : > { %v11016_v52 = vcombine.low %v5263_v13, %v5270_v12  ;;  %v4960_v0 = vrot.slane %v4932_v29, %v10837_v35  ;;  %v2047_v26 = vrot.slane %v1351_v60, %v10809_v24  ;;  %v2051_v27 = vrot.slane %v1351_v60, %v10812_v22 }
  0xec   : > { %v4961_v3 = vcombine.low %v4939_v50, %v4946_v30  ;;  %v2055_v44 = vrot.slane %v1351_v60, %v10815_v23  ;;  %v2059_v1 = vrot.slane %v1351_v60, %v10818_v25  ;;  %v5321_v16 = vcombine.low %v2031_v10, %v2035_v11 }
  0xed   : > { %1510 = vadd.xlane.f32.xlu1 %v10826_v28  ;;  %1508 = vadd.xlane.f32.xlu0 %v10830_v32  ;;  %v4962_v2 = vcombine.low %v4953_v31, %v4960_v0  ;;  %v5322_v56 = vcombine.low %v2039_v42, %v2043_v45  ;;  %v5323_v61 = vcombine.low %v2047_v26, %v2051_v27 }
  0xee   : > { %v4969_v43 = vrot.slane %v4961_v3, %v10837_v35  ;;  %v5324_v48 = vcombine.low %v2055_v44, %v2059_v1  ;;  %v5331_v54 = vrot.slane %v5321_v16, %v10837_v35  ;;  %v1807_v46 = vrot.slane %v1337_v17, %v10797_v14 }
  0xef   : > { %v4976_v53 = vrot.slane %v4962_v2, %v10837_v35  ;;  %v5338_v49 = vrot.slane %v5322_v56, %v10837_v35  ;;  %v5345_v47 = vrot.slane %v5323_v61, %v10837_v35  ;;  %v1811_v28 = vrot.slane %v1337_v17, %v10800_v15 }
  0xf0   : > { %v5352_v32 = vrot.slane %v5324_v48, %v10837_v35  ;;  %v1815_v60 = vrot.slane %v1337_v17, %v10803_v18  ;;  %v1819_v5 = vrot.slane %v1337_v17, %v10806_v21  ;;  %v1823_v40 = vrot.slane %v1337_v17, %v10809_v24 }
  0xf1   : > { %1514 = vadd.xlane.f32.xlu1 %v10832_v33  ;;  %1512 = vadd.xlane.f32.xlu0 %v10834_v34  ;;  %v11038_v41 = vcombine.low %v4969_v43, %v4976_v53  ;;  %v5353_v6 = vcombine.low %v5331_v54, %v5338_v49  ;;  %v1827_v8 = vrot.slane %v1337_v17, %v10812_v22 }
  0xf2   : > { %v5354_v62 = vcombine.low %v5345_v47, %v5352_v32  ;;  %v1831_v20 = vrot.slane %v1337_v17, %v10815_v23  ;;  %v1835_v59 = vrot.slane %v1337_v17, %v10818_v25  ;;  %v4978_v19 = vcombine.low %v1807_v46, %v1811_v28  ;;  %v1359_v28 = vpop.xlane.xlu1 %1358 }
  0xf3   : > { %v5361_v7 = vrot.slane %v5353_v6, %v10837_v35  ;;  %v4979_v13 = vcombine.low %v1815_v60, %v1819_v5  ;;  %v4980_v9 = vcombine.low %v1823_v40, %v1827_v8  ;;  %v2095_v10 = vrot.slane %v1355_v57, %v10797_v14 }
  0xf4   : > { %v5368_v33 = vrot.slane %v5354_v62, %v10837_v35  ;;  %v4981_v34 = vcombine.low %v1831_v20, %v1835_v59  ;;  %v4988_v11 = vrot.slane %v4978_v19, %v10837_v35  ;;  %v2099_v12 = vrot.slane %v1355_v57, %v10800_v15 }
  0xf5   : > { %v4995_v29 = vrot.slane %v4979_v13, %v10837_v35  ;;  %v5002_v50 = vrot.slane %v4980_v9, %v10837_v35  ;;  %v2103_v30 = vrot.slane %v1355_v57, %v10803_v18  ;;  %v2107_v31 = vrot.slane %v1355_v57, %v10806_v21 }
  0xf6   : > { %v11052_v42 = vcombine.low %v5361_v7, %v5368_v33  ;;  %v5009_v45 = vrot.slane %v4981_v34, %v10837_v35  ;;  %v2111_v0 = vrot.slane %v1355_v57, %v10809_v24  ;;  %v2115_v26 = vrot.slane %v1355_v57, %v10812_v22 }
  0xf7   : > { %v5010_v27 = vcombine.low %v4988_v11, %v4995_v29  ;;  %v2119_v3 = vrot.slane %v1355_v57, %v10815_v23  ;;  %v2123_v44 = vrot.slane %v1355_v57, %v10818_v25  ;;  %v5419_v1 = vcombine.low %v2095_v10, %v2099_v12 }
  0xf8   : > { %v5011_v16 = vcombine.low %v5002_v50, %v5009_v45  ;;  %v5420_v17 = vcombine.low %v2103_v30, %v2107_v31  ;;  %v5421_v2 = vcombine.low %v2111_v0, %v2115_v26  ;;  %v1839_v56 = vrot.slane %v10885_v55, %v10797_v14 }
  0xf9   : > { %v5018_v61 = vrot.slane %v5010_v27, %v10837_v35  ;;  %v5422_v43 = vcombine.low %v2119_v3, %v2123_v44  ;;  %v5429_v48 = vrot.slane %v5419_v1, %v10837_v35  ;;  %v1843_v54 = vrot.slane %v10885_v55, %v10800_v15  ;;  %v1341_v3 = vpop.xlane.xlu0 %1340 }
  0xfa   : > { %v5025_v46 = vrot.slane %v5011_v16, %v10837_v35  ;;  %v5436_v53 = vrot.slane %v5420_v17, %v10837_v35  ;;  %v5443_v49 = vrot.slane %v5421_v2, %v10837_v35  ;;  %v1847_v47 = vrot.slane %v10885_v55, %v10803_v18 }
  0xfb   : > { %v5450_v57 = vrot.slane %v5422_v43, %v10837_v35  ;;  %v1851_v32 = vrot.slane %v10885_v55, %v10806_v21  ;;  %v1855_v60 = vrot.slane %v10885_v55, %v10809_v24  ;;  %v1859_v5 = vrot.slane %v10885_v55, %v10812_v22 }
  0xfc   : > { %v11077_v40 = vcombine.low %v5018_v61, %v5025_v46  ;;  %v5451_v6 = vcombine.low %v5429_v48, %v5436_v53  ;;  %v1863_v8 = vrot.slane %v10885_v55, %v10815_v23  ;;  %v1867_v62 = vrot.slane %v10885_v55, %v10818_v25 }
  0xfd   : > { %v5452_v20 = vcombine.low %v5443_v49, %v5450_v57  ;;  %v5027_v59 = vcombine.low %v1839_v56, %v1843_v54  ;;  %v5028_v19 = vcombine.low %v1847_v47, %v1851_v32  ;;  %v5029_v7 = vcombine.low %v1855_v60, %v1859_v5 }
  0xfe   : > { %v5459_v13 = vrot.slane %v5451_v6, %v10837_v35  ;;  %v5030_v9 = vcombine.low %v1863_v8, %v1867_v62  ;;  %v2159_v10 = vrot.slane %v1359_v28, %v10797_v14  ;;  %v2163_v33 = vrot.slane %v1359_v28, %v10800_v15 }
  0xff   : > { %v5466_v34 = vrot.slane %v5452_v20, %v10837_v35  ;;  %v5037_v11 = vrot.slane %v5027_v59, %v10837_v35  ;;  %v5044_v12 = vrot.slane %v5028_v19, %v10837_v35  ;;  %v5051_v29 = vrot.slane %v5029_v7, %v10837_v35 }
 0x100   : > { %v5058_v55 = vrot.slane %v5030_v9, %v10837_v35  ;;  %v2167_v50 = vrot.slane %v1359_v28, %v10803_v18  ;;  %v2171_v30 = vrot.slane %v1359_v28, %v10806_v21  ;;  %v2175_v31 = vrot.slane %v1359_v28, %v10809_v24 }
 0x101   : > { %v11094_v45 = vcombine.low %v5459_v13, %v5466_v34  ;;  %v5059_v0 = vcombine.low %v5037_v11, %v5044_v12  ;;  %v2179_v26 = vrot.slane %v1359_v28, %v10812_v22  ;;  %v2183_v27 = vrot.slane %v1359_v28, %v10815_v23 }
 0x102   : > { %9392 = vperm.xlu1 %10414, %v10903_v39   ;;  %v5060_v44 = vcombine.low %v5051_v29, %v5058_v55  ;;  %v2187_v1 = vrot.slane %v1359_v28, %v10818_v25  ;;  %v5517_v16 = vcombine.low %v2159_v10, %v2163_v33  ;;  %v5518_v17 = vcombine.low %v2167_v50, %v2171_v30  ;;  %v1363_v39 = vpop.xlane.xlu1 %1362 }
 0x103   : > { %v5067_v2 = vrot.slane %v5059_v0, %v10837_v35  ;;  %v5519_v56 = vcombine.low %v2175_v31, %v2179_v26  ;;  %v1871_v61 = vrot.slane %v1341_v3, %v10797_v14  ;;  %v1875_v43 = vrot.slane %v1341_v3, %v10800_v15 }
 0x104   : > { %v5074_v48 = vrot.slane %v5060_v44, %v10837_v35  ;;  %v5520_v54 = vcombine.low %v2183_v27, %v2187_v1  ;;  %v5527_v46 = vrot.slane %v5517_v16, %v10837_v35  ;;  %v5534_v53 = vrot.slane %v5518_v17, %v10837_v35 }
 0x105   : > { %v5541_v49 = vrot.slane %v5519_v56, %v10837_v35  ;;  %v1879_v47 = vrot.slane %v1341_v3, %v10803_v18  ;;  %v1883_v28 = vrot.slane %v1341_v3, %v10806_v21  ;;  %v1887_v57 = vrot.slane %v1341_v3, %v10809_v24 }
 0x106   : > { %9395 = vperm.xlu1 %10414, %v10899_v36   ;;  %v11111_v32 = vcombine.low %v5067_v2, %v5074_v48  ;;  %v5548_v60 = vrot.slane %v5520_v54, %v10837_v35  ;;  %v5549_v5 = vcombine.low %v5527_v46, %v5534_v53  ;;  %v1891_v6 = vrot.slane %v1341_v3, %v10812_v22  ;;  %v1367_v53 = vpop.xlane.xlu1 %1366 }
 0x107   : > { %9389 = vperm.xlu0 %10413, %v10930_v63   ;;  %v1895_v8 = vrot.slane %v1341_v3, %v10815_v23  ;;  %v1899_v62 = vrot.slane %v1341_v3, %v10818_v25  ;;  %v5076_v20 = vcombine.low %v1871_v61, %v1875_v43  ;;  %v5077_v59 = vcombine.low %v1879_v47, %v1883_v28  ;;  %v1345_v3 = vpop.xlane.xlu0 %1344 }
 0x108   : > { %v5550_v19 = vcombine.low %v5541_v49, %v5548_v60  ;;  %v5557_v7 = vrot.slane %v5549_v5, %v10837_v35  ;;  %v5078_v13 = vcombine.low %v1887_v57, %v1891_v6  ;;  %v2223_v36 = vrot.slane %v1363_v39, %v10797_v14 }
 0x109   : > { %v5079_v9 = vcombine.low %v1895_v8, %v1899_v62  ;;  %v5086_v10 = vrot.slane %v5076_v20, %v10837_v35  ;;  %v5093_v33 = vrot.slane %v5077_v59, %v10837_v35  ;;  %v2227_v34 = vrot.slane %v1363_v39, %v10800_v15 }
 0x10a   : > { %9398 = vperm.xlu1 %10414, %v10951_v51   ;;  %v5564_v63 = vrot.slane %v5550_v19, %v10837_v35  ;;  %v5100_v11 = vrot.slane %v5078_v13, %v10837_v35  ;;  %v2231_v12 = vrot.slane %v1363_v39, %v10803_v18  ;;  %v2235_v29 = vrot.slane %v1363_v39, %v10806_v21 }
 0x10b   : > { %9416 = vperm.xlu0 %10413, %v10971_v38   ;;  %v5107_v55 = vrot.slane %v5079_v9, %v10837_v35  ;;  %v5108_v50 = vcombine.low %v5086_v10, %v5093_v33  ;;  %v2239_v30 = vrot.slane %v1363_v39, %v10809_v24  ;;  %v2243_v31 = vrot.slane %v1363_v39, %v10812_v22 }
 0x10c   : > { %v11132_v0 = vcombine.low %v5557_v7, %v5564_v63  ;;  %v2247_v51 = vrot.slane %v1363_v39, %v10815_v23  ;;  %v2251_v26 = vrot.slane %v1363_v39, %v10818_v25  ;;  %v5615_v27 = vcombine.low %v2223_v36, %v2227_v34 }
 0x10d   : > { %v5109_v44 = vcombine.low %v5100_v11, %v5107_v55  ;;  %v5116_v1 = vrot.slane %v5108_v50, %v10837_v35  ;;  %v5616_v16 = vcombine.low %v2231_v12, %v2235_v29  ;;  %v5617_v38 = vcombine.low %v2239_v30, %v2243_v31  ;;  %v1349_v55 = vpop.xlane.xlu0 %1348 }
 0x10e   : > { %9401 = vperm.xlu1 %10414, %v10992_v4   ;;  %v5618_v17 = vcombine.low %v2247_v51, %v2251_v26  ;;  %v5625_v2 = vrot.slane %v5615_v27, %v10837_v35  ;;  %v1935_v56 = vrot.slane %v1345_v3, %v10797_v14  ;;  %v1939_v61 = vrot.slane %v1345_v3, %v10800_v15 }
 0x10f   : > { %9422 = vperm.xlu0 %10413, %v11016_v52   ;;  %v5123_v43 = vrot.slane %v5109_v44, %v10837_v35  ;;  %v5632_v48 = vrot.slane %v5616_v16, %v10837_v35  ;;  %v5639_v54 = vrot.slane %v5617_v38, %v10837_v35  ;;  %v1943_v46 = vrot.slane %v1345_v3, %v10803_v18 }
 0x110   : > { %v5646_v4 = vrot.slane %v5618_v17, %v10837_v35  ;;  %v1947_v39 = vrot.slane %v1345_v3, %v10806_v21  ;;  %v1951_v49 = vrot.slane %v1345_v3, %v10809_v24  ;;  %v1955_v47 = vrot.slane %v1345_v3, %v10812_v22 }
 0x111   : > { %v5124_v28 = vcombine.low %v5116_v1, %v5123_v43  ;;  %v5647_v57 = vcombine.low %v5625_v2, %v5632_v48  ;;  %v1959_v52 = vrot.slane %v1345_v3, %v10815_v23  ;;  %v1963_v60 = vrot.slane %v1345_v3, %v10818_v25 }
 0x112   : > { %9404 = vperm.xlu1 %10414, %v11038_v41   ;;  %v5648_v5 = vcombine.low %v5639_v54, %v5646_v4  ;;  %v5174_v6 = vcombine.low %v1935_v56, %v1939_v61  ;;  %v5175_v8 = vcombine.low %v1943_v46, %v1947_v39  ;;  %v5176_v62 = vcombine.low %v1951_v49, %v1955_v47 }
 0x113   : > { %9428 = vperm.xlu0 %10413, %v11052_v42   ;;  %v5655_v20 = vrot.slane %v5647_v57, %v10837_v35  ;;  %v5177_v59 = vcombine.low %v1959_v52, %v1963_v60  ;;  %v2287_v19 = vrot.slane %v1367_v53, %v10797_v14  ;;  %v2291_v7 = vrot.slane %v1367_v53, %v10800_v15 }
 0x114   : > { %v5662_v13 = vrot.slane %v5648_v5, %v10837_v35  ;;  %v5184_v36 = vrot.slane %v5174_v6, %v10837_v35  ;;  %v5191_v9 = vrot.slane %v5175_v8, %v10837_v35  ;;  %v5198_v41 = vrot.slane %v5176_v62, %v10837_v35 }
 0x115   : > { %v5205_v10 = vrot.slane %v5177_v59, %v10837_v35  ;;  %v2295_v33 = vrot.slane %v1367_v53, %v10803_v18  ;;  %v2299_v42 = vrot.slane %v1367_v53, %v10806_v21  ;;  %v2303_v34 = vrot.slane %v1367_v53, %v10809_v24 }
 0x116   : > { %9407 = vperm.xlu1 %10414, %v11077_v40   ;;  %v5663_v63 = vcombine.low %v5655_v20, %v5662_v13  ;;  %v5206_v11 = vcombine.low %v5184_v36, %v5191_v9  ;;  %v2307_v12 = vrot.slane %v1367_v53, %v10812_v22  ;;  %v2311_v29 = vrot.slane %v1367_v53, %v10815_v23 }
 0x117   : > { %9434 = vperm.xlu0 %10413, %v11094_v45   ;;  %v5207_v50 = vcombine.low %v5198_v41, %v5205_v10  ;;  %v2315_v30 = vrot.slane %v1367_v53, %v10818_v25  ;;  %v5713_v31 = vcombine.low %v2287_v19, %v2291_v7  ;;  %v5714_v51 = vcombine.low %v2295_v33, %v2299_v42  ;;  %v1371_v45 = vpop.xlane.xlu1 %1370  ;;  %v1353_v33 = vpop.xlane.xlu0 %1352 }
 0x118   : > { %v5214_v26 = vrot.slane %v5206_v11, %v10837_v35  ;;  %v5715_v27 = vcombine.low %v2303_v34, %v2307_v12  ;;  %v1999_v3 = vrot.slane %v1349_v55, %v10797_v14  ;;  %v2003_v40 = vrot.slane %v1349_v55, %v10800_v15 }
 0x119   : > { %v5221_v44 = vrot.slane %v5207_v50, %v10837_v35  ;;  %v5716_v1 = vcombine.low %v2311_v29, %v2315_v30  ;;  %v5723_v16 = vrot.slane %v5713_v31, %v10837_v35  ;;  %v5730_v38 = vrot.slane %v5714_v51, %v10837_v35 }
 0x11a   : > { %9410 = vperm.xlu1 %10414, %v11111_v32   ;;  %v5737_v17 = vrot.slane %v5715_v27, %v10837_v35  ;;  %v2007_v2 = vrot.slane %v1349_v55, %v10803_v18  ;;  %v2011_v56 = vrot.slane %v1349_v55, %v10806_v21  ;;  %v2015_v61 = vrot.slane %v1349_v55, %v10809_v24 }
 0x11b   : > { %9440 = vperm.xlu0 %10413, %v11132_v0   ;;  %v5222_v43 = vcombine.low %v5214_v26, %v5221_v44  ;;  %v5744_v48 = vrot.slane %v5716_v1, %v10837_v35  ;;  %v5745_v54 = vcombine.low %v5723_v16, %v5730_v38  ;;  %v2019_v46 = vrot.slane %v1349_v55, %v10812_v22  ;;  %v1375_v27 = vpop.xlane.xlu1 %1374 }
 0x11c   : > { %v2023_v53 = vrot.slane %v1349_v55, %v10815_v23  ;;  %v2027_v32 = vrot.slane %v1349_v55, %v10818_v25  ;;  %v5272_v4 = vcombine.low %v1999_v3, %v2003_v40  ;;  %v5273_v39 = vcombine.low %v2007_v2, %v2011_v56 }
 0x11d   : > { %v5746_v49 = vcombine.low %v5737_v17, %v5744_v48  ;;  %v5753_v47 = vrot.slane %v5745_v54, %v10837_v35  ;;  %v5274_v57 = vcombine.low %v2015_v61, %v2019_v46  ;;  %v2351_v52 = vrot.slane %v1371_v45, %v10797_v14 }
 0x11e   : > { %9413 = vperm.xlu1 %10414, %v5124_v28   ;;  %v5275_v0 = vcombine.low %v2023_v53, %v2027_v32  ;;  %v5282_v60 = vrot.slane %v5272_v4, %v10837_v35  ;;  %v5289_v5 = vrot.slane %v5273_v39, %v10837_v35  ;;  %v2355_v6 = vrot.slane %v1371_v45, %v10800_v15 }
 0x11f   : > { %9446 = vperm.xlu0 %10413, %v5663_v63   ;;  %v5760_v8 = vrot.slane %v5746_v49, %v10837_v35  ;;  %v5296_v62 = vrot.slane %v5274_v57, %v10837_v35  ;;  %v2359_v20 = vrot.slane %v1371_v45, %v10803_v18  ;;  %v2363_v59 = vrot.slane %v1371_v45, %v10806_v21 }
 0x120   : > { %v5303_v19 = vrot.slane %v5275_v0, %v10837_v35  ;;  %v5304_v7 = vcombine.low %v5282_v60, %v5289_v5  ;;  %v2367_v28 = vrot.slane %v1371_v45, %v10809_v24  ;;  %v2371_v13 = vrot.slane %v1371_v45, %v10812_v22 }
 0x121   : > { %v5761_v36 = vcombine.low %v5753_v47, %v5760_v8  ;;  %v2375_v9 = vrot.slane %v1371_v45, %v10815_v23  ;;  %v2379_v41 = vrot.slane %v1371_v45, %v10818_v25  ;;  %v5811_v10 = vcombine.low %v2351_v52, %v2355_v6 }
 0x122   : > { %9419 = vperm.xlu1 %10414, %v5222_v43   ;;  %v5305_v42 = vcombine.low %v5296_v62, %v5303_v19  ;;  %v5312_v34 = vrot.slane %v5304_v7, %v10837_v35  ;;  %v5812_v63 = vcombine.low %v2359_v20, %v2363_v59  ;;  %v5813_v11 = vcombine.low %v2367_v28, %v2371_v13  ;;  %v1357_v62 = vpop.xlane.xlu0 %1356 }
 0x123   : > { %9452 = vperm.xlu0 %10413, %v5761_v36   ;;  %v5814_v12 = vcombine.low %v2375_v9, %v2379_v41  ;;  %v5821_v29 = vrot.slane %v5811_v10, %v10837_v35  ;;  %v2063_v55 = vrot.slane %v1353_v33, %v10797_v14  ;;  %v2067_v50 = vrot.slane %v1353_v33, %v10800_v15 }
 0x124   : > { %v5319_v30 = vrot.slane %v5305_v42, %v10837_v35  ;;  %v5828_v31 = vrot.slane %v5812_v63, %v10837_v35  ;;  %v5835_v51 = vrot.slane %v5813_v11, %v10837_v35  ;;  %v2071_v26 = vrot.slane %v1353_v33, %v10803_v18 }
 0x125   : > { %v5842_v3 = vrot.slane %v5814_v12, %v10837_v35  ;;  %v2075_v40 = vrot.slane %v1353_v33, %v10806_v21  ;;  %v2079_v44 = vrot.slane %v1353_v33, %v10809_v24  ;;  %v2083_v1 = vrot.slane %v1353_v33, %v10812_v22 }
 0x126   : > { %v5320_v16 = vcombine.low %v5312_v34, %v5319_v30  ;;  %v5843_v38 = vcombine.low %v5821_v29, %v5828_v31  ;;  %v2087_v45 = vrot.slane %v1353_v33, %v10815_v23  ;;  %v2091_v17 = vrot.slane %v1353_v33, %v10818_v25  ;;  %v1379_v34 = vpop.xlane.xlu1 %1378 }
 0x127   : > { %v5844_v2 = vcombine.low %v5835_v51, %v5842_v3  ;;  %v5370_v56 = vcombine.low %v2063_v55, %v2067_v50  ;;  %v5371_v61 = vcombine.low %v2071_v26, %v2075_v40  ;;  %v5372_v43 = vcombine.low %v2079_v44, %v2083_v1 }
 0x128   : > { %9425 = vperm.xlu1 %10414, %v5320_v16   ;;  %v5851_v48 = vrot.slane %v5843_v38, %v10837_v35  ;;  %v5373_v54 = vcombine.low %v2087_v45, %v2091_v17  ;;  %v2415_v46 = vrot.slane %v1375_v27, %v10797_v14  ;;  %v2419_v53 = vrot.slane %v1375_v27, %v10800_v15 }
 0x129   : > { %v5858_v32 = vrot.slane %v5844_v2, %v10837_v35  ;;  %v5380_v4 = vrot.slane %v5370_v56, %v10837_v35  ;;  %v5387_v39 = vrot.slane %v5371_v61, %v10837_v35  ;;  %v5394_v49 = vrot.slane %v5372_v43, %v10837_v35 }
 0x12a   : > { %v5401_v47 = vrot.slane %v5373_v54, %v10837_v35  ;;  %v2423_v57 = vrot.slane %v1375_v27, %v10803_v18  ;;  %v2427_v52 = vrot.slane %v1375_v27, %v10806_v21  ;;  %v2431_v0 = vrot.slane %v1375_v27, %v10809_v24 }
 0x12b   : > { %v5859_v60 = vcombine.low %v5851_v48, %v5858_v32  ;;  %v5402_v5 = vcombine.low %v5380_v4, %v5387_v39  ;;  %v2435_v6 = vrot.slane %v1375_v27, %v10812_v22  ;;  %v2439_v8 = vrot.slane %v1375_v27, %v10815_v23 }
 0x12c   : > { %v5403_v20 = vcombine.low %v5394_v49, %v5401_v47  ;;  %v2443_v59 = vrot.slane %v1375_v27, %v10818_v25  ;;  %v5909_v19 = vcombine.low %v2415_v46, %v2419_v53  ;;  %v5910_v7 = vcombine.low %v2423_v57, %v2427_v52  ;;  %v1361_v57 = vpop.xlane.xlu0 %1360 }
 0x12d   : > { %9458 = vperm.xlu0 %10413, %v5859_v60   ;;  %v5410_v28 = vrot.slane %v5402_v5, %v10837_v35  ;;  %v5911_v13 = vcombine.low %v2431_v0, %v2435_v6  ;;  %v2127_v36 = vrot.slane %v1357_v62, %v10797_v14  ;;  %v2131_v9 = vrot.slane %v1357_v62, %v10800_v15 }
 0x12e   : > { %v5417_v41 = vrot.slane %v5403_v20, %v10837_v35  ;;  %v5912_v10 = vcombine.low %v2439_v8, %v2443_v59  ;;  %v5919_v33 = vrot.slane %v5909_v19, %v10837_v35  ;;  %v5926_v42 = vrot.slane %v5910_v7, %v10837_v35 }
 0x12f   : > { %v5933_v63 = vrot.slane %v5911_v13, %v10837_v35  ;;  %v2135_v11 = vrot.slane %v1357_v62, %v10803_v18  ;;  %v2139_v12 = vrot.slane %v1357_v62, %v10806_v21  ;;  %v2143_v29 = vrot.slane %v1357_v62, %v10809_v24  ;;  %v1383_v13 = vpop.xlane.xlu1 %1382 }
 0x130   : > { %v5418_v55 = vcombine.low %v5410_v28, %v5417_v41  ;;  %v5940_v50 = vrot.slane %v5912_v10, %v10837_v35  ;;  %v5941_v30 = vcombine.low %v5919_v33, %v5926_v42  ;;  %v2147_v31 = vrot.slane %v1357_v62, %v10812_v22 }
 0x131   : > { %v2151_v51 = vrot.slane %v1357_v62, %v10815_v23  ;;  %v2155_v26 = vrot.slane %v1357_v62, %v10818_v25  ;;  %v5468_v27 = vcombine.low %v2127_v36, %v2131_v9  ;;  %v5469_v3 = vcombine.low %v2135_v11, %v2139_v12 }
 0x132   : > { %9431 = vperm.xlu1 %10414, %v5418_v55   ;;  %v5942_v40 = vcombine.low %v5933_v63, %v5940_v50  ;;  %v5949_v44 = vrot.slane %v5941_v30, %v10837_v35  ;;  %v5470_v1 = vcombine.low %v2143_v29, %v2147_v31  ;;  %v2479_v16 = vrot.slane %v1379_v34, %v10797_v14 }
 0x133   : > { %v5471_v38 = vcombine.low %v2151_v51, %v2155_v26  ;;  %v5478_v45 = vrot.slane %v5468_v27, %v10837_v35  ;;  %v5485_v17 = vrot.slane %v5469_v3, %v10837_v35  ;;  %v2483_v2 = vrot.slane %v1379_v34, %v10800_v15 }
 0x134   : > { %v5956_v56 = vrot.slane %v5942_v40, %v10837_v35  ;;  %v5492_v61 = vrot.slane %v5470_v1, %v10837_v35  ;;  %v2487_v43 = vrot.slane %v1379_v34, %v10803_v18  ;;  %v2491_v48 = vrot.slane %v1379_v34, %v10806_v21 }
 0x135   : > { %v5499_v54 = vrot.slane %v5471_v38, %v10837_v35  ;;  %v5500_v46 = vcombine.low %v5478_v45, %v5485_v17  ;;  %v2495_v53 = vrot.slane %v1379_v34, %v10809_v24  ;;  %v2499_v32 = vrot.slane %v1379_v34, %v10812_v22 }
 0x136   : > { %v5957_v4 = vcombine.low %v5949_v44, %v5956_v56  ;;  %v2503_v39 = vrot.slane %v1379_v34, %v10815_v23  ;;  %v2507_v49 = vrot.slane %v1379_v34, %v10818_v25  ;;  %v6007_v47 = vcombine.low %v2479_v16, %v2483_v2 }
 0x137   : > { %v5501_v52 = vcombine.low %v5492_v61, %v5499_v54  ;;  %v5508_v0 = vrot.slane %v5500_v46, %v10837_v35  ;;  %v6008_v60 = vcombine.low %v2487_v43, %v2491_v48  ;;  %v6009_v5 = vcombine.low %v2495_v53, %v2499_v32  ;;  %v1365_v61 = vpop.xlane.xlu0 %1364 }
 0x138   : > { %9464 = vperm.xlu0 %10413, %v5957_v4   ;;  %v6010_v6 = vcombine.low %v2503_v39, %v2507_v49  ;;  %v6017_v8 = vrot.slane %v6007_v47, %v10837_v35  ;;  %v2191_v62 = vrot.slane %v1361_v57, %v10797_v14  ;;  %v2195_v20 = vrot.slane %v1361_v57, %v10800_v15 }
 0x139   : > { %v5515_v59 = vrot.slane %v5501_v52, %v10837_v35  ;;  %v6024_v19 = vrot.slane %v6008_v60, %v10837_v35  ;;  %v6031_v7 = vrot.slane %v6009_v5, %v10837_v35  ;;  %v2199_v28 = vrot.slane %v1361_v57, %v10803_v18 }
 0x13a   : > { %v6038_v36 = vrot.slane %v6010_v6, %v10837_v35  ;;  %v2203_v9 = vrot.slane %v1361_v57, %v10806_v21  ;;  %v2207_v41 = vrot.slane %v1361_v57, %v10809_v24  ;;  %v2211_v10 = vrot.slane %v1361_v57, %v10812_v22 }
 0x13b   : > { %v5516_v33 = vcombine.low %v5508_v0, %v5515_v59  ;;  %v6039_v42 = vcombine.low %v6017_v8, %v6024_v19  ;;  %v2215_v34 = vrot.slane %v1361_v57, %v10815_v23  ;;  %v2219_v63 = vrot.slane %v1361_v57, %v10818_v25  ;;  %v1387_v0 = vpop.xlane.xlu1 %1386 }
 0x13c   : > { %v6040_v11 = vcombine.low %v6031_v7, %v6038_v36  ;;  %v5566_v12 = vcombine.low %v2191_v62, %v2195_v20  ;;  %v5567_v29 = vcombine.low %v2199_v28, %v2203_v9  ;;  %v5568_v55 = vcombine.low %v2207_v41, %v2211_v10 }
 0x13d   : > { %9437 = vperm.xlu1 %10414, %v5516_v33   ;;  %v6047_v50 = vrot.slane %v6039_v42, %v10837_v35  ;;  %v5569_v30 = vcombine.low %v2215_v34, %v2219_v63  ;;  %v2543_v31 = vrot.slane %v1383_v13, %v10797_v14  ;;  %v2547_v51 = vrot.slane %v1383_v13, %v10800_v15 }
 0x13e   : > { %v6054_v26 = vrot.slane %v6040_v11, %v10837_v35  ;;  %v5576_v27 = vrot.slane %v5566_v12, %v10837_v35  ;;  %v5583_v3 = vrot.slane %v5567_v29, %v10837_v35  ;;  %v5590_v40 = vrot.slane %v5568_v55, %v10837_v35 }
 0x13f   : > { %v5597_v44 = vrot.slane %v5569_v30, %v10837_v35  ;;  %v2551_v1 = vrot.slane %v1383_v13, %v10803_v18  ;;  %v2555_v16 = vrot.slane %v1383_v13, %v10806_v21  ;;  %v2559_v38 = vrot.slane %v1383_v13, %v10809_v24 }
 0x140   : > { %v6055_v45 = vcombine.low %v6047_v50, %v6054_v26  ;;  %v5598_v17 = vcombine.low %v5576_v27, %v5583_v3  ;;  %v2563_v2 = vrot.slane %v1383_v13, %v10812_v22  ;;  %v2567_v56 = vrot.slane %v1383_v13, %v10815_v23 }
 0x141   : > { %v5599_v43 = vcombine.low %v5590_v40, %v5597_v44  ;;  %v2571_v48 = vrot.slane %v1383_v13, %v10818_v25  ;;  %v6105_v54 = vcombine.low %v2543_v31, %v2547_v51  ;;  %v6106_v46 = vcombine.low %v2551_v1, %v2555_v16  ;;  %v1369_v1 = vpop.xlane.xlu0 %1368 }
 0x142   : > { %9470 = vperm.xlu0 %10413, %v6055_v45   ;;  %v5606_v53 = vrot.slane %v5598_v17, %v10837_v35  ;;  %v6107_v32 = vcombine.low %v2559_v38, %v2563_v2  ;;  %v2255_v4 = vrot.slane %v1365_v61, %v10797_v14  ;;  %v2259_v39 = vrot.slane %v1365_v61, %v10800_v15 }
 0x143   : > { %v5613_v49 = vrot.slane %v5599_v43, %v10837_v35  ;;  %v6108_v47 = vcombine.low %v2567_v56, %v2571_v48  ;;  %v6115_v57 = vrot.slane %v6105_v54, %v10837_v35  ;;  %v6122_v52 = vrot.slane %v6106_v46, %v10837_v35 }
 0x144   : > { %v6129_v60 = vrot.slane %v6107_v32, %v10837_v35  ;;  %v2263_v5 = vrot.slane %v1365_v61, %v10803_v18  ;;  %v2267_v6 = vrot.slane %v1365_v61, %v10806_v21  ;;  %v2271_v8 = vrot.slane %v1365_v61, %v10809_v24  ;;  %v1391_v32 = vpop.xlane.xlu1 %1390 }
 0x145   : > { %v5614_v62 = vcombine.low %v5606_v53, %v5613_v49  ;;  %v6136_v20 = vrot.slane %v6108_v47, %v10837_v35  ;;  %v6137_v59 = vcombine.low %v6115_v57, %v6122_v52  ;;  %v2275_v19 = vrot.slane %v1365_v61, %v10812_v22 }
 0x146   : > { %v2279_v7 = vrot.slane %v1365_v61, %v10815_v23  ;;  %v2283_v28 = vrot.slane %v1365_v61, %v10818_v25  ;;  %v5664_v13 = vcombine.low %v2255_v4, %v2259_v39  ;;  %v5665_v36 = vcombine.low %v2263_v5, %v2267_v6 }
 0x147   : > { %9443 = vperm.xlu1 %10414, %v5614_v62   ;;  %v6138_v9 = vcombine.low %v6129_v60, %v6136_v20  ;;  %v6145_v41 = vrot.slane %v6137_v59, %v10837_v35  ;;  %v5666_v10 = vcombine.low %v2271_v8, %v2275_v19  ;;  %v2607_v33 = vrot.slane %v1387_v0, %v10797_v14 }
 0x148   : > { %v5667_v42 = vcombine.low %v2279_v7, %v2283_v28  ;;  %v5674_v34 = vrot.slane %v5664_v13, %v10837_v35  ;;  %v5681_v63 = vrot.slane %v5665_v36, %v10837_v35  ;;  %v2611_v11 = vrot.slane %v1387_v0, %v10800_v15 }
 0x149   : > { %v6152_v12 = vrot.slane %v6138_v9, %v10837_v35  ;;  %v5688_v29 = vrot.slane %v5666_v10, %v10837_v35  ;;  %v2615_v55 = vrot.slane %v1387_v0, %v10803_v18  ;;  %v2619_v50 = vrot.slane %v1387_v0, %v10806_v21 }
 0x14a   : > { %v5695_v30 = vrot.slane %v5667_v42, %v10837_v35  ;;  %v5696_v31 = vcombine.low %v5674_v34, %v5681_v63  ;;  %v2623_v51 = vrot.slane %v1387_v0, %v10809_v24  ;;  %v2627_v26 = vrot.slane %v1387_v0, %v10812_v22 }
 0x14b   : > { %v6153_v27 = vcombine.low %v6145_v41, %v6152_v12  ;;  %v2631_v3 = vrot.slane %v1387_v0, %v10815_v23  ;;  %v2635_v40 = vrot.slane %v1387_v0, %v10818_v25  ;;  %v6203_v44 = vcombine.low %v2607_v33, %v2611_v11 }
 0x14c   : > { %v5697_v16 = vcombine.low %v5688_v29, %v5695_v30  ;;  %v5704_v38 = vrot.slane %v5696_v31, %v10837_v35  ;;  %v6204_v45 = vcombine.low %v2615_v55, %v2619_v50  ;;  %v6205_v17 = vcombine.low %v2623_v51, %v2627_v26  ;;  %v1373_v29 = vpop.xlane.xlu0 %1372 }
 0x14d   : > { %9476 = vperm.xlu0 %10413, %v6153_v27   ;;  %v6206_v2 = vcombine.low %v2631_v3, %v2635_v40  ;;  %v6213_v56 = vrot.slane %v6203_v44, %v10837_v35  ;;  %v2319_v61 = vrot.slane %v1369_v1, %v10797_v14  ;;  %v2323_v43 = vrot.slane %v1369_v1, %v10800_v15 }
 0x14e   : > { %v5711_v48 = vrot.slane %v5697_v16, %v10837_v35  ;;  %v6220_v54 = vrot.slane %v6204_v45, %v10837_v35  ;;  %v6227_v46 = vrot.slane %v6205_v17, %v10837_v35  ;;  %v2327_v53 = vrot.slane %v1369_v1, %v10803_v18 }
 0x14f   : > { %v6234_v4 = vrot.slane %v6206_v2, %v10837_v35  ;;  %v2331_v39 = vrot.slane %v1369_v1, %v10806_v21  ;;  %v2335_v49 = vrot.slane %v1369_v1, %v10809_v24  ;;  %v2339_v47 = vrot.slane %v1369_v1, %v10812_v22 }
 0x150   : > { %v5712_v57 = vcombine.low %v5704_v38, %v5711_v48  ;;  %v6235_v52 = vcombine.low %v6213_v56, %v6220_v54  ;;  %v2343_v0 = vrot.slane %v1369_v1, %v10815_v23  ;;  %v2347_v60 = vrot.slane %v1369_v1, %v10818_v25  ;;  %v1395_v38 = vpop.xlane.xlu1 %1394 }
 0x151   : > { %v6236_v5 = vcombine.low %v6227_v46, %v6234_v4  ;;  %v5762_v6 = vcombine.low %v2319_v61, %v2323_v43  ;;  %v5763_v8 = vcombine.low %v2327_v53, %v2331_v39  ;;  %v5764_v62 = vcombine.low %v2335_v49, %v2339_v47 }
 0x152   : > { %9449 = vperm.xlu1 %10414, %v5712_v57   ;;  %v6243_v20 = vrot.slane %v6235_v52, %v10837_v35  ;;  %v5765_v59 = vcombine.low %v2343_v0, %v2347_v60  ;;  %v2671_v19 = vrot.slane %v1391_v32, %v10797_v14  ;;  %v2675_v7 = vrot.slane %v1391_v32, %v10800_v15 }
 0x153   : > { %v6250_v28 = vrot.slane %v6236_v5, %v10837_v35  ;;  %v5772_v13 = vrot.slane %v5762_v6, %v10837_v35  ;;  %v5779_v36 = vrot.slane %v5763_v8, %v10837_v35  ;;  %v5786_v9 = vrot.slane %v5764_v62, %v10837_v35 }
 0x154   : > { %v5793_v41 = vrot.slane %v5765_v59, %v10837_v35  ;;  %v2679_v10 = vrot.slane %v1391_v32, %v10803_v18  ;;  %v2683_v33 = vrot.slane %v1391_v32, %v10806_v21  ;;  %v2687_v42 = vrot.slane %v1391_v32, %v10809_v24 }
 0x155   : > { %v6251_v34 = vcombine.low %v6243_v20, %v6250_v28  ;;  %v5794_v63 = vcombine.low %v5772_v13, %v5779_v36  ;;  %v2691_v11 = vrot.slane %v1391_v32, %v10812_v22  ;;  %v2695_v12 = vrot.slane %v1391_v32, %v10815_v23 }
 0x156   : > { %v5795_v55 = vcombine.low %v5786_v9, %v5793_v41  ;;  %v2699_v50 = vrot.slane %v1391_v32, %v10818_v25  ;;  %v6301_v30 = vcombine.low %v2671_v19, %v2675_v7  ;;  %v6302_v31 = vcombine.low %v2679_v10, %v2683_v33  ;;  %v1377_v10 = vpop.xlane.xlu0 %1376 }
 0x157   : > { %9482 = vperm.xlu0 %10413, %v6251_v34   ;;  %v5802_v51 = vrot.slane %v5794_v63, %v10837_v35  ;;  %v6303_v26 = vcombine.low %v2687_v42, %v2691_v11  ;;  %v2383_v27 = vrot.slane %v1373_v29, %v10797_v14  ;;  %v2387_v3 = vrot.slane %v1373_v29, %v10800_v15 }
 0x158   : > { %v5809_v40 = vrot.slane %v5795_v55, %v10837_v35  ;;  %v6304_v44 = vcombine.low %v2695_v12, %v2699_v50  ;;  %v6311_v1 = vrot.slane %v6301_v30, %v10837_v35  ;;  %v6318_v16 = vrot.slane %v6302_v31, %v10837_v35 }
 0x159   : > { %v6325_v45 = vrot.slane %v6303_v26, %v10837_v35  ;;  %v2391_v17 = vrot.slane %v1373_v29, %v10803_v18  ;;  %v2395_v2 = vrot.slane %v1373_v29, %v10806_v21  ;;  %v2399_v56 = vrot.slane %v1373_v29, %v10809_v24  ;;  %v1399_v26 = vpop.xlane.xlu1 %1398 }
 0x15a   : > { %v5810_v61 = vcombine.low %v5802_v51, %v5809_v40  ;;  %v6332_v43 = vrot.slane %v6304_v44, %v10837_v35  ;;  %v6333_v48 = vcombine.low %v6311_v1, %v6318_v16  ;;  %v2403_v54 = vrot.slane %v1373_v29, %v10812_v22 }
 0x15b   : > { %v2407_v46 = vrot.slane %v1373_v29, %v10815_v23  ;;  %v2411_v53 = vrot.slane %v1373_v29, %v10818_v25  ;;  %v5860_v32 = vcombine.low %v2383_v27, %v2387_v3  ;;  %v5861_v4 = vcombine.low %v2391_v17, %v2395_v2 }
 0x15c   : > { %9455 = vperm.xlu1 %10414, %v5810_v61   ;;  %v6334_v39 = vcombine.low %v6325_v45, %v6332_v43  ;;  %v6341_v49 = vrot.slane %v6333_v48, %v10837_v35  ;;  %v5862_v47 = vcombine.low %v2399_v56, %v2403_v54  ;;  %v2735_v57 = vrot.slane %v1395_v38, %v10797_v14 }
 0x15d   : > { %v5863_v52 = vcombine.low %v2407_v46, %v2411_v53  ;;  %v5870_v0 = vrot.slane %v5860_v32, %v10837_v35  ;;  %v5877_v60 = vrot.slane %v5861_v4, %v10837_v35  ;;  %v2739_v5 = vrot.slane %v1395_v38, %v10800_v15 }
 0x15e   : > { %v6348_v6 = vrot.slane %v6334_v39, %v10837_v35  ;;  %v5884_v8 = vrot.slane %v5862_v47, %v10837_v35  ;;  %v2743_v62 = vrot.slane %v1395_v38, %v10803_v18  ;;  %v2747_v20 = vrot.slane %v1395_v38, %v10806_v21 }
 0x15f   : > { %v5891_v59 = vrot.slane %v5863_v52, %v10837_v35  ;;  %v5892_v19 = vcombine.low %v5870_v0, %v5877_v60  ;;  %v2751_v7 = vrot.slane %v1395_v38, %v10809_v24  ;;  %v2755_v28 = vrot.slane %v1395_v38, %v10812_v22 }
 0x160   : > { %v6349_v13 = vcombine.low %v6341_v49, %v6348_v6  ;;  %v2759_v36 = vrot.slane %v1395_v38, %v10815_v23  ;;  %v2763_v9 = vrot.slane %v1395_v38, %v10818_v25  ;;  %v6399_v41 = vcombine.low %v2735_v57, %v2739_v5 }
 0x161   : > { %v5893_v33 = vcombine.low %v5884_v8, %v5891_v59  ;;  %v5900_v42 = vrot.slane %v5892_v19, %v10837_v35  ;;  %v6400_v34 = vcombine.low %v2743_v62, %v2747_v20  ;;  %v6401_v63 = vcombine.low %v2751_v7, %v2755_v28  ;;  %v1381_v8 = vpop.xlane.xlu0 %1380 }
 0x162   : > { %9488 = vperm.xlu0 %10413, %v6349_v13   ;;  %v6402_v11 = vcombine.low %v2759_v36, %v2763_v9  ;;  %v6409_v12 = vrot.slane %v6399_v41, %v10837_v35  ;;  %v2447_v29 = vrot.slane %v1377_v10, %v10797_v14  ;;  %v2451_v55 = vrot.slane %v1377_v10, %v10800_v15 }
 0x163   : > { %v5907_v50 = vrot.slane %v5893_v33, %v10837_v35  ;;  %v6416_v30 = vrot.slane %v6400_v34, %v10837_v35  ;;  %v6423_v31 = vrot.slane %v6401_v63, %v10837_v35  ;;  %v2455_v51 = vrot.slane %v1377_v10, %v10803_v18 }
 0x164   : > { %v6430_v27 = vrot.slane %v6402_v11, %v10837_v35  ;;  %v2459_v3 = vrot.slane %v1377_v10, %v10806_v21  ;;  %v2463_v40 = vrot.slane %v1377_v10, %v10809_v24  ;;  %v2467_v44 = vrot.slane %v1377_v10, %v10812_v22 }
 0x165   : > { %v5908_v1 = vcombine.low %v5900_v42, %v5907_v50  ;;  %v6431_v16 = vcombine.low %v6409_v12, %v6416_v30  ;;  %v2471_v38 = vrot.slane %v1377_v10, %v10815_v23  ;;  %v2475_v45 = vrot.slane %v1377_v10, %v10818_v25  ;;  %v1403_v42 = vpop.xlane.xlu1 %1402 }
 0x166   : > { %v6432_v17 = vcombine.low %v6423_v31, %v6430_v27  ;;  %v5958_v2 = vcombine.low %v2447_v29, %v2451_v55  ;;  %v5959_v56 = vcombine.low %v2455_v51, %v2459_v3  ;;  %v5960_v61 = vcombine.low %v2463_v40, %v2467_v44 }
 0x167   : > { %9461 = vperm.xlu1 %10414, %v5908_v1   ;;  %v6439_v43 = vrot.slane %v6431_v16, %v10837_v35  ;;  %v5961_v48 = vcombine.low %v2471_v38, %v2475_v45  ;;  %v2799_v54 = vrot.slane %v1399_v26, %v10797_v14  ;;  %v2803_v46 = vrot.slane %v1399_v26, %v10800_v15 }
 0x168   : > { %v6446_v53 = vrot.slane %v6432_v17, %v10837_v35  ;;  %v5968_v32 = vrot.slane %v5958_v2, %v10837_v35  ;;  %v5975_v4 = vrot.slane %v5959_v56, %v10837_v35  ;;  %v5982_v39 = vrot.slane %v5960_v61, %v10837_v35 }
 0x169   : > { %v5989_v49 = vrot.slane %v5961_v48, %v10837_v35  ;;  %v2807_v47 = vrot.slane %v1399_v26, %v10803_v18  ;;  %v2811_v57 = vrot.slane %v1399_v26, %v10806_v21  ;;  %v2815_v52 = vrot.slane %v1399_v26, %v10809_v24  ;;  %v11419_v48 = vpop.xlane.xlu1 %1406 }
 0x16a   : > { %v6447_v0 = vcombine.low %v6439_v43, %v6446_v53  ;;  %v5990_v60 = vcombine.low %v5968_v32, %v5975_v4  ;;  %v2819_v5 = vrot.slane %v1399_v26, %v10812_v22  ;;  %v2823_v6 = vrot.slane %v1399_v26, %v10815_v23 }
 0x16b   : > { %v5991_v62 = vcombine.low %v5982_v39, %v5989_v49  ;;  %v2827_v20 = vrot.slane %v1399_v26, %v10818_v25  ;;  %v6497_v59 = vcombine.low %v2799_v54, %v2803_v46  ;;  %v6498_v19 = vcombine.low %v2807_v47, %v2811_v57  ;;  %v1385_v57 = vpop.xlane.xlu0 %1384 }
 0x16c   : > { %9494 = vperm.xlu0 %10413, %v6447_v0   ;;  %v5998_v7 = vrot.slane %v5990_v60, %v10837_v35  ;;  %v6499_v28 = vcombine.low %v2815_v52, %v2819_v5  ;;  %v2511_v13 = vrot.slane %v1381_v8, %v10797_v14  ;;  %v2515_v36 = vrot.slane %v1381_v8, %v10800_v15 }
 0x16d   : > { %v6005_v9 = vrot.slane %v5991_v62, %v10837_v35  ;;  %v6500_v41 = vcombine.low %v2823_v6, %v2827_v20  ;;  %v6507_v10 = vrot.slane %v6497_v59, %v10837_v35  ;;  %v6514_v33 = vrot.slane %v6498_v19, %v10837_v35 }
 0x16e   : > { %v6521_v34 = vrot.slane %v6499_v28, %v10837_v35  ;;  %v2519_v63 = vrot.slane %v1381_v8, %v10803_v18  ;;  %v2523_v11 = vrot.slane %v1381_v8, %v10806_v21  ;;  %v2527_v12 = vrot.slane %v1381_v8, %v10809_v24 }
 0x16f   : > { %v6006_v29 = vcombine.low %v5998_v7, %v6005_v9  ;;  %v6528_v55 = vrot.slane %v6500_v41, %v10837_v35  ;;  %v6529_v50 = vcombine.low %v6507_v10, %v6514_v33  ;;  %v2531_v30 = vrot.slane %v1381_v8, %v10812_v22  ;;  %v11438_v10 = vpop.xlane.xlu1 %1410 }
 0x170   : > { %v2535_v31 = vrot.slane %v1381_v8, %v10815_v23  ;;  %v2539_v51 = vrot.slane %v1381_v8, %v10818_v25  ;;  %v6056_v26 = vcombine.low %v2511_v13, %v2515_v36  ;;  %v6057_v27 = vcombine.low %v2519_v63, %v2523_v11 }
 0x171   : > { %9467 = vperm.xlu1 %10414, %v6006_v29   ;;  %v6530_v3 = vcombine.low %v6521_v34, %v6528_v55  ;;  %v6537_v40 = vrot.slane %v6529_v50, %v10837_v35  ;;  %v6058_v44 = vcombine.low %v2527_v12, %v2531_v30  ;;  %v2863_v1 = vrot.slane %v1403_v42, %v10797_v14 }
 0x172   : > { %v6059_v16 = vcombine.low %v2535_v31, %v2539_v51  ;;  %v6066_v38 = vrot.slane %v6056_v26, %v10837_v35  ;;  %v6073_v45 = vrot.slane %v6057_v27, %v10837_v35  ;;  %v2867_v17 = vrot.slane %v1403_v42, %v10800_v15 }
 0x173   : > { %v6544_v2 = vrot.slane %v6530_v3, %v10837_v35  ;;  %v6080_v56 = vrot.slane %v6058_v44, %v10837_v35  ;;  %v2871_v61 = vrot.slane %v1403_v42, %v10803_v18  ;;  %v2875_v43 = vrot.slane %v1403_v42, %v10806_v21 }
 0x174   : > { %v6087_v54 = vrot.slane %v6059_v16, %v10837_v35  ;;  %v6088_v46 = vcombine.low %v6066_v38, %v6073_v45  ;;  %v2879_v53 = vrot.slane %v1403_v42, %v10809_v24  ;;  %v2883_v32 = vrot.slane %v1403_v42, %v10812_v22 }
 0x175   : > { %v6545_v4 = vcombine.low %v6537_v40, %v6544_v2  ;;  %v2887_v39 = vrot.slane %v1403_v42, %v10815_v23  ;;  %v2891_v49 = vrot.slane %v1403_v42, %v10818_v25  ;;  %v6595_v47 = vcombine.low %v2863_v1, %v2867_v17 }
 0x176   : > { %v6089_v52 = vcombine.low %v6080_v56, %v6087_v54  ;;  %v6096_v0 = vrot.slane %v6088_v46, %v10837_v35  ;;  %v6596_v60 = vcombine.low %v2871_v61, %v2875_v43  ;;  %v6597_v5 = vcombine.low %v2879_v53, %v2883_v32  ;;  %v1389_v61 = vpop.xlane.xlu0 %1388  ;;  %v11462_v43 = vpop.xlane.xlu1 %1414 }
 0x177   : > { %9500 = vperm.xlu0 %10413, %v6545_v4   ;;  %v6598_v6 = vcombine.low %v2887_v39, %v2891_v49  ;;  %v6605_v8 = vrot.slane %v6595_v47, %v10837_v35  ;;  %v2575_v62 = vrot.slane %v1385_v57, %v10797_v14  ;;  %v2579_v20 = vrot.slane %v1385_v57, %v10800_v15 }
 0x178   : > { %v6103_v59 = vrot.slane %v6089_v52, %v10837_v35  ;;  %v6612_v19 = vrot.slane %v6596_v60, %v10837_v35  ;;  %v6619_v7 = vrot.slane %v6597_v5, %v10837_v35  ;;  %v2583_v28 = vrot.slane %v1385_v57, %v10803_v18 }
 0x179   : > { %v6626_v13 = vrot.slane %v6598_v6, %v10837_v35  ;;  %v2587_v36 = vrot.slane %v1385_v57, %v10806_v21  ;;  %v2591_v9 = vrot.slane %v1385_v57, %v10809_v24  ;;  %v2595_v41 = vrot.slane %v1385_v57, %v10812_v22 }
 0x17a   : > { %v6104_v33 = vcombine.low %v6096_v0, %v6103_v59  ;;  %v6627_v42 = vcombine.low %v6605_v8, %v6612_v19  ;;  %v2599_v34 = vrot.slane %v1385_v57, %v10815_v23  ;;  %v2603_v63 = vrot.slane %v1385_v57, %v10818_v25 }
 0x17b   : > { %v6628_v11 = vcombine.low %v6619_v7, %v6626_v13  ;;  %v6154_v12 = vcombine.low %v2575_v62, %v2579_v20  ;;  %v6155_v29 = vcombine.low %v2583_v28, %v2587_v36  ;;  %v6156_v55 = vcombine.low %v2591_v9, %v2595_v41  ;;  %v11480_v9 = vpop.xlane.xlu1 %1418 }
 0x17c   : > { %9473 = vperm.xlu1 %10414, %v6104_v33   ;;  %v6635_v50 = vrot.slane %v6627_v42, %v10837_v35  ;;  %v6157_v30 = vcombine.low %v2599_v34, %v2603_v63  ;;  %v2927_v31 = vrot.slane %v11419_v48, %v10797_v14  ;;  %v2931_v51 = vrot.slane %v11419_v48, %v10800_v15 }
 0x17d   : > { %v6642_v26 = vrot.slane %v6628_v11, %v10837_v35  ;;  %v6164_v27 = vrot.slane %v6154_v12, %v10837_v35  ;;  %v6171_v3 = vrot.slane %v6155_v29, %v10837_v35  ;;  %v6178_v40 = vrot.slane %v6156_v55, %v10837_v35 }
 0x17e   : > { %v6185_v44 = vrot.slane %v6157_v30, %v10837_v35  ;;  %v2935_v1 = vrot.slane %v11419_v48, %v10803_v18  ;;  %v2939_v16 = vrot.slane %v11419_v48, %v10806_v21  ;;  %v2943_v38 = vrot.slane %v11419_v48, %v10809_v24 }
 0x17f   : > { %v6643_v45 = vcombine.low %v6635_v50, %v6642_v26  ;;  %v6186_v17 = vcombine.low %v6164_v27, %v6171_v3  ;;  %v2947_v2 = vrot.slane %v11419_v48, %v10812_v22  ;;  %v2951_v56 = vrot.slane %v11419_v48, %v10815_v23 }
 0x180   : > { %v6187_v54 = vcombine.low %v6178_v40, %v6185_v44  ;;  %v2955_v46 = vrot.slane %v11419_v48, %v10818_v25  ;;  %v6693_v53 = vcombine.low %v2927_v31, %v2931_v51  ;;  %v6694_v32 = vcombine.low %v2935_v1, %v2939_v16  ;;  %v1393_v51 = vpop.xlane.xlu0 %1392 }
 0x181   : > { %9506 = vperm.xlu0 %10413, %v6643_v45   ;;  %v6194_v4 = vrot.slane %v6186_v17, %v10837_v35  ;;  %v6695_v39 = vcombine.low %v2943_v38, %v2947_v2  ;;  %v2639_v49 = vrot.slane %v1389_v61, %v10797_v14  ;;  %v2643_v47 = vrot.slane %v1389_v61, %v10800_v15 }
 0x182   : > { %v6201_v57 = vrot.slane %v6187_v54, %v10837_v35  ;;  %v6696_v52 = vcombine.low %v2951_v56, %v2955_v46  ;;  %v6703_v0 = vrot.slane %v6693_v53, %v10837_v35  ;;  %v6710_v60 = vrot.slane %v6694_v32, %v10837_v35 }
 0x183   : > { %v6717_v5 = vrot.slane %v6695_v39, %v10837_v35  ;;  %v2647_v48 = vrot.slane %v1389_v61, %v10803_v18  ;;  %v2651_v6 = vrot.slane %v1389_v61, %v10806_v21  ;;  %v2655_v8 = vrot.slane %v1389_v61, %v10809_v24 }
 0x184   : > { %v6202_v62 = vcombine.low %v6194_v4, %v6201_v57  ;;  %v6724_v20 = vrot.slane %v6696_v52, %v10837_v35  ;;  %v6725_v59 = vcombine.low %v6703_v0, %v6710_v60  ;;  %v2659_v19 = vrot.slane %v1389_v61, %v10812_v22  ;;  %v1397_v60 = vpop.xlane.xlu0 %1396 }
 0x185   : > { %v2663_v7 = vrot.slane %v1389_v61, %v10815_v23  ;;  %v2667_v28 = vrot.slane %v1389_v61, %v10818_v25  ;;  %v6252_v13 = vcombine.low %v2639_v49, %v2643_v47  ;;  %v6253_v36 = vcombine.low %v2647_v48, %v2651_v6  ;;  %v11505_v61 = vpop.xlane.xlu1 %1422 }
 0x186   : > { %9479 = vperm.xlu1 %10414, %v6202_v62   ;;  %v6726_v41 = vcombine.low %v6717_v5, %v6724_v20  ;;  %v6733_v33 = vrot.slane %v6725_v59, %v10837_v35  ;;  %v6254_v42 = vcombine.low %v2655_v8, %v2659_v19  ;;  %v2991_v34 = vrot.slane %v11438_v10, %v10797_v14 }
 0x187   : > { %v6255_v63 = vcombine.low %v2663_v7, %v2667_v28  ;;  %v6262_v11 = vrot.slane %v6252_v13, %v10837_v35  ;;  %v6269_v12 = vrot.slane %v6253_v36, %v10837_v35  ;;  %v2995_v29 = vrot.slane %v11438_v10, %v10800_v15 }
 0x188   : > { %v6740_v55 = vrot.slane %v6726_v41, %v10837_v35  ;;  %v6276_v50 = vrot.slane %v6254_v42, %v10837_v35  ;;  %v2999_v30 = vrot.slane %v11438_v10, %v10803_v18  ;;  %v3003_v31 = vrot.slane %v11438_v10, %v10806_v21 }
 0x189   : > { %v6283_v26 = vrot.slane %v6255_v63, %v10837_v35  ;;  %v6284_v27 = vcombine.low %v6262_v11, %v6269_v12  ;;  %v3007_v3 = vrot.slane %v11438_v10, %v10809_v24  ;;  %v3011_v40 = vrot.slane %v11438_v10, %v10812_v22  ;;  %v11525_v41 = vpop.xlane.xlu1 %1426 }
 0x18a   : > { %v6741_v44 = vcombine.low %v6733_v33, %v6740_v55  ;;  %v3015_v1 = vrot.slane %v11438_v10, %v10815_v23  ;;  %v3019_v16 = vrot.slane %v11438_v10, %v10818_v25  ;;  %v6791_v38 = vcombine.low %v2991_v34, %v2995_v29 }
 0x18b   : > { %v6285_v45 = vcombine.low %v6276_v50, %v6283_v26  ;;  %v6292_v17 = vrot.slane %v6284_v27, %v10837_v35  ;;  %v6792_v2 = vcombine.low %v2999_v30, %v3003_v31  ;;  %v6793_v56 = vcombine.low %v3007_v3, %v3011_v40  ;;  %v11542_v26 = vpop.xlane.xlu0 %1400 }
 0x18c   : > { %9512 = vperm.xlu0 %10413, %v6741_v44   ;;  %v6794_v54 = vcombine.low %v3015_v1, %v3019_v16  ;;  %v6801_v46 = vrot.slane %v6791_v38, %v10837_v35  ;;  %v2703_v53 = vrot.slane %v1393_v51, %v10797_v14  ;;  %v2707_v32 = vrot.slane %v1393_v51, %v10800_v15 }
 0x18d   : > { %v6299_v4 = vrot.slane %v6285_v45, %v10837_v35  ;;  %v6808_v10 = vrot.slane %v6792_v2, %v10837_v35  ;;  %v6815_v39 = vrot.slane %v6793_v56, %v10837_v35  ;;  %v2711_v49 = vrot.slane %v1393_v51, %v10803_v18 }
 0x18e   : > { %v6822_v47 = vrot.slane %v6794_v54, %v10837_v35  ;;  %v2715_v57 = vrot.slane %v1393_v51, %v10806_v21  ;;  %v2719_v52 = vrot.slane %v1393_v51, %v10809_v24  ;;  %v2723_v0 = vrot.slane %v1393_v51, %v10812_v22 }
 0x18f   : > { %v6300_v5 = vcombine.low %v6292_v17, %v6299_v4  ;;  %v6823_v48 = vcombine.low %v6801_v46, %v6808_v10  ;;  %v2727_v6 = vrot.slane %v1393_v51, %v10815_v23  ;;  %v2731_v8 = vrot.slane %v1393_v51, %v10818_v25  ;;  %v11552_v46 = vpop.xlane.xlu1 %1430 }
 0x190   : > { %v6824_v62 = vcombine.low %v6815_v39, %v6822_v47  ;;  %v6350_v20 = vcombine.low %v2703_v53, %v2707_v32  ;;  %v6351_v59 = vcombine.low %v2711_v49, %v2715_v57  ;;  %v6352_v19 = vcombine.low %v2719_v52, %v2723_v0 }
 0x191   : > { %9485 = vperm.xlu1 %10414, %v6300_v5   ;;  %v6831_v7 = vrot.slane %v6823_v48, %v10837_v35  ;;  %v6353_v28 = vcombine.low %v2727_v6, %v2731_v8  ;;  %v3055_v13 = vrot.slane %v11462_v43, %v10797_v14  ;;  %v3059_v36 = vrot.slane %v11462_v43, %v10800_v15  ;;  %v11562_v48 = vpop.xlane.xlu0 %1404 }
 0x192   : > { %v6838_v33 = vrot.slane %v6824_v62, %v10837_v35  ;;  %v6360_v42 = vrot.slane %v6350_v20, %v10837_v35  ;;  %v6367_v34 = vrot.slane %v6351_v59, %v10837_v35  ;;  %v6374_v63 = vrot.slane %v6352_v19, %v10837_v35 }
 0x193   : > { %v6381_v11 = vrot.slane %v6353_v28, %v10837_v35  ;;  %v3063_v12 = vrot.slane %v11462_v43, %v10803_v18  ;;  %v3067_v29 = vrot.slane %v11462_v43, %v10806_v21  ;;  %v3071_v55 = vrot.slane %v11462_v43, %v10809_v24 }
 0x194   : > { %v6839_v50 = vcombine.low %v6831_v7, %v6838_v33  ;;  %v6382_v30 = vcombine.low %v6360_v42, %v6367_v34  ;;  %v3075_v31 = vrot.slane %v11462_v43, %v10812_v22  ;;  %v3079_v51 = vrot.slane %v11462_v43, %v10815_v23  ;;  %v11577_v42 = vpop.xlane.xlu1 %1434 }
 0x195   : > { %v6383_v27 = vcombine.low %v6374_v63, %v6381_v11  ;;  %v3083_v3 = vrot.slane %v11462_v43, %v10818_v25  ;;  %v6889_v40 = vcombine.low %v3055_v13, %v3059_v36  ;;  %v6890_v44 = vcombine.low %v3063_v12, %v3067_v29 }
 0x196   : > { %9518 = vperm.xlu0 %10413, %v6839_v50   ;;  %v6390_v1 = vrot.slane %v6382_v30, %v10837_v35  ;;  %v6891_v16 = vcombine.low %v3071_v55, %v3075_v31  ;;  %v2767_v38 = vrot.slane %v1397_v60, %v10797_v14  ;;  %v2771_v45 = vrot.slane %v1397_v60, %v10800_v15 }
 0x197   : > { %v6397_v17 = vrot.slane %v6383_v27, %v10837_v35  ;;  %v6892_v2 = vcombine.low %v3079_v51, %v3083_v3  ;;  %v6899_v56 = vrot.slane %v6889_v40, %v10837_v35  ;;  %v6906_v54 = vrot.slane %v6890_v44, %v10837_v35  ;;  %v11589_v40 = vpop.xlane.xlu0 %1408 }
 0x198   : > { %v6913_v43 = vrot.slane %v6891_v16, %v10837_v35  ;;  %v2775_v53 = vrot.slane %v1397_v60, %v10803_v18  ;;  %v2779_v32 = vrot.slane %v1397_v60, %v10806_v21  ;;  %v2783_v4 = vrot.slane %v1397_v60, %v10809_v24 }
 0x199   : > { %v6398_v10 = vcombine.low %v6390_v1, %v6397_v17  ;;  %v6920_v39 = vrot.slane %v6892_v2, %v10837_v35  ;;  %v6921_v49 = vcombine.low %v6899_v56, %v6906_v54  ;;  %v2787_v47 = vrot.slane %v1397_v60, %v10812_v22 }
 0x19a   : > { %v2791_v57 = vrot.slane %v1397_v60, %v10815_v23  ;;  %v2795_v52 = vrot.slane %v1397_v60, %v10818_v25  ;;  %v6448_v0 = vcombine.low %v2767_v38, %v2771_v45  ;;  %v6449_v5 = vcombine.low %v2775_v53, %v2779_v32  ;;  %v11608_v32 = vpop.xlane.xlu1 %1438 }
 0x19b   : > { %9491 = vperm.xlu1 %10414, %v6398_v10   ;;  %v6922_v6 = vcombine.low %v6913_v43, %v6920_v39  ;;  %v6929_v8 = vrot.slane %v6921_v49, %v10837_v35  ;;  %v6450_v62 = vcombine.low %v2783_v4, %v2787_v47  ;;  %v3119_v20 = vrot.slane %v11480_v9, %v10797_v14 }
 0x19c   : > { %v6451_v59 = vcombine.low %v2791_v57, %v2795_v52  ;;  %v6458_v19 = vrot.slane %v6448_v0, %v10837_v35  ;;  %v6465_v7 = vrot.slane %v6449_v5, %v10837_v35  ;;  %v3123_v60 = vrot.slane %v11480_v9, %v10800_v15 }
 0x19d   : > { %v6936_v28 = vrot.slane %v6922_v6, %v10837_v35  ;;  %v6472_v13 = vrot.slane %v6450_v62, %v10837_v35  ;;  %v3127_v36 = vrot.slane %v11480_v9, %v10803_v18  ;;  %v3131_v33 = vrot.slane %v11480_v9, %v10806_v21 }
 0x19e   : > { %v6479_v34 = vrot.slane %v6451_v59, %v10837_v35  ;;  %v6480_v63 = vcombine.low %v6458_v19, %v6465_v7  ;;  %v3135_v11 = vrot.slane %v11480_v9, %v10809_v24  ;;  %v3139_v12 = vrot.slane %v11480_v9, %v10812_v22 }
 0x19f   : > { %v6937_v29 = vcombine.low %v6929_v8, %v6936_v28  ;;  %v3143_v55 = vrot.slane %v11480_v9, %v10815_v23  ;;  %v3147_v50 = vrot.slane %v11480_v9, %v10818_v25  ;;  %v6987_v30 = vcombine.low %v3119_v20, %v3123_v60  ;;  %v11619_v20 = vpop.xlane.xlu0 %1412 }
 0x1a0   : > { %v6481_v31 = vcombine.low %v6472_v13, %v6479_v34  ;;  %v6488_v51 = vrot.slane %v6480_v63, %v10837_v35  ;;  %v6988_v27 = vcombine.low %v3127_v36, %v3131_v33  ;;  %v6989_v3 = vcombine.low %v3135_v11, %v3139_v12  ;;  %v11636_v12 = vpop.xlane.xlu1 %1442 }
 0x1a1   : > { %9524 = vperm.xlu0 %10413, %v6937_v29   ;;  %v6990_v44 = vcombine.low %v3143_v55, %v3147_v50  ;;  %v6997_v1 = vrot.slane %v6987_v30, %v10837_v35  ;;  %v2831_v16 = vrot.slane %v11542_v26, %v10797_v14  ;;  %v2835_v38 = vrot.slane %v11542_v26, %v10800_v15 }
 0x1a2   : > { %v6495_v9 = vrot.slane %v6481_v31, %v10837_v35  ;;  %v7004_v45 = vrot.slane %v6988_v27, %v10837_v35  ;;  %v7011_v17 = vrot.slane %v6989_v3, %v10837_v35  ;;  %v2839_v2 = vrot.slane %v11542_v26, %v10803_v18 }
 0x1a3   : > { %v7018_v56 = vrot.slane %v6990_v44, %v10837_v35  ;;  %v2843_v54 = vrot.slane %v11542_v26, %v10806_v21  ;;  %v2847_v43 = vrot.slane %v11542_v26, %v10809_v24  ;;  %v2851_v53 = vrot.slane %v11542_v26, %v10812_v22 }
 0x1a4   : > { %v6496_v4 = vcombine.low %v6488_v51, %v6495_v9  ;;  %v7019_v10 = vcombine.low %v6997_v1, %v7004_v45  ;;  %v2855_v39 = vrot.slane %v11542_v26, %v10815_v23  ;;  %v2859_v49 = vrot.slane %v11542_v26, %v10818_v25 }
 0x1a5   : > { %v7020_v47 = vcombine.low %v7011_v17, %v7018_v56  ;;  %v6546_v57 = vcombine.low %v2831_v16, %v2835_v38  ;;  %v6547_v52 = vcombine.low %v2839_v2, %v2843_v54  ;;  %v6548_v0 = vcombine.low %v2847_v43, %v2851_v53 }
 0x1a6   : > { %9497 = vperm.xlu1 %10414, %v6496_v4   ;;  %v7027_v5 = vrot.slane %v7019_v10, %v10837_v35  ;;  %v6549_v6 = vcombine.low %v2855_v39, %v2859_v49  ;;  %v3183_v8 = vrot.slane %v11505_v61, %v10797_v14  ;;  %v3187_v62 = vrot.slane %v11505_v61, %v10800_v15 }
 0x1a7   : > { %v7034_v59 = vrot.slane %v7020_v47, %v10837_v35  ;;  %v6556_v26 = vrot.slane %v6546_v57, %v10837_v35  ;;  %v6563_v19 = vrot.slane %v6547_v52, %v10837_v35  ;;  %v6570_v7 = vrot.slane %v6548_v0, %v10837_v35  ;;  %v11664_v47 = vpop.xlane.xlu1 %1446 }
 0x1a8   : > { %v6577_v60 = vrot.slane %v6549_v6, %v10837_v35  ;;  %v3191_v28 = vrot.slane %v11505_v61, %v10803_v18  ;;  %v3195_v13 = vrot.slane %v11505_v61, %v10806_v21  ;;  %v3199_v36 = vrot.slane %v11505_v61, %v10809_v24 }
 0x1a9   : > { %v7035_v33 = vcombine.low %v7027_v5, %v7034_v59  ;;  %v6578_v34 = vcombine.low %v6556_v26, %v6563_v19  ;;  %v3203_v63 = vrot.slane %v11505_v61, %v10812_v22  ;;  %v3207_v11 = vrot.slane %v11505_v61, %v10815_v23 }
 0x1aa   : > { %v6579_v29 = vcombine.low %v6570_v7, %v6577_v60  ;;  %v3211_v55 = vrot.slane %v11505_v61, %v10818_v25  ;;  %v7085_v50 = vcombine.low %v3183_v8, %v3187_v62  ;;  %v7086_v30 = vcombine.low %v3191_v28, %v3195_v13  ;;  %v11648_v61 = vpop.xlane.xlu0 %1416 }
 0x1ab   : > { %9530 = vperm.xlu0 %10413, %v7035_v33   ;;  %v6586_v31 = vrot.slane %v6578_v34, %v10837_v35  ;;  %v7087_v51 = vcombine.low %v3199_v36, %v3203_v63  ;;  %v2895_v27 = vrot.slane %v11562_v48, %v10797_v14  ;;  %v2899_v3 = vrot.slane %v11562_v48, %v10800_v15 }
 0x1ac   : > { %v6593_v44 = vrot.slane %v6579_v29, %v10837_v35  ;;  %v7088_v1 = vcombine.low %v3207_v11, %v3211_v55  ;;  %v7095_v16 = vrot.slane %v7085_v50, %v10837_v35  ;;  %v7102_v38 = vrot.slane %v7086_v30, %v10837_v35 }
 0x1ad   : > { %v7109_v9 = vrot.slane %v7087_v51, %v10837_v35  ;;  %v2903_v45 = vrot.slane %v11562_v48, %v10803_v18  ;;  %v2907_v17 = vrot.slane %v11562_v48, %v10806_v21  ;;  %v2911_v2 = vrot.slane %v11562_v48, %v10809_v24  ;;  %v11691_v51 = vpop.xlane.xlu1 %1450 }
 0x1ae   : > { %v6594_v56 = vcombine.low %v6586_v31, %v6593_v44  ;;  %v7116_v54 = vrot.slane %v7088_v1, %v10837_v35  ;;  %v7117_v43 = vcombine.low %v7095_v16, %v7102_v38  ;;  %v2915_v53 = vrot.slane %v11562_v48, %v10812_v22  ;;  %v11679_v60 = vpop.xlane.xlu0 %1420 }
 0x1af   : > { %v2919_v4 = vrot.slane %v11562_v48, %v10815_v23  ;;  %v2923_v10 = vrot.slane %v11562_v48, %v10818_v25  ;;  %v6644_v39 = vcombine.low %v2895_v27, %v2899_v3  ;;  %v6645_v49 = vcombine.low %v2903_v45, %v2907_v17 }
 0x1b0   : > { %9503 = vperm.xlu1 %10414, %v6594_v56   ;;  %v7118_v57 = vcombine.low %v7109_v9, %v7116_v54  ;;  %v7125_v52 = vrot.slane %v7117_v43, %v10837_v35  ;;  %v6646_v0 = vcombine.low %v2911_v2, %v2915_v53  ;;  %v3247_v5 = vrot.slane %v11525_v41, %v10797_v14 }
 0x1b1   : > { %v6647_v6 = vcombine.low %v2919_v4, %v2923_v10  ;;  %v6654_v8 = vrot.slane %v6644_v39, %v10837_v35  ;;  %v6661_v62 = vrot.slane %v6645_v49, %v10837_v35  ;;  %v3251_v48 = vrot.slane %v11525_v41, %v10800_v15 }
 0x1b2   : > { %v7132_v59 = vrot.slane %v7118_v57, %v10837_v35  ;;  %v6668_v26 = vrot.slane %v6646_v0, %v10837_v35  ;;  %v3255_v19 = vrot.slane %v11525_v41, %v10803_v18  ;;  %v3259_v7 = vrot.slane %v11525_v41, %v10806_v21  ;;  %v11710_v54 = vpop.xlane.xlu0 %1424 }
 0x1b3   : > { %v6675_v28 = vrot.slane %v6647_v6, %v10837_v35  ;;  %v6676_v13 = vcombine.low %v6654_v8, %v6661_v62  ;;  %v3263_v36 = vrot.slane %v11525_v41, %v10809_v24  ;;  %v3267_v33 = vrot.slane %v11525_v41, %v10812_v22  ;;  %v11721_v62 = vpop.xlane.xlu1 %1454 }
 0x1b4   : > { %v7133_v34 = vcombine.low %v7125_v52, %v7132_v59  ;;  %v3271_v63 = vrot.slane %v11525_v41, %v10815_v23  ;;  %v3275_v11 = vrot.slane %v11525_v41, %v10818_v25  ;;  %v7183_v29 = vcombine.low %v3247_v5, %v3251_v48 }
 0x1b5   : > { %v6677_v55 = vcombine.low %v6668_v26, %v6675_v28  ;;  %v6684_v50 = vrot.slane %v6676_v13, %v10837_v35  ;;  %v7184_v30 = vcombine.low %v3255_v19, %v3259_v7  ;;  %v7185_v31 = vcombine.low %v3263_v36, %v3267_v33 }
 0x1b6   : > { %9536 = vperm.xlu0 %10413, %v7133_v34   ;;  %v7186_v27 = vcombine.low %v3271_v63, %v3275_v11  ;;  %v7193_v3 = vrot.slane %v7183_v29, %v10837_v35  ;;  %v2959_v44 = vrot.slane %v11589_v40, %v10797_v14  ;;  %v2963_v1 = vrot.slane %v11589_v40, %v10800_v15  ;;  %v11738_v11 = vpop.xlane.xlu0 %1428 }
 0x1b7   : > { %v6691_v41 = vrot.slane %v6677_v55, %v10837_v35  ;;  %v7200_v16 = vrot.slane %v7184_v30, %v10837_v35  ;;  %v7207_v38 = vrot.slane %v7185_v31, %v10837_v35  ;;  %v2967_v9 = vrot.slane %v11589_v40, %v10803_v18 }
 0x1b8   : > { %v7214_v45 = vrot.slane %v7186_v27, %v10837_v35  ;;  %v2971_v17 = vrot.slane %v11589_v40, %v10806_v21  ;;  %v2975_v2 = vrot.slane %v11589_v40, %v10809_v24  ;;  %v2979_v56 = vrot.slane %v11589_v40, %v10812_v22 }
 0x1b9   : > { %v6692_v43 = vcombine.low %v6684_v50, %v6691_v41  ;;  %v7215_v53 = vcombine.low %v7193_v3, %v7200_v16  ;;  %v2983_v4 = vrot.slane %v11589_v40, %v10815_v23  ;;  %v2987_v10 = vrot.slane %v11589_v40, %v10818_v25 }
 0x1ba   : > { %v7216_v39 = vcombine.low %v7207_v38, %v7214_v45  ;;  %v6742_v49 = vcombine.low %v2959_v44, %v2963_v1  ;;  %v6743_v57 = vcombine.low %v2967_v9, %v2971_v17  ;;  %v6744_v52 = vcombine.low %v2975_v2, %v2979_v56 }
 0x1bb   : > { %9509 = vperm.xlu1 %10414, %v6692_v43   ;;  %v7223_v0 = vrot.slane %v7215_v53, %v10837_v35  ;;  %v6745_v5 = vcombine.low %v2983_v4, %v2987_v10  ;;  %v3311_v6 = vrot.slane %v11552_v46, %v10797_v14  ;;  %v3315_v8 = vrot.slane %v11552_v46, %v10800_v15 }
 0x1bc   : > { %v7230_v48 = vrot.slane %v7216_v39, %v10837_v35  ;;  %v6752_v40 = vrot.slane %v6742_v49, %v10837_v35  ;;  %v6759_v59 = vrot.slane %v6743_v57, %v10837_v35  ;;  %v6766_v26 = vrot.slane %v6744_v52, %v10837_v35  ;;  %v11766_v52 = vpop.xlane.xlu0 %1432 }
 0x1bd   : > { %v6773_v19 = vrot.slane %v6745_v5, %v10837_v35  ;;  %v3319_v7 = vrot.slane %v11552_v46, %v10803_v18  ;;  %v3323_v28 = vrot.slane %v11552_v46, %v10806_v21  ;;  %v3327_v13 = vrot.slane %v11552_v46, %v10809_v24 }
 0x1be   : > { %v7231_v36 = vcombine.low %v7223_v0, %v7230_v48  ;;  %v6774_v33 = vcombine.low %v6752_v40, %v6759_v59  ;;  %v3331_v34 = vrot.slane %v11552_v46, %v10812_v22  ;;  %v3335_v63 = vrot.slane %v11552_v46, %v10815_v23 }
 0x1bf   : > { %v6775_v29 = vcombine.low %v6766_v26, %v6773_v19  ;;  %v3339_v55 = vrot.slane %v11552_v46, %v10818_v25  ;;  %v7281_v50 = vcombine.low %v3311_v6, %v3315_v8  ;;  %v7282_v30 = vcombine.low %v3319_v7, %v3323_v28  ;;  %v11750_v46 = vpop.xlane.xlu1 %1458 }
 0x1c0   : > { %9542 = vperm.xlu0 %10413, %v7231_v36   ;;  %v6782_v31 = vrot.slane %v6774_v33, %v10837_v35  ;;  %v7283_v27 = vcombine.low %v3327_v13, %v3331_v34  ;;  %v3023_v3 = vrot.slane %v11619_v20, %v10797_v14  ;;  %v3027_v44 = vrot.slane %v11619_v20, %v10800_v15 }
 0x1c1   : > { %v6789_v1 = vrot.slane %v6775_v29, %v10837_v35  ;;  %v7284_v41 = vcombine.low %v3335_v63, %v3339_v55  ;;  %v7291_v16 = vrot.slane %v7281_v50, %v10837_v35  ;;  %v7298_v38 = vrot.slane %v7282_v30, %v10837_v35 }
 0x1c2   : > { %v7305_v9 = vrot.slane %v7283_v27, %v10837_v35  ;;  %v3031_v45 = vrot.slane %v11619_v20, %v10803_v18  ;;  %v3035_v17 = vrot.slane %v11619_v20, %v10806_v21  ;;  %v3039_v2 = vrot.slane %v11619_v20, %v10809_v24 }
 0x1c3   : > { %v6790_v56 = vcombine.low %v6782_v31, %v6789_v1  ;;  %v7312_v43 = vrot.slane %v7284_v41, %v10837_v35  ;;  %v7313_v53 = vcombine.low %v7291_v16, %v7298_v38  ;;  %v3043_v4 = vrot.slane %v11619_v20, %v10812_v22  ;;  %v11781_v13 = vpop.xlane.xlu1 %1462  ;;  %v11793_v1 = vpop.xlane.xlu0 %1436 }
 0x1c4   : > { %v3047_v10 = vrot.slane %v11619_v20, %v10815_v23  ;;  %v3051_v39 = vrot.slane %v11619_v20, %v10818_v25  ;;  %v6840_v49 = vcombine.low %v3023_v3, %v3027_v44  ;;  %v6841_v57 = vcombine.low %v3031_v45, %v3035_v17 }
 0x1c5   : > { %9515 = vperm.xlu1 %10414, %v6790_v56   ;;  %v7314_v0 = vcombine.low %v7305_v9, %v7312_v43  ;;  %v7321_v5 = vrot.slane %v7313_v53, %v10837_v35  ;;  %v6842_v6 = vcombine.low %v3039_v2, %v3043_v4  ;;  %v3375_v8 = vrot.slane %v11577_v42, %v10797_v14 }
 0x1c6   : > { %v6843_v48 = vcombine.low %v3047_v10, %v3051_v39  ;;  %v6850_v40 = vrot.slane %v6840_v49, %v10837_v35  ;;  %v6857_v59 = vrot.slane %v6841_v57, %v10837_v35  ;;  %v3379_v20 = vrot.slane %v11577_v42, %v10800_v15 }
 0x1c7   : > { %v7328_v26 = vrot.slane %v7314_v0, %v10837_v35  ;;  %v6864_v19 = vrot.slane %v6842_v6, %v10837_v35  ;;  %v3383_v7 = vrot.slane %v11577_v42, %v10803_v18  ;;  %v3387_v28 = vrot.slane %v11577_v42, %v10806_v21  ;;  %v11812_v10 = vpop.xlane.xlu1 %1466 }
 0x1c8   : > { %v6871_v36 = vrot.slane %v6843_v48, %v10837_v35  ;;  %v6872_v33 = vcombine.low %v6850_v40, %v6857_v59  ;;  %v3391_v34 = vrot.slane %v11577_v42, %v10809_v24  ;;  %v3395_v63 = vrot.slane %v11577_v42, %v10812_v22 }
 0x1c9   : > { %v7329_v29 = vcombine.low %v7321_v5, %v7328_v26  ;;  %v3399_v55 = vrot.slane %v11577_v42, %v10815_v23  ;;  %v3403_v50 = vrot.slane %v11577_v42, %v10818_v25  ;;  %v7379_v30 = vcombine.low %v3375_v8, %v3379_v20 }
 0x1ca   : > { %v6873_v31 = vcombine.low %v6864_v19, %v6871_v36  ;;  %v6880_v27 = vrot.slane %v6872_v33, %v10837_v35  ;;  %v7380_v3 = vcombine.low %v3383_v7, %v3387_v28  ;;  %v7381_v44 = vcombine.low %v3391_v34, %v3395_v63  ;;  %v11823_v19 = vpop.xlane.xlu0 %1440 }
 0x1cb   : > { %9548 = vperm.xlu0 %10413, %v7329_v29   ;;  %v7382_v41 = vcombine.low %v3399_v55, %v3403_v50  ;;  %v7389_v16 = vrot.slane %v7379_v30, %v10837_v35  ;;  %v3087_v38 = vrot.slane %v11648_v61, %v10797_v14  ;;  %v3091_v9 = vrot.slane %v11648_v61, %v10800_v15 }
 0x1cc   : > { %v6887_v42 = vrot.slane %v6873_v31, %v10837_v35  ;;  %v7396_v45 = vrot.slane %v7380_v3, %v10837_v35  ;;  %v7403_v17 = vrot.slane %v7381_v44, %v10837_v35  ;;  %v3095_v2 = vrot.slane %v11648_v61, %v10803_v18 }
 0x1cd   : > { %v7410_v56 = vrot.slane %v7382_v41, %v10837_v35  ;;  %v3099_v43 = vrot.slane %v11648_v61, %v10806_v21  ;;  %v3103_v53 = vrot.slane %v11648_v61, %v10809_v24  ;;  %v3107_v4 = vrot.slane %v11648_v61, %v10812_v22 }
 0x1ce   : > { %v6888_v39 = vcombine.low %v6880_v27, %v6887_v42  ;;  %v7411_v49 = vcombine.low %v7389_v16, %v7396_v45  ;;  %v3111_v57 = vrot.slane %v11648_v61, %v10815_v23  ;;  %v3115_v0 = vrot.slane %v11648_v61, %v10818_v25  ;;  %v11840_v27 = vpop.xlane.xlu1 %1470 }
 0x1cf   : > { %v7412_v5 = vcombine.low %v7403_v17, %v7410_v56  ;;  %v6938_v6 = vcombine.low %v3087_v38, %v3091_v9  ;;  %v6939_v8 = vcombine.low %v3095_v2, %v3099_v43  ;;  %v6940_v48 = vcombine.low %v3103_v53, %v3107_v4 }
 0x1d0   : > { %9521 = vperm.xlu1 %10414, %v6888_v39   ;;  %v7419_v40 = vrot.slane %v7411_v49, %v10837_v35  ;;  %v6941_v59 = vcombine.low %v3111_v57, %v3115_v0  ;;  %v3439_v20 = vrot.slane %v11608_v32, %v10797_v14  ;;  %v3443_v26 = vrot.slane %v11608_v32, %v10800_v15 }
 0x1d1   : > { %v7426_v7 = vrot.slane %v7412_v5, %v10837_v35  ;;  %v6948_v61 = vrot.slane %v6938_v6, %v10837_v35  ;;  %v6955_v28 = vrot.slane %v6939_v8, %v10837_v35  ;;  %v6962_v36 = vrot.slane %v6940_v48, %v10837_v35 }
 0x1d2   : > { %v6969_v33 = vrot.slane %v6941_v59, %v10837_v35  ;;  %v3447_v34 = vrot.slane %v11608_v32, %v10803_v18  ;;  %v3451_v63 = vrot.slane %v11608_v32, %v10806_v21  ;;  %v3455_v29 = vrot.slane %v11608_v32, %v10809_v24 }
 0x1d3   : > { %v7427_v55 = vcombine.low %v7419_v40, %v7426_v7  ;;  %v6970_v50 = vcombine.low %v6948_v61, %v6955_v28  ;;  %v3459_v30 = vrot.slane %v11608_v32, %v10812_v22  ;;  %v3463_v31 = vrot.slane %v11608_v32, %v10815_v23 }
 0x1d4   : > { %v6971_v3 = vcombine.low %v6962_v36, %v6969_v33  ;;  %v3467_v44 = vrot.slane %v11608_v32, %v10818_v25  ;;  %v7477_v41 = vcombine.low %v3439_v20, %v3443_v26  ;;  %v7478_v16 = vcombine.low %v3447_v34, %v3451_v63  ;;  %v11852_v32 = vpop.xlane.xlu0 %1444  ;;  %v11868_v20 = vpop.xlane.xlu1 %1474 }
 0x1d5   : > { %9554 = vperm.xlu0 %10413, %v7427_v55   ;;  %v6978_v38 = vrot.slane %v6970_v50, %v10837_v35  ;;  %v7479_v9 = vcombine.low %v3455_v29, %v3459_v30  ;;  %v3151_v42 = vrot.slane %v11679_v60, %v10797_v14  ;;  %v3155_v45 = vrot.slane %v11679_v60, %v10800_v15 }
 0x1d6   : > { %v6985_v17 = vrot.slane %v6971_v3, %v10837_v35  ;;  %v7480_v2 = vcombine.low %v3463_v31, %v3467_v44  ;;  %v7487_v56 = vrot.slane %v7477_v41, %v10837_v35  ;;  %v7494_v43 = vrot.slane %v7478_v16, %v10837_v35 }
 0x1d7   : > { %v7501_v53 = vrot.slane %v7479_v9, %v10837_v35  ;;  %v3159_v4 = vrot.slane %v11679_v60, %v10803_v18  ;;  %v3163_v39 = vrot.slane %v11679_v60, %v10806_v21  ;;  %v3167_v49 = vrot.slane %v11679_v60, %v10809_v24 }
 0x1d8   : > { %v6986_v57 = vcombine.low %v6978_v38, %v6985_v17  ;;  %v7508_v0 = vrot.slane %v7480_v2, %v10837_v35  ;;  %v7509_v5 = vcombine.low %v7487_v56, %v7494_v43  ;;  %v3171_v6 = vrot.slane %v11679_v60, %v10812_v22  ;;  %v11883_v30 = vpop.xlane.xlu0 %1448  ;;  %v11895_v43 = vpop.xlane.xlu1 %1478 }
 0x1d9   : > { %v3175_v8 = vrot.slane %v11679_v60, %v10815_v23  ;;  %v3179_v48 = vrot.slane %v11679_v60, %v10818_v25  ;;  %v7036_v40 = vcombine.low %v3151_v42, %v3155_v45  ;;  %v7037_v59 = vcombine.low %v3159_v4, %v3163_v39 }
 0x1da   : > { %9527 = vperm.xlu1 %10414, %v6986_v57   ;;  %v7510_v26 = vcombine.low %v7501_v53, %v7508_v0  ;;  %v7517_v7 = vrot.slane %v7509_v5, %v10837_v35  ;;  %v7038_v61 = vcombine.low %v3167_v49, %v3171_v6  ;;  %v3503_v28 = vrot.slane %v11636_v12, %v10797_v14 }
 0x1db   : > { %v7039_v36 = vcombine.low %v3175_v8, %v3179_v48  ;;  %v7046_v33 = vrot.slane %v7036_v40, %v10837_v35  ;;  %v7053_v34 = vrot.slane %v7037_v59, %v10837_v35  ;;  %v3507_v60 = vrot.slane %v11636_v12, %v10800_v15 }
 0x1dc   : > { %v7524_v63 = vrot.slane %v7510_v26, %v10837_v35  ;;  %v7060_v29 = vrot.slane %v7038_v61, %v10837_v35  ;;  %v3511_v55 = vrot.slane %v11636_v12, %v10803_v18  ;;  %v3515_v50 = vrot.slane %v11636_v12, %v10806_v21  ;;  %v11914_v59 = vpop.xlane.xlu0 %1452 }
 0x1dd   : > { %v7067_v31 = vrot.slane %v7039_v36, %v10837_v35  ;;  %v7068_v3 = vcombine.low %v7046_v33, %v7053_v34  ;;  %v3519_v44 = vrot.slane %v11636_v12, %v10809_v24  ;;  %v3523_v41 = vrot.slane %v11636_v12, %v10812_v22 }
 0x1de   : > { %v7525_v16 = vcombine.low %v7517_v7, %v7524_v63  ;;  %v3527_v38 = vrot.slane %v11636_v12, %v10815_v23  ;;  %v3531_v9 = vrot.slane %v11636_v12, %v10818_v25  ;;  %v7575_v42 = vcombine.low %v3503_v28, %v3507_v60 }
 0x1df   : > { %v7069_v45 = vcombine.low %v7060_v29, %v7067_v31  ;;  %v7076_v17 = vrot.slane %v7068_v3, %v10837_v35  ;;  %v7576_v2 = vcombine.low %v3511_v55, %v3515_v50  ;;  %v7577_v56 = vcombine.low %v3519_v44, %v3523_v41  ;;  %v11925_v31 = vpop.xlane.xlu1 %1482 }
 0x1e0   : > { %9560 = vperm.xlu0 %10413, %v7525_v16   ;;  %v7578_v53 = vcombine.low %v3527_v38, %v3531_v9  ;;  %v7585_v4 = vrot.slane %v7575_v42, %v10837_v35  ;;  %v3215_v39 = vrot.slane %v11710_v54, %v10797_v14  ;;  %v3219_v49 = vrot.slane %v11710_v54, %v10800_v15 }
 0x1e1   : > { %v7083_v12 = vrot.slane %v7069_v45, %v10837_v35  ;;  %v7592_v57 = vrot.slane %v7576_v2, %v10837_v35  ;;  %v7599_v0 = vrot.slane %v7577_v56, %v10837_v35  ;;  %v3223_v5 = vrot.slane %v11710_v54, %v10803_v18 }
 0x1e2   : > { %v7606_v6 = vrot.slane %v7578_v53, %v10837_v35  ;;  %v3227_v8 = vrot.slane %v11710_v54, %v10806_v21  ;;  %v3231_v48 = vrot.slane %v11710_v54, %v10809_v24  ;;  %v3235_v40 = vrot.slane %v11710_v54, %v10812_v22  ;;  %v11942_v53 = vpop.xlane.xlu0 %1456 }
 0x1e3   : > { %v7084_v26 = vcombine.low %v7076_v17, %v7083_v12  ;;  %v7607_v7 = vcombine.low %v7585_v4, %v7592_v57  ;;  %v3239_v61 = vrot.slane %v11710_v54, %v10815_v23  ;;  %v3243_v28 = vrot.slane %v11710_v54, %v10818_v25 }
 0x1e4   : > { %v7608_v36 = vcombine.low %v7599_v0, %v7606_v6  ;;  %v7134_v33 = vcombine.low %v3215_v39, %v3219_v49  ;;  %v7135_v34 = vcombine.low %v3223_v5, %v3227_v8  ;;  %v7136_v60 = vcombine.low %v3231_v48, %v3235_v40 }
 0x1e5   : > { %9533 = vperm.xlu1 %10414, %v7084_v26   ;;  %v7615_v63 = vrot.slane %v7607_v7, %v10837_v35  ;;  %v7137_v29 = vcombine.low %v3239_v61, %v3243_v28  ;;  %v3567_v55 = vrot.slane %v11664_v47, %v10797_v14  ;;  %v3571_v50 = vrot.slane %v11664_v47, %v10800_v15 }
 0x1e6   : > { %v7622_v3 = vrot.slane %v7608_v36, %v10837_v35  ;;  %v7144_v54 = vrot.slane %v7134_v33, %v10837_v35  ;;  %v7151_v44 = vrot.slane %v7135_v34, %v10837_v35  ;;  %v7158_v41 = vrot.slane %v7136_v60, %v10837_v35 }
 0x1e7   : > { %v7165_v16 = vrot.slane %v7137_v29, %v10837_v35  ;;  %v3575_v38 = vrot.slane %v11664_v47, %v10803_v18  ;;  %v3579_v9 = vrot.slane %v11664_v47, %v10806_v21  ;;  %v3583_v42 = vrot.slane %v11664_v47, %v10809_v24 }
 0x1e8   : > { %v7623_v45 = vcombine.low %v7615_v63, %v7622_v3  ;;  %v7166_v17 = vcombine.low %v7144_v54, %v7151_v44  ;;  %v3587_v2 = vrot.slane %v11664_v47, %v10812_v22  ;;  %v3591_v56 = vrot.slane %v11664_v47, %v10815_v23  ;;  %v11970_v54 = vpop.xlane.xlu0 %1460 }
 0x1e9   : > { %v7167_v4 = vcombine.low %v7158_v41, %v7165_v16  ;;  %v3595_v39 = vrot.slane %v11664_v47, %v10818_v25  ;;  %v7673_v49 = vcombine.low %v3567_v55, %v3571_v50  ;;  %v7674_v12 = vcombine.low %v3575_v38, %v3579_v9  ;;  %v11954_v47 = vpop.xlane.xlu1 %1486 }
 0x1ea   : > { %9566 = vperm.xlu0 %10413, %v7623_v45   ;;  %v7174_v57 = vrot.slane %v7166_v17, %v10837_v35  ;;  %v7675_v0 = vcombine.low %v3583_v42, %v3587_v2  ;;  %v3279_v5 = vrot.slane %v11738_v11, %v10797_v14  ;;  %v3283_v6 = vrot.slane %v11738_v11, %v10800_v15 }
 0x1eb   : > { %v7181_v8 = vrot.slane %v7167_v4, %v10837_v35  ;;  %v7676_v48 = vcombine.low %v3591_v56, %v3595_v39  ;;  %v7683_v40 = vrot.slane %v7673_v49, %v10837_v35  ;;  %v7690_v26 = vrot.slane %v7674_v12, %v10837_v35 }
 0x1ec   : > { %v7697_v7 = vrot.slane %v7675_v0, %v10837_v35  ;;  %v3287_v61 = vrot.slane %v11738_v11, %v10803_v18  ;;  %v3291_v28 = vrot.slane %v11738_v11, %v10806_v21  ;;  %v3295_v36 = vrot.slane %v11738_v11, %v10809_v24 }
 0x1ed   : > { %v7182_v33 = vcombine.low %v7174_v57, %v7181_v8  ;;  %v7704_v34 = vrot.slane %v7676_v48, %v10837_v35  ;;  %v7705_v60 = vcombine.low %v7683_v40, %v7690_v26  ;;  %v3299_v63 = vrot.slane %v11738_v11, %v10812_v22  ;;  %v11985_v39 = vpop.xlane.xlu1 %1490 }
 0x1ee   : > { %v3303_v29 = vrot.slane %v11738_v11, %v10815_v23  ;;  %v3307_v55 = vrot.slane %v11738_v11, %v10818_v25  ;;  %v7232_v50 = vcombine.low %v3279_v5, %v3283_v6  ;;  %v7233_v3 = vcombine.low %v3287_v61, %v3291_v28  ;;  %v11997_v28 = vpop.xlane.xlu0 %1464 }
 0x1ef   : > { %9539 = vperm.xlu1 %10414, %v7182_v33   ;;  %v7706_v44 = vcombine.low %v7697_v7, %v7704_v34  ;;  %v7713_v41 = vrot.slane %v7705_v60, %v10837_v35  ;;  %v7234_v16 = vcombine.low %v3295_v36, %v3299_v63  ;;  %v3631_v38 = vrot.slane %v11691_v51, %v10797_v14 }
 0x1f0   : > { %v7235_v9 = vcombine.low %v3303_v29, %v3307_v55  ;;  %v7242_v42 = vrot.slane %v7232_v50, %v10837_v35  ;;  %v7249_v45 = vrot.slane %v7233_v3, %v10837_v35  ;;  %v3635_v11 = vrot.slane %v11691_v51, %v10800_v15 }
 0x1f1   : > { %v7720_v17 = vrot.slane %v7706_v44, %v10837_v35  ;;  %v7256_v2 = vrot.slane %v7234_v16, %v10837_v35  ;;  %v3639_v56 = vrot.slane %v11691_v51, %v10803_v18  ;;  %v3643_v4 = vrot.slane %v11691_v51, %v10806_v21  ;;  %v12016_v16 = vpop.xlane.xlu1 %1494 }
 0x1f2   : > { %v7263_v49 = vrot.slane %v7235_v9, %v10837_v35  ;;  %v7264_v12 = vcombine.low %v7242_v42, %v7249_v45  ;;  %v3647_v57 = vrot.slane %v11691_v51, %v10809_v24  ;;  %v3651_v0 = vrot.slane %v11691_v51, %v10812_v22 }
 0x1f3   : > { %v7721_v5 = vcombine.low %v7713_v41, %v7720_v17  ;;  %v3655_v6 = vrot.slane %v11691_v51, %v10815_v23  ;;  %v3659_v8 = vrot.slane %v11691_v51, %v10818_v25  ;;  %v7771_v48 = vcombine.low %v3631_v38, %v3635_v11 }
 0x1f4   : > { %v7265_v40 = vcombine.low %v7256_v2, %v7263_v49  ;;  %v7272_v26 = vrot.slane %v7264_v12, %v10837_v35  ;;  %v7772_v7 = vcombine.low %v3639_v56, %v3643_v4  ;;  %v7773_v61 = vcombine.low %v3647_v57, %v3651_v0  ;;  %v12027_v0 = vpop.xlane.xlu0 %1468 }
 0x1f5   : > { %9572 = vperm.xlu0 %10413, %v7721_v5   ;;  %v7774_v36 = vcombine.low %v3655_v6, %v3659_v8  ;;  %v7781_v33 = vrot.slane %v7771_v48, %v10837_v35  ;;  %v3343_v34 = vrot.slane %v11766_v52, %v10797_v14  ;;  %v3347_v60 = vrot.slane %v11766_v52, %v10800_v15 }
 0x1f6   : > { %v7279_v51 = vrot.slane %v7265_v40, %v10837_v35  ;;  %v7788_v63 = vrot.slane %v7772_v7, %v10837_v35  ;;  %v7795_v29 = vrot.slane %v7773_v61, %v10837_v35  ;;  %v3351_v55 = vrot.slane %v11766_v52, %v10803_v18 }
 0x1f7   : > { %v7802_v50 = vrot.slane %v7774_v36, %v10837_v35  ;;  %v3355_v3 = vrot.slane %v11766_v52, %v10806_v21  ;;  %v3359_v44 = vrot.slane %v11766_v52, %v10809_v24  ;;  %v3363_v41 = vrot.slane %v11766_v52, %v10812_v22 }
 0x1f8   : > { %v7280_v38 = vcombine.low %v7272_v26, %v7279_v51  ;;  %v7803_v9 = vcombine.low %v7781_v33, %v7788_v63  ;;  %v3367_v42 = vrot.slane %v11766_v52, %v10815_v23  ;;  %v3371_v45 = vrot.slane %v11766_v52, %v10818_v25 }
 0x1f9   : > { %v7804_v11 = vcombine.low %v7795_v29, %v7802_v50  ;;  %v7330_v17 = vcombine.low %v3343_v34, %v3347_v60  ;;  %v7331_v2 = vcombine.low %v3351_v55, %v3355_v3  ;;  %v7332_v56 = vcombine.low %v3359_v44, %v3363_v41  ;;  %v12044_v60 = vpop.xlane.xlu1 %1498 }
 0x1fa   : > { %9545 = vperm.xlu1 %10414, %v7280_v38   ;;  %v7811_v4 = vrot.slane %v7803_v9, %v10837_v35  ;;  %v7333_v49 = vcombine.low %v3367_v42, %v3371_v45  ;;  %v3695_v12 = vrot.slane %v11721_v62, %v10797_v14  ;;  %v3699_v57 = vrot.slane %v11721_v62, %v10800_v15  ;;  %v12054_v45 = vpop.xlane.xlu0 %1472 }
 0x1fb   : > { %v7818_v5 = vrot.slane %v7804_v11, %v10837_v35  ;;  %v7340_v52 = vrot.slane %v7330_v17, %v10837_v35  ;;  %v7347_v6 = vrot.slane %v7331_v2, %v10837_v35  ;;  %v7354_v8 = vrot.slane %v7332_v56, %v10837_v35 }
 0x1fc   : > { %v7361_v48 = vrot.slane %v7333_v49, %v10837_v35  ;;  %v3703_v40 = vrot.slane %v11721_v62, %v10803_v18  ;;  %v3707_v26 = vrot.slane %v11721_v62, %v10806_v21  ;;  %v3711_v7 = vrot.slane %v11721_v62, %v10809_v24 }
 0x1fd   : > { %v7819_v61 = vcombine.low %v7811_v4, %v7818_v5  ;;  %v7362_v36 = vcombine.low %v7340_v52, %v7347_v6  ;;  %v3715_v33 = vrot.slane %v11721_v62, %v10812_v22  ;;  %v3719_v34 = vrot.slane %v11721_v62, %v10815_v23  ;;  %v12070_v52 = vpop.xlane.xlu1 %1502 }
 0x1fe   : > { %v7363_v51 = vcombine.low %v7354_v8, %v7361_v48  ;;  %v3723_v63 = vrot.slane %v11721_v62, %v10818_v25  ;;  %v7869_v29 = vcombine.low %v3695_v12, %v3699_v57  ;;  %v7870_v55 = vcombine.low %v3703_v40, %v3707_v26 }
 0x1ff   : > { %9578 = vperm.xlu0 %10413, %v7819_v61   ;;  %v7370_v50 = vrot.slane %v7362_v36, %v10837_v35  ;;  %v7871_v3 = vcombine.low %v3711_v7, %v3715_v33  ;;  %v3407_v44 = vrot.slane %v11793_v1, %v10797_v14  ;;  %v3411_v11 = vrot.slane %v11793_v1, %v10800_v15 }
 0x200   : > { %v7377_v41 = vrot.slane %v7363_v51, %v10837_v35  ;;  %v7872_v38 = vcombine.low %v3719_v34, %v3723_v63  ;;  %v7879_v9 = vrot.slane %v7869_v29, %v10837_v35  ;;  %v7886_v42 = vrot.slane %v7870_v55, %v10837_v35  ;;  %v12081_v63 = vpop.xlane.xlu0 %1476 }
 0x201   : > { %v7893_v62 = vrot.slane %v7871_v3, %v10837_v35  ;;  %v3415_v17 = vrot.slane %v11793_v1, %v10803_v18  ;;  %v3419_v49 = vrot.slane %v11793_v1, %v10806_v21  ;;  %v3423_v12 = vrot.slane %v11793_v1, %v10809_v24 }
 0x202   : > { %v7378_v2 = vcombine.low %v7370_v50, %v7377_v41  ;;  %v7900_v56 = vrot.slane %v7872_v38, %v10837_v35  ;;  %v7901_v4 = vcombine.low %v7879_v9, %v7886_v42  ;;  %v3427_v57 = vrot.slane %v11793_v1, %v10812_v22 }
 0x203   : > { %v3431_v5 = vrot.slane %v11793_v1, %v10815_v23  ;;  %v3435_v48 = vrot.slane %v11793_v1, %v10818_v25  ;;  %v7428_v40 = vcombine.low %v3407_v44, %v3411_v11  ;;  %v7429_v26 = vcombine.low %v3415_v17, %v3419_v49  ;;  %v12098_v17 = vpop.xlane.xlu1 %1506 }
 0x204   : > { %9551 = vperm.xlu1 %10414, %v7378_v2   ;;  %v7902_v6 = vcombine.low %v7893_v62, %v7900_v56  ;;  %v7909_v8 = vrot.slane %v7901_v4, %v10837_v35  ;;  %v7430_v7 = vcombine.low %v3423_v12, %v3427_v57  ;;  %v3759_v61 = vrot.slane %v11750_v46, %v10797_v14 }
 0x205   : > { %v7431_v33 = vcombine.low %v3431_v5, %v3435_v48  ;;  %v7438_v34 = vrot.slane %v7428_v40, %v10837_v35  ;;  %v3763_v51 = vrot.slane %v11750_v46, %v10800_v15  ;;  %v7445_v29 = vrot.slane %v7429_v26, %v10837_v35  ;;  %v12107_v48 = vpop.xlane.xlu0 %1480 }
 0x206   : > { %v7916_v36 = vrot.slane %v7902_v6, %v10837_v35  ;;  %v7452_v1 = vrot.slane %v7430_v7, %v10837_v35  ;;  %v3767_v55 = vrot.slane %v11750_v46, %v10803_v18  ;;  %v3771_v50 = vrot.slane %v11750_v46, %v10806_v21 }
 0x207   : > { %v7459_v44 = vrot.slane %v7431_v33, %v10837_v35  ;;  %v3775_v41 = vrot.slane %v11750_v46, %v10809_v24  ;;  %v3779_v38 = vrot.slane %v11750_v46, %v10812_v22  ;;  %v7460_v9 = vcombine.low %v7438_v34, %v7445_v29 }
 0x208   : > { %v7917_v3 = vcombine.low %v7909_v8, %v7916_v36  ;;  %v3783_v42 = vrot.slane %v11750_v46, %v10815_v23  ;;  %v3787_v62 = vrot.slane %v11750_v46, %v10818_v25  ;;  %v7967_v11 = vcombine.low %v3759_v61, %v3763_v51 }
 0x209   : > { %v7461_v2 = vcombine.low %v7452_v1, %v7459_v44  ;;  %v7968_v56 = vcombine.low %v3767_v55, %v3771_v50  ;;  %v7969_v4 = vcombine.low %v3775_v41, %v3779_v38  ;;  %v7468_v49 = vrot.slane %v7460_v9, %v10837_v35  ;;  %v12124_v50 = vpop.xlane.xlu1 %1510 }
 0x20a   : > { %9584 = vperm.xlu0 %10413, %v7917_v3   ;;  %v7970_v12 = vcombine.low %v3783_v42, %v3787_v62  ;;  %v7977_v57 = vrot.slane %v7967_v11, %v10837_v35  ;;  %v3471_v46 = vrot.slane %v11823_v19, %v10797_v14  ;;  %v3475_v26 = vrot.slane %v11823_v19, %v10800_v15 }
 0x20b   : > { %v7475_v5 = vrot.slane %v7461_v2, %v10837_v35  ;;  %v7984_v6 = vrot.slane %v7968_v56, %v10837_v35  ;;  %v7991_v8 = vrot.slane %v7969_v4, %v10837_v35  ;;  %v3479_v7 = vrot.slane %v11823_v19, %v10803_v18  ;;  %v12132_v56 = vpop.xlane.xlu0 %1484 }
 0x20c   : > { %v7998_v40 = vrot.slane %v7970_v12, %v10837_v35  ;;  %v3483_v61 = vrot.slane %v11823_v19, %v10806_v21  ;;  %v3487_v34 = vrot.slane %v11823_v19, %v10809_v24  ;;  %v3491_v29 = vrot.slane %v11823_v19, %v10812_v22 }
 0x20d   : > { %v7476_v36 = vcombine.low %v7468_v49, %v7475_v5  ;;  %v7999_v33 = vcombine.low %v7977_v57, %v7984_v6  ;;  %v3495_v1 = vrot.slane %v11823_v19, %v10815_v23  ;;  %v3499_v55 = vrot.slane %v11823_v19, %v10818_v25 }
 0x20e   : > { %v8000_v51 = vcombine.low %v7991_v8, %v7998_v40  ;;  %v7526_v44 = vcombine.low %v3471_v46, %v3475_v26  ;;  %v7527_v41 = vcombine.low %v3479_v7, %v3483_v61  ;;  %v7528_v9 = vcombine.low %v3487_v34, %v3491_v29  ;;  %v12148_v7 = vpop.xlane.xlu1 %1514 }
 0x20f   : > { %9557 = vperm.xlu1 %10414, %v7476_v36   ;;  %v8007_v3 = vrot.slane %v7999_v33, %v10837_v35  ;;  %v7529_v42 = vcombine.low %v3495_v1, %v3499_v55  ;;  %v3823_v2 = vrot.slane %v11781_v13, %v10797_v14  ;;  %v3827_v12 = vrot.slane %v11781_v13, %v10800_v15 }
 0x210   : > { %v8014_v38 = vrot.slane %v8000_v51, %v10837_v35  ;;  %v7536_v62 = vrot.slane %v7526_v44, %v10837_v35  ;;  %v7543_v11 = vrot.slane %v7527_v41, %v10837_v35  ;;  %v7550_v4 = vrot.slane %v7528_v9, %v10837_v35  ;;  %v12156_v44 = vpop.xlane.xlu0 %1488 }
 0x211   : > { %v7557_v49 = vrot.slane %v7529_v42, %v10837_v35  ;;  %v3831_v5 = vrot.slane %v11781_v13, %v10803_v18  ;;  %v3835_v6 = vrot.slane %v11781_v13, %v10806_v21  ;;  %v3839_v46 = vrot.slane %v11781_v13, %v10809_v24 }
 0x212   : > { %v8015_v19 = vcombine.low %v8007_v3, %v8014_v38  ;;  %v7558_v57 = vcombine.low %v7536_v62, %v7543_v11  ;;  %v3843_v40 = vrot.slane %v11781_v13, %v10812_v22  ;;  %v3847_v26 = vrot.slane %v11781_v13, %v10815_v23 }
 0x213   : > { %v7559_v8 = vcombine.low %v7550_v4, %v7557_v49  ;;  %v3851_v36 = vrot.slane %v11781_v13, %v10818_v25  ;;  %v8065_v33 = vcombine.low %v3823_v2, %v3827_v12  ;;  %v8066_v34 = vcombine.low %v3831_v5, %v3835_v6  ;;  %v12170_v4 = vpop.permute.xlu1 %9392 }
 0x214   : > { %9590 = vperm.xlu0 %10413, %v8015_v19   ;;  %v7566_v61 = vrot.slane %v7558_v57, %v10837_v35  ;;  %v8067_v29 = vcombine.low %v3839_v46, %v3843_v40  ;;  %v3535_v13 = vrot.slane %v11852_v32, %v10797_v14  ;;  %v3539_v62 = vrot.slane %v11852_v32, %v10800_v15 }
 0x215   : > { %v7573_v51 = vrot.slane %v7559_v8, %v10837_v35  ;;  %v8068_v1 = vcombine.low %v3847_v26, %v3851_v36  ;;  %v8075_v55 = vrot.slane %v8065_v33, %v10837_v35  ;;  %v8082_v3 = vrot.slane %v8066_v34, %v10837_v35  ;;  %v12182_v36 = vpop.xlane.xlu0 %1492 }
 0x216   : > { %v8089_v38 = vrot.slane %v8067_v29, %v10837_v35  ;;  %v3543_v11 = vrot.slane %v11852_v32, %v10803_v18  ;;  %v3547_v2 = vrot.slane %v11852_v32, %v10806_v21  ;;  %v3551_v19 = vrot.slane %v11852_v32, %v10809_v24 }
 0x217   : > { %v7574_v41 = vcombine.low %v7566_v61, %v7573_v51  ;;  %v8096_v9 = vrot.slane %v8068_v1, %v10837_v35  ;;  %v8097_v42 = vcombine.low %v8075_v55, %v8082_v3  ;;  %v3555_v57 = vrot.slane %v11852_v32, %v10812_v22 }
 0x218   : > { %v3559_v5 = vrot.slane %v11852_v32, %v10815_v23  ;;  %v3563_v6 = vrot.slane %v11852_v32, %v10818_v25  ;;  %v7624_v8 = vcombine.low %v3535_v13, %v3539_v62  ;;  %v7625_v46 = vcombine.low %v3543_v11, %v3547_v2 }
 0x219   : > { %9563 = vperm.xlu1 %10414, %v7574_v41   ;;  %v8098_v49 = vcombine.low %v8089_v38, %v8096_v9  ;;  %v8105_v12 = vrot.slane %v8097_v42, %v10837_v35  ;;  %v7626_v26 = vcombine.low %v3551_v19, %v3555_v57  ;;  %v3887_v61 = vrot.slane %v11812_v10, %v10797_v14  ;;  %v12196_v42 = vpop.permute.xlu1 %9395 }
 0x21a   : > { %v7627_v33 = vcombine.low %v3559_v5, %v3563_v6  ;;  %v7634_v34 = vrot.slane %v7624_v8, %v10837_v35  ;;  %v7641_v51 = vrot.slane %v7625_v46, %v10837_v35  ;;  %v3891_v29 = vrot.slane %v11812_v10, %v10800_v15  ;;  %v12205_v6 = vpop.xlane.xlu0 %1496 }
 0x21b   : > { %v8112_v40 = vrot.slane %v8098_v49, %v10837_v35  ;;  %v7648_v32 = vrot.slane %v7626_v26, %v10837_v35  ;;  %v3895_v55 = vrot.slane %v11812_v10, %v10803_v18  ;;  %v3899_v38 = vrot.slane %v11812_v10, %v10806_v21 }
 0x21c   : > { %v7655_v3 = vrot.slane %v7627_v33, %v10837_v35  ;;  %v7656_v41 = vcombine.low %v7634_v34, %v7641_v51  ;;  %v3903_v9 = vrot.slane %v11812_v10, %v10809_v24  ;;  %v3907_v13 = vrot.slane %v11812_v10, %v10812_v22 }
 0x21d   : > { %v8113_v1 = vcombine.low %v8105_v12, %v8112_v40  ;;  %v3911_v62 = vrot.slane %v11812_v10, %v10815_v23  ;;  %v3915_v11 = vrot.slane %v11812_v10, %v10818_v25  ;;  %v8163_v49 = vcombine.low %v3887_v61, %v3891_v29 }
 0x21e   : > { %v7657_v2 = vcombine.low %v7648_v32, %v7655_v3  ;;  %v7664_v19 = vrot.slane %v7656_v41, %v10837_v35  ;;  %v8164_v12 = vcombine.low %v3895_v55, %v3899_v38  ;;  %v8165_v57 = vcombine.low %v3903_v9, %v3907_v13  ;;  %v12220_v32 = vpop.permute.xlu1 %9398 }
 0x21f   : > { %9596 = vperm.xlu0 %10413, %v8113_v1   ;;  %v8166_v5 = vcombine.low %v3911_v62, %v3915_v11  ;;  %v8173_v46 = vrot.slane %v8163_v49, %v10837_v35  ;;  %v3599_v26 = vrot.slane %v11883_v30, %v10797_v14  ;;  %v3603_v61 = vrot.slane %v11883_v30, %v10800_v15  ;;  %v12232_v49 = vpop.xlane.xlu0 %1500 }
 0x220   : > { %v7671_v8 = vrot.slane %v7657_v2, %v10837_v35  ;;  %v8180_v40 = vrot.slane %v8164_v12, %v10837_v35  ;;  %v8187_v10 = vrot.slane %v8165_v57, %v10837_v35  ;;  %v3607_v29 = vrot.slane %v11883_v30, %v10803_v18 }
 0x221   : > { %v8194_v33 = vrot.slane %v8166_v5, %v10837_v35  ;;  %v3611_v1 = vrot.slane %v11883_v30, %v10806_v21  ;;  %v3615_v3 = vrot.slane %v11883_v30, %v10809_v24  ;;  %v3619_v41 = vrot.slane %v11883_v30, %v10812_v22 }
 0x222   : > { %v7672_v34 = vcombine.low %v7664_v19, %v7671_v8  ;;  %v8195_v51 = vcombine.low %v8173_v46, %v8180_v40  ;;  %v3623_v9 = vrot.slane %v11883_v30, %v10815_v23  ;;  %v3627_v13 = vrot.slane %v11883_v30, %v10818_v25 }
 0x223   : > { %v8196_v55 = vcombine.low %v8187_v10, %v8194_v33  ;;  %v7722_v62 = vcombine.low %v3599_v26, %v3603_v61  ;;  %v7723_v2 = vcombine.low %v3607_v29, %v3611_v1  ;;  %v7724_v19 = vcombine.low %v3615_v3, %v3619_v41  ;;  %v12246_v61 = vpop.permute.xlu1 %9401 }
 0x224   : > { %9569 = vperm.xlu1 %10414, %v7672_v34   ;;  %v8203_v38 = vrot.slane %v8195_v51, %v10837_v35  ;;  %v7725_v12 = vcombine.low %v3623_v9, %v3627_v13  ;;  %v3951_v5 = vrot.slane %v11840_v27, %v10797_v14  ;;  %v3955_v30 = vrot.slane %v11840_v27, %v10800_v15 }
 0x225   : > { %v8210_v11 = vrot.slane %v8196_v55, %v10837_v35  ;;  %v7732_v57 = vrot.slane %v7722_v62, %v10837_v35  ;;  %v7739_v46 = vrot.slane %v7723_v2, %v10837_v35  ;;  %v7746_v40 = vrot.slane %v7724_v19, %v10837_v35  ;;  %v12257_v62 = vpop.xlane.xlu0 %1504 }
 0x226   : > { %v7753_v26 = vrot.slane %v7725_v12, %v10837_v35  ;;  %v3959_v10 = vrot.slane %v11840_v27, %v10803_v18  ;;  %v3963_v33 = vrot.slane %v11840_v27, %v10806_v21  ;;  %v3967_v51 = vrot.slane %v11840_v27, %v10809_v24 }
 0x227   : > { %v8211_v8 = vcombine.low %v8203_v38, %v8210_v11  ;;  %v7754_v34 = vcombine.low %v7732_v57, %v7739_v46  ;;  %v3971_v29 = vrot.slane %v11840_v27, %v10812_v22  ;;  %v3975_v1 = vrot.slane %v11840_v27, %v10815_v23 }
 0x228   : > { %v7755_v55 = vcombine.low %v7746_v40, %v7753_v26  ;;  %v3979_v3 = vrot.slane %v11840_v27, %v10818_v25  ;;  %v8261_v41 = vcombine.low %v3951_v5, %v3955_v30  ;;  %v8262_v9 = vcombine.low %v3959_v10, %v3963_v33  ;;  %v12270_v26 = vpop.permute.xlu1 %9404 }
 0x229   : > { %9602 = vperm.xlu0 %10413, %v8211_v8   ;;  %v7762_v38 = vrot.slane %v7754_v34, %v10837_v35  ;;  %v8263_v13 = vcombine.low %v3967_v51, %v3971_v29  ;;  %v3663_v8 = vrot.slane %v11914_v59, %v10797_v14  ;;  %v3667_v46 = vrot.slane %v11914_v59, %v10800_v15 }
 0x22a   : > { %v7769_v11 = vrot.slane %v7755_v55, %v10837_v35  ;;  %v8264_v2 = vcombine.low %v3975_v1, %v3979_v3  ;;  %v8271_v19 = vrot.slane %v8261_v41, %v10837_v35  ;;  %v8278_v12 = vrot.slane %v8262_v9, %v10837_v35 }
 0x22b   : > { %v8285_v57 = vrot.slane %v8263_v13, %v10837_v35  ;;  %v3671_v40 = vrot.slane %v11914_v59, %v10803_v18  ;;  %v3675_v10 = vrot.slane %v11914_v59, %v10806_v21  ;;  %v3679_v33 = vrot.slane %v11914_v59, %v10809_v24 }
 0x22c   : > { %v7770_v27 = vcombine.low %v7762_v38, %v7769_v11  ;;  %v8292_v5 = vrot.slane %v8264_v2, %v10837_v35  ;;  %v8293_v30 = vcombine.low %v8271_v19, %v8278_v12  ;;  %v3683_v51 = vrot.slane %v11914_v59, %v10812_v22  ;;  %v12283_v38 = vpop.xlane.xlu0 %1508 }
 0x22d   : > { %v3687_v29 = vrot.slane %v11914_v59, %v10815_v23  ;;  %v3691_v1 = vrot.slane %v11914_v59, %v10818_v25  ;;  %v7820_v3 = vcombine.low %v3663_v8, %v3667_v46  ;;  %v7821_v41 = vcombine.low %v3671_v40, %v3675_v10  ;;  %v12300_v10 = vpop.permute.xlu1 %9407 }
 0x22e   : > { %9575 = vperm.xlu1 %10414, %v7770_v27   ;;  %v8294_v34 = vcombine.low %v8285_v57, %v8292_v5  ;;  %v8301_v55 = vrot.slane %v8293_v30, %v10837_v35  ;;  %v7822_v13 = vcombine.low %v3679_v33, %v3683_v51  ;;  %v4207_v12 = vrot.slane %v11954_v47, %v10797_v14 }
 0x22f   : > { %v7823_v11 = vcombine.low %v3687_v29, %v3691_v1  ;;  %v7830_v2 = vrot.slane %v7820_v3, %v10837_v35  ;;  %v7837_v19 = vrot.slane %v7821_v41, %v10837_v35  ;;  %v4211_v59 = vrot.slane %v11954_v47, %v10800_v15 }
 0x230   : > { %v8308_v9 = vrot.slane %v8294_v34, %v10837_v35  ;;  %v7844_v8 = vrot.slane %v7822_v13, %v10837_v35  ;;  %v4215_v46 = vrot.slane %v11954_v47, %v10803_v18  ;;  %v4219_v40 = vrot.slane %v11954_v47, %v10806_v21  ;;  %v12309_v41 = vpop.xlane.xlu0 %1512 }
 0x231   : > { %v7851_v27 = vrot.slane %v7823_v11, %v10837_v35  ;;  %v7852_v5 = vcombine.low %v7830_v2, %v7837_v19  ;;  %v4223_v30 = vrot.slane %v11954_v47, %v10809_v24  ;;  %v4227_v34 = vrot.slane %v11954_v47, %v10812_v22 }
 0x232   : > { %v8309_v57 = vcombine.low %v8301_v55, %v8308_v9  ;;  %v4231_v51 = vrot.slane %v11954_v47, %v10815_v23  ;;  %v4235_v1 = vrot.slane %v11954_v47, %v10818_v25  ;;  %v8653_v55 = vcombine.low %v4207_v12, %v4211_v59 }
 0x233   : > { %v7853_v33 = vcombine.low %v7844_v8, %v7851_v27  ;;  %v7860_v29 = vrot.slane %v7852_v5, %v10837_v35  ;;  %v8654_v3 = vcombine.low %v4215_v46, %v4219_v40  ;;  %v8655_v13 = vcombine.low %v4223_v30, %v4227_v34  ;;  %v12324_v40 = vpop.permute.xlu1 %9410 }
 0x234   : > { %9608 = vperm.xlu0 %10413, %v8309_v57   ;;  %v8656_v11 = vcombine.low %v4231_v51, %v4235_v1  ;;  %v8663_v2 = vrot.slane %v8653_v55, %v10837_v35  ;;  %v3727_v57 = vrot.slane %v11942_v53, %v10797_v14  ;;  %v3731_v47 = vrot.slane %v11942_v53, %v10800_v15 }
 0x235   : > { %v7867_v9 = vrot.slane %v7853_v33, %v10837_v35  ;;  %v8670_v19 = vrot.slane %v8654_v3, %v10837_v35  ;;  %v8677_v27 = vrot.slane %v8655_v13, %v10837_v35  ;;  %v3735_v5 = vrot.slane %v11942_v53, %v10803_v18  ;;  %v12335_v3 = vpop.permute.xlu0 %9389 }
 0x236   : > { %v8684_v12 = vrot.slane %v8656_v11, %v10837_v35  ;;  %v3739_v46 = vrot.slane %v11942_v53, %v10806_v21  ;;  %v3743_v30 = vrot.slane %v11942_v53, %v10809_v24  ;;  %v3747_v33 = vrot.slane %v11942_v53, %v10812_v22 }
 0x237   : > { %v7868_v8 = vcombine.low %v7860_v29, %v7867_v9  ;;  %v8685_v59 = vcombine.low %v8663_v2, %v8670_v19  ;;  %v3751_v34 = vrot.slane %v11942_v53, %v10815_v23  ;;  %v3755_v1 = vrot.slane %v11942_v53, %v10818_v25 }
 0x238   : > { %v8686_v51 = vcombine.low %v8677_v27, %v8684_v12  ;;  %v7918_v55 = vcombine.low %v3727_v57, %v3731_v47  ;;  %v7919_v9 = vcombine.low %v3735_v5, %v3739_v46  ;;  %v7920_v13 = vcombine.low %v3743_v30, %v3747_v33  ;;  %v12350_v46 = vpop.permute.xlu1 %9413 }
 0x239   : > { %9581 = vperm.xlu1 %10414, %v7868_v8   ;;  %v8693_v29 = vrot.slane %v8685_v59, %v10837_v35  ;;  %v7921_v2 = vcombine.low %v3751_v34, %v3755_v1  ;;  %v4271_v8 = vrot.slane %v11985_v39, %v10797_v14  ;;  %v4275_v53 = vrot.slane %v11985_v39, %v10800_v15 }
 0x23a   : > { %v8700_v11 = vrot.slane %v8686_v51, %v10837_v35  ;;  %v7928_v19 = vrot.slane %v7918_v55, %v10837_v35  ;;  %v7935_v27 = vrot.slane %v7919_v9, %v10837_v35  ;;  %v7942_v12 = vrot.slane %v7920_v13, %v10837_v35  ;;  %v12360_v9 = vpop.permute.xlu0 %9416 }
 0x23b   : > { %v7949_v47 = vrot.slane %v7921_v2, %v10837_v35  ;;  %v4279_v59 = vrot.slane %v11985_v39, %v10803_v18  ;;  %v4283_v5 = vrot.slane %v11985_v39, %v10806_v21  ;;  %v4287_v33 = vrot.slane %v11985_v39, %v10809_v24 }
 0x23c   : > { %v8701_v57 = vcombine.low %v8693_v29, %v8700_v11  ;;  %v7950_v30 = vcombine.low %v7928_v19, %v7935_v27  ;;  %v4291_v34 = vrot.slane %v11985_v39, %v10812_v22  ;;  %v4295_v29 = vrot.slane %v11985_v39, %v10815_v23 }
 0x23d   : > { %v7951_v51 = vcombine.low %v7942_v12, %v7949_v47  ;;  %v4299_v1 = vrot.slane %v11985_v39, %v10818_v25  ;;  %v8751_v55 = vcombine.low %v4271_v8, %v4275_v53  ;;  %v8752_v11 = vcombine.low %v4279_v59, %v4283_v5  ;;  %v12374_v5 = vpop.permute.xlu1 %9419 }
 0x23e   : > { %9632 = vperm.xlu0 %10413, %v8701_v57   ;;  %v7958_v13 = vrot.slane %v7950_v30, %v10837_v35  ;;  %v8753_v2 = vcombine.low %v4287_v33, %v4291_v34  ;;  %v3791_v47 = vrot.slane %v11970_v54, %v10797_v14  ;;  %v3795_v53 = vrot.slane %v11970_v54, %v10800_v15 }
 0x23f   : > { %v7965_v19 = vrot.slane %v7951_v51, %v10837_v35  ;;  %v8754_v27 = vcombine.low %v4295_v29, %v4299_v1  ;;  %v8761_v37 = vrot.slane %v8751_v55, %v10837_v35  ;;  %v8768_v12 = vrot.slane %v8752_v11, %v10837_v35  ;;  %13425 = vst [vmem:[#allocation10_spill] sm:$0xff] %v12374_v5 }
 0x240   : > { %v8775_v57 = vrot.slane %v8753_v2, %v10837_v35  ;;  %v3799_v59 = vrot.slane %v11970_v54, %v10803_v18  ;;  %v3803_v33 = vrot.slane %v11970_v54, %v10806_v21  ;;  %v3807_v34 = vrot.slane %v11970_v54, %v10809_v24 }
 0x241   : > { %v7966_v39 = vcombine.low %v7958_v13, %v7965_v19  ;;  %v8782_v8 = vrot.slane %v8754_v27, %v10837_v35  ;;  %v8783_v30 = vcombine.low %v8761_v37, %v8768_v12  ;;  %v3811_v29 = vrot.slane %v11970_v54, %v10812_v22  ;;  %v12386_v13 = vpop.permute.xlu0 %9422 }
 0x242   : > { %v3815_v1 = vrot.slane %v11970_v54, %v10815_v23  ;;  %v3819_v55 = vrot.slane %v11970_v54, %v10818_v25  ;;  %13426 = vst [vmem:[#allocation11_spill] sm:$0xff] %v12386_v13  ;;  %v8016_v11 = vcombine.low %v3791_v47, %v3795_v53  ;;  %v8017_v2 = vcombine.low %v3799_v59, %v3803_v33  ;;  %v12400_v59 = vpop.permute.xlu1 %9425 }
 0x243   : > { %9587 = vperm.xlu1 %10414, %v7966_v39   ;;  %v8784_v51 = vcombine.low %v8775_v57, %v8782_v8  ;;  %v8791_v37 = vrot.slane %v8783_v30, %v10837_v35  ;;  %v8018_v27 = vcombine.low %v3807_v34, %v3811_v29  ;;  %v4335_v8 = vrot.slane %v12016_v16, %v10797_v14 }
 0x244   : > { %v8019_v12 = vcombine.low %v3815_v1, %v3819_v55  ;;  %v8026_v57 = vrot.slane %v8016_v11, %v10837_v35  ;;  %v8033_v39 = vrot.slane %v8017_v2, %v10837_v35  ;;  %v4339_v54 = vrot.slane %v12016_v16, %v10800_v15  ;;  %13427 = vst [vmem:[#allocation12_spill] sm:$0xff] %v12400_v59 }
 0x245   : > { %v8798_v19 = vrot.slane %v8784_v51, %v10837_v35  ;;  %v8040_v13 = vrot.slane %v8018_v27, %v10837_v35  ;;  %v4343_v53 = vrot.slane %v12016_v16, %v10803_v18  ;;  %v4347_v33 = vrot.slane %v12016_v16, %v10806_v21  ;;  %v12412_v11 = vpop.permute.xlu0 %9428 }
 0x246   : > { %v8047_v47 = vrot.slane %v8019_v12, %v10837_v35  ;;  %v8048_v30 = vcombine.low %v8026_v57, %v8033_v39  ;;  %v4351_v34 = vrot.slane %v12016_v16, %v10809_v24  ;;  %v4355_v51 = vrot.slane %v12016_v16, %v10812_v22  ;;  %13428 = vst [vmem:[#allocation13_spill] sm:$0xff] %v12412_v11 }
 0x247   : > { %v8799_v5 = vcombine.low %v8791_v37, %v8798_v19  ;;  %v4359_v1 = vrot.slane %v12016_v16, %v10815_v23  ;;  %v4363_v55 = vrot.slane %v12016_v16, %v10818_v25  ;;  %v8849_v37 = vcombine.low %v4335_v8, %v4339_v54 }
 0x248   : > { %v8049_v29 = vcombine.low %v8040_v13, %v8047_v47  ;;  %v8056_v2 = vrot.slane %v8048_v30, %v10837_v35  ;;  %v8850_v19 = vcombine.low %v4343_v53, %v4347_v33  ;;  %v8851_v27 = vcombine.low %v4351_v34, %v4355_v51  ;;  %v12426_v30 = vpop.permute.xlu1 %9431 }
 0x249   : > { %9638 = vperm.xlu0 %10413, %v8799_v5   ;;  %v8852_v57 = vcombine.low %v4359_v1, %v4363_v55  ;;  %v8859_v39 = vrot.slane %v8849_v37, %v10837_v35  ;;  %v3855_v47 = vrot.slane %v11997_v28, %v10797_v14  ;;  %v3859_v54 = vrot.slane %v11997_v28, %v10800_v15 }
 0x24a   : > { %v8063_v12 = vrot.slane %v8049_v29, %v10837_v35  ;;  %v8866_v5 = vrot.slane %v8850_v19, %v10837_v35  ;;  %v8873_v13 = vrot.slane %v8851_v27, %v10837_v35  ;;  %v3863_v53 = vrot.slane %v11997_v28, %v10803_v18  ;;  %13429 = vst [vmem:[#allocation14_spill] sm:$0xff] %v12426_v30 }
 0x24b   : > { %v8880_v8 = vrot.slane %v8852_v57, %v10837_v35  ;;  %v3867_v34 = vrot.slane %v11997_v28, %v10806_v21  ;;  %v3871_v51 = vrot.slane %v11997_v28, %v10809_v24  ;;  %v3875_v1 = vrot.slane %v11997_v28, %v10812_v22 }
 0x24c   : > { %v8064_v16 = vcombine.low %v8056_v2, %v8063_v12  ;;  %v8881_v33 = vcombine.low %v8859_v39, %v8866_v5  ;;  %v3879_v55 = vrot.slane %v11997_v28, %v10815_v23  ;;  %v3883_v37 = vrot.slane %v11997_v28, %v10818_v25  ;;  %v12438_v2 = vpop.permute.xlu0 %9434 }
 0x24d   : > { %v8882_v29 = vcombine.low %v8873_v13, %v8880_v8  ;;  %13430 = vst [vmem:[#allocation15_spill] sm:$0xff] %v12438_v2  ;;  %v8114_v27 = vcombine.low %v3855_v47, %v3859_v54  ;;  %v8115_v12 = vcombine.low %v3863_v53, %v3867_v34  ;;  %v8116_v39 = vcombine.low %v3871_v51, %v3875_v1  ;;  %v12452_v53 = vpop.permute.xlu1 %9437 }
 0x24e   : > { %9593 = vperm.xlu1 %10414, %v8064_v16   ;;  %v8889_v19 = vrot.slane %v8881_v33, %v10837_v35  ;;  %v8117_v5 = vcombine.low %v3879_v55, %v3883_v37  ;;  %v4399_v8 = vrot.slane %v12044_v60, %v10797_v14  ;;  %v4403_v28 = vrot.slane %v12044_v60, %v10800_v15 }
 0x24f   : > { %v8896_v57 = vrot.slane %v8882_v29, %v10837_v35  ;;  %v8124_v13 = vrot.slane %v8114_v27, %v10837_v35  ;;  %v8131_v16 = vrot.slane %v8115_v12, %v10837_v35  ;;  %v8138_v2 = vrot.slane %v8116_v39, %v10837_v35 }
 0x250   : > { %v8145_v47 = vrot.slane %v8117_v5, %v10837_v35  ;;  %v4407_v54 = vrot.slane %v12044_v60, %v10803_v18  ;;  %v4411_v34 = vrot.slane %v12044_v60, %v10806_v21  ;;  %v4415_v51 = vrot.slane %v12044_v60, %v10809_v24  ;;  %v12464_v27 = vpop.permute.xlu0 %9440 }
 0x251   : > { %v8897_v30 = vcombine.low %v8889_v19, %v8896_v57  ;;  %v8146_v33 = vcombine.low %v8124_v13, %v8131_v16  ;;  %v4419_v29 = vrot.slane %v12044_v60, %v10812_v22  ;;  %v4423_v55 = vrot.slane %v12044_v60, %v10815_v23 }
 0x252   : > { %v8147_v1 = vcombine.low %v8138_v2, %v8145_v47  ;;  %v4427_v37 = vrot.slane %v12044_v60, %v10818_v25  ;;  %v8947_v19 = vcombine.low %v4399_v8, %v4403_v28  ;;  %v8948_v57 = vcombine.low %v4407_v54, %v4411_v34  ;;  %v12474_v8 = vpop.permute.xlu1 %9443 }
 0x253   : > { %9644 = vperm.xlu0 %10413, %v8897_v30   ;;  %v8154_v12 = vrot.slane %v8146_v33, %v10837_v35  ;;  %v8949_v39 = vcombine.low %v4415_v51, %v4419_v29  ;;  %v3919_v60 = vrot.slane %v12027_v0, %v10797_v14  ;;  %v3923_v54 = vrot.slane %v12027_v0, %v10800_v15 }
 0x254   : > { %v8161_v5 = vrot.slane %v8147_v1, %v10837_v35  ;;  %v8950_v13 = vcombine.low %v4423_v55, %v4427_v37  ;;  %v8957_v16 = vrot.slane %v8947_v19, %v10837_v35  ;;  %v8964_v30 = vrot.slane %v8948_v57, %v10837_v35  ;;  %v12486_v55 = vpop.permute.xlu0 %9446 }
 0x255   : > { %v8971_v2 = vrot.slane %v8949_v39, %v10837_v35  ;;  %v3927_v33 = vrot.slane %v12027_v0, %v10803_v18  ;;  %v3931_v34 = vrot.slane %v12027_v0, %v10806_v21  ;;  %v3935_v29 = vrot.slane %v12027_v0, %v10809_v24  ;;  %13431 = vst [vmem:[#allocation16_spill] sm:$0xff] %v12486_v55 }
 0x256   : > { %v8162_v47 = vcombine.low %v8154_v12, %v8161_v5  ;;  %v8978_v11 = vrot.slane %v8950_v13, %v10837_v35  ;;  %v8979_v28 = vcombine.low %v8957_v16, %v8964_v30  ;;  %v3939_v1 = vrot.slane %v12027_v0, %v10812_v22 }
 0x257   : > { %v3943_v19 = vrot.slane %v12027_v0, %v10815_v23  ;;  %v3947_v12 = vrot.slane %v12027_v0, %v10818_v25  ;;  %v8212_v57 = vcombine.low %v3919_v60, %v3923_v54  ;;  %v4463_v30 = vrot.slane %v12070_v52, %v10797_v14  ;;  %v12501_v0 = vpop.permute.xlu1 %9449 }
 0x258   : > { %9599 = vperm.xlu1 %10414, %v8162_v47   ;;  %v8980_v51 = vcombine.low %v8971_v2, %v8978_v11  ;;  %v8987_v37 = vrot.slane %v8979_v28, %v10837_v35  ;;  %v8213_v11 = vcombine.low %v3927_v33, %v3931_v34  ;;  %v8214_v5 = vcombine.low %v3935_v29, %v3939_v1 }
 0x259   : > { %v8215_v13 = vcombine.low %v3943_v19, %v3947_v12  ;;  %v8222_v16 = vrot.slane %v8212_v57, %v10837_v35  ;;  %v4467_v59 = vrot.slane %v12070_v52, %v10800_v15  ;;  %13432 = vst [vmem:[#allocation17_spill] sm:$0xff] %v12501_v0  ;;  %v4471_v54 = vrot.slane %v12070_v52, %v10803_v18  ;;  %v12516_v12 = vpop.permute.xlu0 %9452 }
 0x25a   : > { %v8994_v39 = vrot.slane %v8980_v51, %v10837_v35  ;;  %v8229_v47 = vrot.slane %v8213_v11, %v10837_v35  ;;  %v8236_v28 = vrot.slane %v8214_v5, %v10837_v35  ;;  %v4475_v33 = vrot.slane %v12070_v52, %v10806_v21 }
 0x25b   : > { %v8243_v60 = vrot.slane %v8215_v13, %v10837_v35  ;;  %v4479_v34 = vrot.slane %v12070_v52, %v10809_v24  ;;  %v4483_v29 = vrot.slane %v12070_v52, %v10812_v22  ;;  %v4487_v1 = vrot.slane %v12070_v52, %v10815_v23 }
 0x25c   : > { %v8995_v2 = vcombine.low %v8987_v37, %v8994_v39  ;;  %v8244_v51 = vcombine.low %v8222_v16, %v8229_v47  ;;  %v4491_v37 = vrot.slane %v12070_v52, %v10818_v25  ;;  %v9045_v57 = vcombine.low %v4463_v30, %v4467_v59  ;;  %v12524_v52 = vpop.permute.xlu1 %9455 }
 0x25d   : > { %v8245_v19 = vcombine.low %v8236_v28, %v8243_v60  ;;  %v9046_v39 = vcombine.low %v4471_v54, %v4475_v33  ;;  %v9047_v5 = vcombine.low %v4479_v34, %v4483_v29  ;;  %v4175_v59 = vrot.slane %v12132_v56, %v10797_v14 }
 0x25e   : > { %9650 = vperm.xlu0 %10413, %v8995_v2   ;;  %v8252_v11 = vrot.slane %v8244_v51, %v10837_v35  ;;  %v9048_v13 = vcombine.low %v4487_v1, %v4491_v37  ;;  %v9055_v2 = vrot.slane %v9045_v57, %v10837_v35  ;;  %v4179_v30 = vrot.slane %v12132_v56, %v10800_v15 }
 0x25f   : > { %v8259_v16 = vrot.slane %v8245_v19, %v10837_v35  ;;  %v9062_v47 = vrot.slane %v9046_v39, %v10837_v35  ;;  %v9069_v55 = vrot.slane %v9047_v5, %v10837_v35  ;;  %v4183_v33 = vrot.slane %v12132_v56, %v10803_v18  ;;  %v12541_v19 = vpop.permute.xlu0 %9458 }
 0x260   : > { %v9076_v0 = vrot.slane %v9048_v13, %v10837_v35  ;;  %v4187_v34 = vrot.slane %v12132_v56, %v10806_v21  ;;  %v4191_v29 = vrot.slane %v12132_v56, %v10809_v24  ;;  %v4195_v1 = vrot.slane %v12132_v56, %v10812_v22  ;;  %13433 = vst [vmem:[#allocation18_spill] sm:$0xff] %v12541_v19 }
 0x261   : > { %v8260_v28 = vcombine.low %v8252_v11, %v8259_v16  ;;  %v9077_v60 = vcombine.low %v9055_v2, %v9062_v47  ;;  %v4199_v37 = vrot.slane %v12132_v56, %v10815_v23  ;;  %v8604_v57 = vcombine.low %v4175_v59, %v4179_v30 }
 0x262   : > { %v9078_v54 = vcombine.low %v9069_v55, %v9076_v0  ;;  %v4203_v0 = vrot.slane %v12132_v56, %v10818_v25  ;;  %v8605_v39 = vcombine.low %v4183_v33, %v4187_v34  ;;  %v8606_v11 = vcombine.low %v4191_v29, %v4195_v1 }
 0x263   : > { %9605 = vperm.xlu1 %10414, %v8260_v28   ;;  %v9085_v51 = vrot.slane %v9077_v60, %v10837_v35  ;;  %v4495_v5 = vrot.slane %v12257_v62, %v10797_v14  ;;  %v8614_v2 = vrot.slane %v8604_v57, %v10837_v35  ;;  %v4499_v47 = vrot.slane %v12257_v62, %v10800_v15  ;;  %v12551_v28 = vpop.permute.xlu1 %9461 }
 0x264   : > { %v9092_v55 = vrot.slane %v9078_v54, %v10837_v35  ;;  %v8607_v16 = vcombine.low %v4199_v37, %v4203_v0  ;;  %13434 = vst [vmem:[#allocation19_spill] sm:$0xff] %v12551_v28  ;;  %v8621_v60 = vrot.slane %v8605_v39, %v10837_v35  ;;  %v8628_v54 = vrot.slane %v8606_v11, %v10837_v35  ;;  %v12568_v0 = vpop.permute.xlu0 %9464 }
 0x265   : > { %v4503_v56 = vrot.slane %v12257_v62, %v10803_v18  ;;  %v4507_v59 = vrot.slane %v12257_v62, %v10806_v21  ;;  %v4511_v33 = vrot.slane %v12257_v62, %v10809_v24  ;;  %v4515_v34 = vrot.slane %v12257_v62, %v10812_v22  ;;  %13435 = vst [vmem:[#allocation20_spill] sm:$0xff] %v12568_v0 }
 0x266   : > { %v9093_v13 = vcombine.low %v9085_v51, %v9092_v55  ;;  %v8635_v30 = vrot.slane %v8607_v16, %v10837_v35  ;;  %v4519_v51 = vrot.slane %v12257_v62, %v10815_v23  ;;  %v8636_v29 = vcombine.low %v8614_v2, %v8621_v60 }
 0x267   : > { %v4523_v1 = vrot.slane %v12257_v62, %v10818_v25  ;;  %v9094_v37 = vcombine.low %v4495_v5, %v4499_v47  ;;  %v9095_v55 = vcombine.low %v4503_v56, %v4507_v59  ;;  %v9096_v39 = vcombine.low %v4511_v33, %v4515_v34  ;;  %v12575_v60 = vpop.permute.xlu1 %9467 }
 0x268   : > { %9656 = vperm.xlu0 %10413, %v9093_v13   ;;  %v8637_v57 = vcombine.low %v8628_v54, %v8635_v30  ;;  %v8644_v11 = vrot.slane %v8636_v29, %v10837_v35  ;;  %v4239_v54 = vrot.slane %v12156_v44, %v10797_v14  ;;  %v4243_v56 = vrot.slane %v12156_v44, %v10800_v15 }
 0x269   : > { %v9097_v13 = vcombine.low %v4519_v51, %v4523_v1  ;;  %v9104_v16 = vrot.slane %v9094_v37, %v10837_v35  ;;  %v9111_v19 = vrot.slane %v9095_v55, %v10837_v35  ;;  %v9118_v2 = vrot.slane %v9096_v39, %v10837_v35  ;;  %v12587_v51 = vpop.permute.xlu0 %9470 }
 0x26a   : > { %v8651_v28 = vrot.slane %v8637_v57, %v10837_v35  ;;  %v4247_v33 = vrot.slane %v12156_v44, %v10803_v18  ;;  %v4251_v34 = vrot.slane %v12156_v44, %v10806_v21  ;;  %13436 = vst [vmem:[#allocation21_spill] sm:$0xff] %v12587_v51  ;;  %v4263_v29 = vrot.slane %v12156_v44, %v10815_v23 }
 0x26b   : > { %v9125_v62 = vrot.slane %v9097_v13, %v10837_v35  ;;  %v9126_v5 = vcombine.low %v9104_v16, %v9111_v19  ;;  %v4255_v19 = vrot.slane %v12156_v44, %v10809_v24  ;;  %v4267_v37 = vrot.slane %v12156_v44, %v10818_v25  ;;  %v12600_v13 = vpop.permute.xlu1 %9473 }
 0x26c   : > { %v8652_v47 = vcombine.low %v8644_v11, %v8651_v28  ;;  %v4259_v28 = vrot.slane %v12156_v44, %v10812_v22  ;;  %v8702_v55 = vcombine.low %v4239_v54, %v4243_v56  ;;  %v8703_v57 = vcombine.low %v4247_v33, %v4251_v34  ;;  %13437 = vst [vmem:[#allocation22_spill] sm:$0xff] %v12600_v13 }
 0x26d   : > { %v9127_v59 = vcombine.low %v9118_v2, %v9125_v62  ;;  %v9134_v30 = vrot.slane %v9126_v5, %v10837_v35  ;;  %v4527_v11 = vrot.slane %v12098_v17, %v10797_v14  ;;  %v8705_v2 = vcombine.low %v4263_v29, %v4267_v37 }
 0x26e   : > { %9629 = vperm.xlu1 %10414, %v8652_v47   ;;  %v8704_v39 = vcombine.low %v4255_v19, %v4259_v28  ;;  %v8712_v62 = vrot.slane %v8702_v55, %v10837_v35  ;;  %v4531_v5 = vrot.slane %v12098_v17, %v10800_v15  ;;  %v8719_v47 = vrot.slane %v8703_v57, %v10837_v35  ;;  %v12618_v19 = vpop.permute.xlu0 %9476 }
 0x26f   : > { %v9141_v1 = vrot.slane %v9127_v59, %v10837_v35  ;;  %v4535_v44 = vrot.slane %v12098_v17, %v10803_v18  ;;  %v4539_v54 = vrot.slane %v12098_v17, %v10806_v21  ;;  %v8733_v56 = vrot.slane %v8705_v2, %v10837_v35  ;;  %13438 = vst [vmem:[#allocation23_spill] sm:$0xff] %v12618_v19  ;;  %v12627_v0 = vpop.permute.xlu1 %9479 }
 0x270   : > { %v8726_v59 = vrot.slane %v8704_v39, %v10837_v35  ;;  %v4547_v33 = vrot.slane %v12098_v17, %v10812_v22  ;;  %v4551_v34 = vrot.slane %v12098_v17, %v10815_v23  ;;  %v8734_v28 = vcombine.low %v8712_v62, %v8719_v47  ;;  %13439 = vst [vmem:[#allocation24_spill] sm:$0xff] %v12627_v0 }
 0x271   : > { %v9142_v16 = vcombine.low %v9134_v30, %v9141_v1  ;;  %v4543_v30 = vrot.slane %v12098_v17, %v10809_v24  ;;  %v4555_v29 = vrot.slane %v12098_v17, %v10818_v25  ;;  %v9143_v1 = vcombine.low %v4527_v11, %v4531_v5 }
 0x272   : > { %v9144_v37 = vcombine.low %v4535_v44, %v4539_v54  ;;  %v8735_v55 = vcombine.low %v8726_v59, %v8733_v56  ;;  %v4303_v39 = vrot.slane %v12182_v36, %v10797_v14  ;;  %v4307_v11 = vrot.slane %v12182_v36, %v10800_v15 }
 0x273   : > { %9659 = vperm.xlu0 %10413, %v9142_v16   ;;  %v9145_v57 = vcombine.low %v4543_v30, %v4547_v33  ;;  %v8742_v16 = vrot.slane %v8734_v28, %v10837_v35  ;;  %v9146_v2 = vcombine.low %v4551_v34, %v4555_v29  ;;  %v9153_v51 = vrot.slane %v9143_v1, %v10837_v35  ;;  %v12644_v34 = vpop.permute.xlu0 %9482 }
 0x274   : > { %v9160_v13 = vrot.slane %v9144_v37, %v10837_v35  ;;  %v8749_v62 = vrot.slane %v8735_v55, %v10837_v35  ;;  %v4311_v59 = vrot.slane %v12182_v36, %v10803_v18  ;;  %v4315_v44 = vrot.slane %v12182_v36, %v10806_v21  ;;  %13440 = vst [vmem:[#allocation25_spill] sm:$0xff] %v12644_v34 }
 0x275   : > { %v9167_v17 = vrot.slane %v9145_v57, %v10837_v35  ;;  %v9174_v5 = vrot.slane %v9146_v2, %v10837_v35  ;;  %v4319_v56 = vrot.slane %v12182_v36, %v10809_v24  ;;  %v4323_v30 = vrot.slane %v12182_v36, %v10812_v22 }
 0x276   : > { %v9175_v47 = vcombine.low %v9153_v51, %v9160_v13  ;;  %v8750_v54 = vcombine.low %v8742_v16, %v8749_v62  ;;  %v4327_v33 = vrot.slane %v12182_v36, %v10815_v23  ;;  %v4331_v13 = vrot.slane %v12182_v36, %v10818_v25 }
 0x277   : > { %v9176_v28 = vcombine.low %v9167_v17, %v9174_v5  ;;  %v8800_v29 = vcombine.low %v4303_v39, %v4307_v11  ;;  %v8801_v1 = vcombine.low %v4311_v59, %v4315_v44  ;;  %v8802_v37 = vcombine.low %v4319_v56, %v4323_v30  ;;  %v12655_v17 = vpop.permute.xlu1 %9485 }
 0x278   : > { %v9183_v51 = vrot.slane %v9175_v47, %v10837_v35  ;;  %9635 = vperm.xlu1 %10414, %v8750_v54   ;;  %v4559_v55 = vrot.slane %v12283_v38, %v10797_v14  ;;  %v8803_v16 = vcombine.low %v4327_v33, %v4331_v13  ;;  %v4563_v62 = vrot.slane %v12283_v38, %v10800_v15  ;;  %v12672_v13 = vpop.permute.xlu0 %9488 }
 0x279   : > { %v9190_v57 = vrot.slane %v9176_v28, %v10837_v35  ;;  %v8810_v2 = vrot.slane %v8800_v29, %v10837_v35  ;;  %v8817_v5 = vrot.slane %v8801_v1, %v10837_v35  ;;  %v8824_v36 = vrot.slane %v8802_v37, %v10837_v35 }
 0x27a   : > { %v4567_v39 = vrot.slane %v12283_v38, %v10803_v18  ;;  %v4571_v11 = vrot.slane %v12283_v38, %v10806_v21  ;;  %v8831_v59 = vrot.slane %v8803_v16, %v10837_v35  ;;  %v4575_v44 = vrot.slane %v12283_v38, %v10809_v24 }
 0x27b   : > { %v9191_v47 = vcombine.low %v9183_v51, %v9190_v57  ;;  %v4579_v54 = vrot.slane %v12283_v38, %v10812_v22  ;;  %v8832_v56 = vcombine.low %v8810_v2, %v8817_v5  ;;  %v4583_v30 = vrot.slane %v12283_v38, %v10815_v23 }
 0x27c   : > { %v4587_v33 = vrot.slane %v12283_v38, %v10818_v25  ;;  %v9192_v28 = vcombine.low %v4559_v55, %v4563_v62  ;;  %v8833_v51 = vcombine.low %v8824_v36, %v8831_v59  ;;  %v9193_v29 = vcombine.low %v4567_v39, %v4571_v11  ;;  %v12681_v55 = vpop.permute.xlu1 %9491 }
 0x27d   : > { %9662 = vperm.xlu0 %10413, %v9191_v47   ;;  %v9194_v1 = vcombine.low %v4575_v44, %v4579_v54  ;;  %v8840_v37 = vrot.slane %v8832_v56, %v10837_v35  ;;  %v4367_v2 = vrot.slane %v12205_v6, %v10797_v14  ;;  %v4371_v36 = vrot.slane %v12205_v6, %v10800_v15 }
 0x27e   : > { %v9195_v57 = vcombine.low %v4583_v30, %v4587_v33  ;;  %v9202_v16 = vrot.slane %v9192_v28, %v10837_v35  ;;  %v8847_v5 = vrot.slane %v8833_v51, %v10837_v35  ;;  %v9209_v34 = vrot.slane %v9193_v29, %v10837_v35  ;;  %v12698_v51 = vpop.permute.xlu0 %9494 }
 0x27f   : > { %v9216_v38 = vrot.slane %v9194_v1, %v10837_v35  ;;  %v4375_v39 = vrot.slane %v12205_v6, %v10803_v18  ;;  %v4379_v11 = vrot.slane %v12205_v6, %v10806_v21  ;;  %v4383_v44 = vrot.slane %v12205_v6, %v10809_v24 }
 0x280   : > { %v9223_v62 = vrot.slane %v9195_v57, %v10837_v35  ;;  %v8848_v47 = vcombine.low %v8840_v37, %v8847_v5  ;;  %v9224_v59 = vcombine.low %v9202_v16, %v9209_v34  ;;  %v4387_v54 = vrot.slane %v12205_v6, %v10812_v22 }
 0x281   : > { %v4391_v30 = vrot.slane %v12205_v6, %v10815_v23  ;;  %v4395_v33 = vrot.slane %v12205_v6, %v10818_v25  ;;  %v8898_v28 = vcombine.low %v4367_v2, %v4371_v36  ;;  %v8899_v34 = vcombine.low %v4375_v39, %v4379_v11  ;;  %v12711_v36 = vpop.permute.xlu1 %9497 }
 0x282   : > { %v9225_v56 = vcombine.low %v9216_v38, %v9223_v62  ;;  %9641 = vperm.xlu1 %10414, %v8848_v47   ;;  %v9232_v29 = vrot.slane %v9224_v59, %v10837_v35  ;;  %v8900_v1 = vcombine.low %v4383_v44, %v4387_v54  ;;  %v4591_v5 = vrot.slane %v12124_v50, %v10797_v14 }
 0x283   : > { %v8901_v57 = vcombine.low %v4391_v30, %v4395_v33  ;;  %v8908_v16 = vrot.slane %v8898_v28, %v10837_v35  ;;  %v8915_v38 = vrot.slane %v8899_v34, %v10837_v35  ;;  %v4595_v2 = vrot.slane %v12124_v50, %v10800_v15  ;;  %v12724_v34 = vpop.permute.xlu0 %9500 }
 0x284   : > { %v9239_v37 = vrot.slane %v9225_v56, %v10837_v35  ;;  %v8922_v6 = vrot.slane %v8900_v1, %v10837_v35  ;;  %v4599_v62 = vrot.slane %v12124_v50, %v10803_v18  ;;  %v4603_v47 = vrot.slane %v12124_v50, %v10806_v21 }
 0x285   : > { %v8929_v11 = vrot.slane %v8901_v57, %v10837_v35  ;;  %v4607_v59 = vrot.slane %v12124_v50, %v10809_v24  ;;  %v8930_v44 = vcombine.low %v8908_v16, %v8915_v38  ;;  %v4611_v54 = vrot.slane %v12124_v50, %v10812_v22 }
 0x286   : > { %v9240_v39 = vcombine.low %v9232_v29, %v9239_v37  ;;  %v4615_v56 = vrot.slane %v12124_v50, %v10815_v23  ;;  %v4619_v30 = vrot.slane %v12124_v50, %v10818_v25  ;;  %v9241_v28 = vcombine.low %v4591_v5, %v4595_v2  ;;  %v12736_v2 = vpop.permute.xlu1 %9503 }
 0x287   : > { %v8931_v33 = vcombine.low %v8922_v6, %v8929_v11  ;;  %v9242_v29 = vcombine.low %v4599_v62, %v4603_v47  ;;  %v8938_v1 = vrot.slane %v8930_v44, %v10837_v35  ;;  %v9243_v37 = vcombine.low %v4607_v59, %v4611_v54 }
 0x288   : > { %9665 = vperm.xlu0 %10413, %v9240_v39   ;;  %v9244_v57 = vcombine.low %v4615_v56, %v4619_v30  ;;  %v9251_v38 = vrot.slane %v9241_v28, %v10837_v35  ;;  %v4431_v0 = vrot.slane %v12232_v49, %v10797_v14  ;;  %v4435_v6 = vrot.slane %v12232_v49, %v10800_v15 }
 0x289   : > { %v8945_v16 = vrot.slane %v8931_v33, %v10837_v35  ;;  %v9258_v19 = vrot.slane %v9242_v29, %v10837_v35  ;;  %v9265_v50 = vrot.slane %v9243_v37, %v10837_v35  ;;  %v4439_v11 = vrot.slane %v12232_v49, %v10803_v18  ;;  %v12751_v29 = vpop.permute.xlu0 %9506 }
 0x28a   : > { %v9272_v5 = vrot.slane %v9244_v57, %v10837_v35  ;;  %v4443_v47 = vrot.slane %v12232_v49, %v10806_v21  ;;  %v4447_v44 = vrot.slane %v12232_v49, %v10809_v24  ;;  %v4451_v54 = vrot.slane %v12232_v49, %v10812_v22  ;;  %13441 = vst [vmem:[#allocation26_spill] sm:$0xff] %v12751_v29 }
 0x28b   : > { %v8946_v62 = vcombine.low %v8938_v1, %v8945_v16  ;;  %v9273_v39 = vcombine.low %v9251_v38, %v9258_v19  ;;  %v4455_v56 = vrot.slane %v12232_v49, %v10815_v23  ;;  %v4459_v19 = vrot.slane %v12232_v49, %v10818_v25 }
 0x28c   : > { %v9274_v59 = vcombine.low %v9265_v50, %v9272_v5  ;;  %v8996_v33 = vcombine.low %v4431_v0, %v4435_v6  ;;  %v8997_v28 = vcombine.low %v4439_v11, %v4443_v47  ;;  %v8998_v37 = vcombine.low %v4447_v44, %v4451_v54 }
 0x28d   : > { %9647 = vperm.xlu1 %10414, %v8946_v62   ;;  %v9281_v30 = vrot.slane %v9273_v39, %v10837_v35  ;;  %v4623_v57 = vrot.slane %v12309_v41, %v10797_v14  ;;  %v8999_v16 = vcombine.low %v4455_v56, %v4459_v19  ;;  %v4627_v5 = vrot.slane %v12309_v41, %v10800_v15  ;;  %v12765_v39 = vpop.permute.xlu1 %9509 }
 0x28e   : > { %v9288_v1 = vrot.slane %v9274_v59, %v10837_v35  ;;  %v9006_v38 = vrot.slane %v8996_v33, %v10837_v35  ;;  %v9013_v50 = vrot.slane %v8997_v28, %v10837_v35  ;;  %v9020_v49 = vrot.slane %v8998_v37, %v10837_v35  ;;  %v12777_v37 = vpop.permute.xlu0 %9512 }
 0x28f   : > { %v4631_v0 = vrot.slane %v12309_v41, %v10803_v18  ;;  %v4635_v6 = vrot.slane %v12309_v41, %v10806_v21  ;;  %v9027_v11 = vrot.slane %v8999_v16, %v10837_v35  ;;  %v4639_v59 = vrot.slane %v12309_v41, %v10809_v24  ;;  %13442 = vst [vmem:[#allocation27_spill] sm:$0xff] %v12777_v37 }
 0x290   : > { %v9289_v62 = vcombine.low %v9281_v30, %v9288_v1  ;;  %v9028_v47 = vcombine.low %v9006_v38, %v9013_v50  ;;  %v4643_v44 = vrot.slane %v12309_v41, %v10812_v22  ;;  %v4647_v54 = vrot.slane %v12309_v41, %v10815_v23 }
 0x291   : > { %v4651_v56 = vrot.slane %v12309_v41, %v10818_v25  ;;  %v9290_v30 = vcombine.low %v4623_v57, %v4627_v5  ;;  %v9291_v19 = vcombine.low %v4631_v0, %v4635_v6  ;;  %v9029_v33 = vcombine.low %v9020_v49, %v9027_v11  ;;  %v12790_v6 = vpop.permute.xlu1 %9515 }
 0x292   : > { %9668 = vperm.xlu0 %10413, %v9289_v62   ;;  %v9036_v28 = vrot.slane %v9028_v47, %v10837_v35  ;;  %v9292_v1 = vcombine.low %v4639_v59, %v4643_v44  ;;  %v3983_v41 = vrot.slane %v12054_v45, %v10797_v14  ;;  %v3987_v57 = vrot.slane %v12054_v45, %v10800_v15 }
 0x293   : > { %v9293_v16 = vcombine.low %v4647_v54, %v4651_v56  ;;  %v9300_v38 = vrot.slane %v9290_v30, %v10837_v35  ;;  %v9307_v50 = vrot.slane %v9291_v19, %v10837_v35  ;;  %v9043_v62 = vrot.slane %v9029_v33, %v10837_v35  ;;  %13443 = vst [vmem:[#allocation28_spill] sm:$0xff] %v12790_v6 }
 0x294   : > { %v9314_v29 = vrot.slane %v9292_v1, %v10837_v35  ;;  %v3991_v0 = vrot.slane %v12054_v45, %v10803_v18  ;;  %v3995_v47 = vrot.slane %v12054_v45, %v10806_v21  ;;  %v3999_v59 = vrot.slane %v12054_v45, %v10809_v24 }
 0x295   : > { %v9321_v5 = vrot.slane %v9293_v16, %v10837_v35  ;;  %v9322_v49 = vcombine.low %v9300_v38, %v9307_v50  ;;  %v9044_v11 = vcombine.low %v9036_v28, %v9043_v62  ;;  %v4003_v44 = vrot.slane %v12054_v45, %v10812_v22  ;;  %v12803_v16 = vpop.permute.xlu0 %9518 }
 0x296   : > { %v4007_v30 = vrot.slane %v12054_v45, %v10815_v23  ;;  %v4011_v19 = vrot.slane %v12054_v45, %v10818_v25  ;;  %v8310_v33 = vcombine.low %v3983_v41, %v3987_v57  ;;  %v8311_v28 = vcombine.low %v3991_v0, %v3995_v47  ;;  %13444 = vst [vmem:[#allocation29_spill] sm:$0xff] %v12803_v16 }
 0x297   : > { %v9323_v54 = vcombine.low %v9314_v29, %v9321_v5  ;;  %v9330_v56 = vrot.slane %v9322_v49, %v10837_v35  ;;  %9653 = vperm.xlu1 %10414, %v9044_v11   ;;  %v8312_v1 = vcombine.low %v3999_v59, %v4003_v44  ;;  %v4655_v29 = vrot.slane %v12148_v7, %v10797_v14  ;;  %v12820_v59 = vpop.permute.xlu1 %9521 }
 0x298   : > { %v8313_v50 = vcombine.low %v4007_v30, %v4011_v19  ;;  %v4659_v62 = vrot.slane %v12148_v7, %v10800_v15  ;;  %v8320_v5 = vrot.slane %v8310_v33, %v10837_v35  ;;  %v8327_v49 = vrot.slane %v8311_v28, %v10837_v35  ;;  %13445 = vst [vmem:[#allocation30_spill] sm:$0xff] %v12820_v59 }
 0x299   : > { %v9337_v38 = vrot.slane %v9323_v54, %v10837_v35  ;;  %v8334_v45 = vrot.slane %v8312_v1, %v10837_v35  ;;  %v4663_v41 = vrot.slane %v12148_v7, %v10803_v18  ;;  %v4667_v11 = vrot.slane %v12148_v7, %v10806_v21  ;;  %v12829_v16 = vpop.permute.xlu0 %9524 }
 0x29a   : > { %v8341_v0 = vrot.slane %v8313_v50, %v10837_v35  ;;  %v4671_v47 = vrot.slane %v12148_v7, %v10809_v24  ;;  %v8342_v44 = vcombine.low %v8320_v5, %v8327_v49  ;;  %v4675_v54 = vrot.slane %v12148_v7, %v10812_v22  ;;  %13446 = vst [vmem:[#allocation31_spill] sm:$0xff] %v12829_v16 }
 0x29b   : > { %v9338_v57 = vcombine.low %v9330_v56, %v9337_v38  ;;  %v4679_v30 = vrot.slane %v12148_v7, %v10815_v23  ;;  %v4683_v56 = vrot.slane %v12148_v7, %v10818_v25  ;;  %v9339_v33 = vcombine.low %v4655_v29, %v4659_v62 }
 0x29c   : > { %v8343_v19 = vcombine.low %v8334_v45, %v8341_v0  ;;  %v9340_v28 = vcombine.low %v4663_v41, %v4667_v11  ;;  %v8350_v1 = vrot.slane %v8342_v44, %v10837_v35  ;;  %v9341_v38 = vcombine.low %v4671_v47, %v4675_v54  ;;  %v12844_v11 = vpop.permute.xlu1 %9527 }
 0x29d   : > { %9671 = vperm.xlu0 %10413, %v9338_v57   ;;  %v9342_v50 = vcombine.low %v4679_v30, %v4683_v56  ;;  %v9349_v49 = vrot.slane %v9339_v33, %v10837_v35  ;;  %v4015_v37 = vrot.slane %v11868_v20, %v10797_v14  ;;  %v4019_v62 = vrot.slane %v11868_v20, %v10800_v15 }
 0x29e   : > { %v8357_v5 = vrot.slane %v8343_v19, %v10837_v35  ;;  %v9356_v59 = vrot.slane %v9340_v28, %v10837_v35  ;;  %v9363_v7 = vrot.slane %v9341_v38, %v10837_v35  ;;  %v4023_v57 = vrot.slane %v11868_v20, %v10803_v18  ;;  %13447 = vst [vmem:[#allocation32_spill] sm:$0xff] %v12844_v11  ;;  %v12856_v38 = vpop.permute.xlu0 %9530 }
 0x29f   : > { %v9370_v29 = vrot.slane %v9342_v50, %v10837_v35  ;;  %v4027_v0 = vrot.slane %v11868_v20, %v10806_v21  ;;  %v4031_v44 = vrot.slane %v11868_v20, %v10809_v24  ;;  %v4035_v54 = vrot.slane %v11868_v20, %v10812_v22  ;;  %13448 = vst [vmem:[#allocation33_spill] sm:$0xff] %v12856_v38 }
 0x2a0   : > { %v8358_v45 = vcombine.low %v8350_v1, %v8357_v5  ;;  %v9371_v41 = vcombine.low %v9349_v49, %v9356_v59  ;;  %v4039_v30 = vrot.slane %v11868_v20, %v10815_v23  ;;  %v4043_v56 = vrot.slane %v11868_v20, %v10818_v25 }
 0x2a1   : > { %v9372_v47 = vcombine.low %v9363_v7, %v9370_v29  ;;  %v8359_v19 = vcombine.low %v4015_v37, %v4019_v62  ;;  %v8360_v33 = vcombine.low %v4023_v57, %v4027_v0  ;;  %v8361_v1 = vcombine.low %v4031_v44, %v4035_v54  ;;  %v12868_v57 = vpop.permute.xlu1 %9533 }
 0x2a2   : > { %9611 = vperm.xlu1 %10414, %v8358_v45   ;;  %v9379_v59 = vrot.slane %v9371_v41, %v10837_v35  ;;  %v8362_v50 = vcombine.low %v4039_v30, %v4043_v56  ;;  %v4047_v45 = vrot.slane %v12081_v63, %v10797_v14  ;;  %v4051_v20 = vrot.slane %v12081_v63, %v10800_v15 }
 0x2a3   : > { %v9386_v28 = vrot.slane %v9372_v47, %v10837_v35  ;;  %v8369_v5 = vrot.slane %v8359_v19, %v10837_v35  ;;  %v8376_v49 = vrot.slane %v8360_v33, %v10837_v35  ;;  %v8383_v29 = vrot.slane %v8361_v1, %v10837_v35  ;;  %v12881_v1 = vpop.permute.xlu0 %9536 }
 0x2a4   : > { %v8390_v37 = vrot.slane %v8362_v50, %v10837_v35  ;;  %v4055_v41 = vrot.slane %v12081_v63, %v10803_v18  ;;  %v4059_v0 = vrot.slane %v12081_v63, %v10806_v21  ;;  %v4063_v47 = vrot.slane %v12081_v63, %v10809_v24 }
 0x2a5   : > { %v9387_v7 = vcombine.low %v9379_v59, %v9386_v28  ;;  %v8391_v62 = vcombine.low %v8369_v5, %v8376_v49  ;;  %v4067_v44 = vrot.slane %v12081_v63, %v10812_v22  ;;  %v4071_v54 = vrot.slane %v12081_v63, %v10815_v23 }
 0x2a6   : > { %v8392_v30 = vcombine.low %v8383_v29, %v8390_v37  ;;  %v4075_v56 = vrot.slane %v12081_v63, %v10818_v25  ;;  %v8408_v19 = vcombine.low %v4047_v45, %v4051_v20  ;;  %v8409_v33 = vcombine.low %v4055_v41, %v4059_v0 }
 0x2a7   : > { %9674 = vperm.xlu0 %10413, %v9387_v7   ;;  %v8399_v59 = vrot.slane %v8391_v62, %v10837_v35  ;;  %v8410_v28 = vcombine.low %v4063_v47, %v4067_v44  ;;  %v4079_v29 = vrot.slane %v11895_v43, %v10797_v14  ;;  %v4083_v63 = vrot.slane %v11895_v43, %v10800_v15  ;;  %v12894_v62 = vpop.permute.xlu1 %9539 }
 0x2a8   : > { %v8406_v50 = vrot.slane %v8392_v30, %v10837_v35  ;;  %v8411_v5 = vcombine.low %v4071_v54, %v4075_v56  ;;  %v8418_v49 = vrot.slane %v8408_v19, %v10837_v35  ;;  %v8425_v7 = vrot.slane %v8409_v33, %v10837_v35 }
 0x2a9   : > { %v8432_v38 = vrot.slane %v8410_v28, %v10837_v35  ;;  %v4087_v37 = vrot.slane %v11895_v43, %v10803_v18  ;;  %v4091_v0 = vrot.slane %v11895_v43, %v10806_v21  ;;  %v4095_v47 = vrot.slane %v11895_v43, %v10809_v24 }
 0x2aa   : > { %v8407_v45 = vcombine.low %v8399_v59, %v8406_v50  ;;  %v8439_v20 = vrot.slane %v8411_v5, %v10837_v35  ;;  %v8440_v41 = vcombine.low %v8418_v49, %v8425_v7  ;;  %v4099_v44 = vrot.slane %v11895_v43, %v10812_v22  ;;  %v12907_v50 = vpop.permute.xlu0 %9542 }
 0x2ab   : > { %v4103_v30 = vrot.slane %v11895_v43, %v10815_v23  ;;  %v4107_v59 = vrot.slane %v11895_v43, %v10818_v25  ;;  %v8457_v56 = vcombine.low %v4079_v29, %v4083_v63  ;;  %v8458_v33 = vcombine.low %v4087_v37, %v4091_v0 }
 0x2ac   : > { %9614 = vperm.xlu1 %10414, %v8407_v45   ;;  %v8441_v54 = vcombine.low %v8432_v38, %v8439_v20  ;;  %v8448_v19 = vrot.slane %v8440_v41, %v10837_v35  ;;  %v8459_v28 = vcombine.low %v4095_v47, %v4099_v44  ;;  %v4111_v20 = vrot.slane %v12107_v48, %v10797_v14  ;;  %v12920_v41 = vpop.permute.xlu1 %9545 }
 0x2ad   : > { %v8460_v49 = vcombine.low %v4103_v30, %v4107_v59  ;;  %v8467_v7 = vrot.slane %v8457_v56, %v10837_v35  ;;  %v8474_v38 = vrot.slane %v8458_v33, %v10837_v35  ;;  %v4115_v63 = vrot.slane %v12107_v48, %v10800_v15 }
 0x2ae   : > { %v8455_v5 = vrot.slane %v8441_v54, %v10837_v35  ;;  %v8481_v45 = vrot.slane %v8459_v28, %v10837_v35  ;;  %v4119_v37 = vrot.slane %v12107_v48, %v10803_v18  ;;  %v4123_v47 = vrot.slane %v12107_v48, %v10806_v21 }
 0x2af   : > { %v8488_v29 = vrot.slane %v8460_v49, %v10837_v35  ;;  %v8489_v0 = vcombine.low %v8467_v7, %v8474_v38  ;;  %v4127_v44 = vrot.slane %v12107_v48, %v10809_v24  ;;  %v4131_v30 = vrot.slane %v12107_v48, %v10812_v22  ;;  %v12936_v49 = vpop.permute.xlu0 %9548 }
 0x2b0   : > { %v8456_v43 = vcombine.low %v8448_v19, %v8455_v5  ;;  %v4135_v59 = vrot.slane %v12107_v48, %v10815_v23  ;;  %v13449_v56 = vlaneseq  ;;  %v4139_v28 = vrot.slane %v12107_v48, %v10818_v25  ;;  %v12944_v6 = vpop.permute.xlu1 %9551 }
 0x2b1   : > { %v8490_v54 = vcombine.low %v8481_v45, %v8488_v29  ;;  %v8497_v33 = vrot.slane %v8489_v0, %v10837_v35  ;;  %v8506_v5 = vcombine.low %v4111_v20, %v4115_v63  ;;  %v8507_v38 = vcombine.low %v4119_v37, %v4123_v47 }
 0x2b2   : > { %9617 = vperm.xlu1 %10414, %v8456_v43   ;;  %v12931_v19 = vand.u32 127, %v13449_v56  ;;  %v8508_v45 = vcombine.low %v4127_v44, %v4131_v30  ;;  %v8509_v43 = vcombine.low %v4135_v59, %v4139_v28  ;;  %v4143_v0 = vrot.slane %v11925_v31, %v10797_v14 }
 0x2b3   : > { %v8504_v7 = vrot.slane %v8490_v54, %v10837_v35  ;;  %v8516_v29 = vrot.slane %v8506_v5, %v10837_v35  ;;  %v8523_v11 = vrot.slane %v8507_v38, %v10837_v35  ;;  %v4147_v63 = vrot.slane %v11925_v31, %v10800_v15 }
 0x2b4   : > { %v8530_v56 = vrot.slane %v8508_v45, %v10837_v35  ;;  %v9682_v48 = vadd.s32 4294967288, %v12931_v19  ;;  %v8537_v20 = vrot.slane %v8509_v43, %v10837_v35  ;;  %v4151_v37 = vrot.slane %v11925_v31, %v10803_v18  ;;  %v12962_v18 = vpop.permute.xlu0 %9554 }
 0x2b5   : > { %v8505_v16 = vcombine.low %v8497_v33, %v8504_v7  ;;  %v8538_v47 = vcombine.low %v8516_v29, %v8523_v11  ;;  %v4155_v44 = vrot.slane %v11925_v31, %v10806_v21  ;;  %v4159_v14 = vrot.slane %v11925_v31, %v10809_v24 }
 0x2b6   : > { %v4163_v54 = vrot.slane %v11925_v31, %v10812_v22  ;;  %v8539_v30 = vcombine.low %v8530_v56, %v8537_v20  ;;  %v4167_v59 = vrot.slane %v11925_v31, %v10815_v23  ;;  %v4171_v15 = vrot.slane %v11925_v31, %v10818_v25  ;;  %v12971_v31 = vpop.permute.xlu1 %9557 }
 0x2b7   : > { %9620 = vperm.xlu1 %10414, %v8505_v16   ;;  %v8555_v33 = vcombine.low %v4143_v0, %v4147_v63  ;;  %v9689_v16 = vadd.s32 4294967280, %v12931_v19  ;;  %v8546_v21 = vrot.slane %v8538_v47, %v10837_v35  ;;  %v8556_v11 = vcombine.low %v4151_v37, %v4155_v44 }
 0x2b8   : > { %v8557_v28 = vcombine.low %v4159_v14, %v4163_v54  ;;  %v8553_v24 = vrot.slane %v8539_v30, %v10837_v35  ;;  %v8558_v5 = vcombine.low %v4167_v59, %v4171_v15  ;;  %v9696_v56 = vadd.s32 4294967272, %v12931_v19  ;;  %v9561_v47 = vpop.permute.xlu0 %9560 }
 0x2b9   : > { %v8565_v22 = vrot.slane %v8555_v33, %v10837_v35  ;;  %v8572_v23 = vrot.slane %v8556_v11, %v10837_v35  ;;  %v12974_v7 = vsub.s32 %v9682_v48, %v10790_v58  ;;  %v9738_v38 = vadd.s32 4294967224, %v12931_v19 }
 0x2ba   : > { %v8579_v25 = vrot.slane %v8557_v28, %v10837_v35  ;;  %v8554_v45 = vcombine.low %v8546_v21, %v8553_v24  ;;  %v8586_v43 = vrot.slane %v8558_v5, %v10837_v35  ;;  %v12979_v29 = vsub.s32 %v9689_v16, %v10790_v58  ;;  %v9564_v28 = vpop.permute.xlu1 %9563 }
 0x2bb   : > { %v12983_v0 = vsub.s32 %v12931_v19, %v10790_v58  ;;  %v9703_v20 = vadd.s32 4294967264, %v12931_v19  ;;  %v8587_v63 = vcombine.low %v8565_v22, %v8572_v23  ;;  %v9717_v48 = vadd.s32 4294967248, %v12931_v19 }
 0x2bc   : > { %9623 = vperm.xlu1 %10414, %v8554_v45   ;;  %v8588_v37 = vcombine.low %v8579_v25, %v8586_v43  ;;  %v12988_v44 = vsub.s32 %v9696_v56, %v10790_v58  ;;  %v9710_v14 = vadd.s32 4294967256, %v12931_v19  ;;  %v12993_v30 = vsub.s32 %v9738_v38, %v10790_v58  ;;  %v9567_v43 = vpop.permute.xlu0 %9566 }
 0x2bd   : > { %v8595_v54 = vrot.slane %v8587_v63, %v10837_v35  ;;  %v9731_v59 = vadd.s32 4294967232, %v12931_v19  ;;  %v12998_v33 = vsub.s32 %v9703_v20, %v10790_v58  ;;  %v9724_v16 = vadd.s32 4294967240, %v12931_v19 }
 0x2be   : > { %v8602_v15 = vrot.slane %v8588_v37, %v10837_v35  ;;  %v9952_v21 = vrot.slane %v12881_v1, %v12974_v7  ;;  %v9948_v11 = vrot.slane %v12868_v57, %v12983_v0  ;;  %v13006_v24 = vsub.s32 %v9717_v48, %v10790_v58 }
 0x2bf   : > { %v9745_v5 = vadd.s32 4294967216, %v12931_v19  ;;  %v9957_v56 = vrot.slane %v12894_v62, %v12979_v29  ;;  %v13012_v23 = vsub.s32 %v9710_v14, %v10790_v58  ;;  %v9962_v25 = vrot.slane %v12907_v50, %v12988_v44 }
 0x2c0   : > { %v8603_v22 = vcombine.low %v8595_v54, %v8602_v15  ;;  %v9953_v1 = vsel %vm9687_vm0, %v9952_v21, %v9948_v11  ;;  %v9967_v57 = vrot.slane %v12920_v41, %v12998_v33  ;;  %v13020_v38 = vsub.s32 %v9731_v59, %v10790_v58 }
 0x2c1   : > { %v9759_v45 = vadd.s32 4294967200, %v12931_v19  ;;  %v9958_v62 = vsel %vm9694_vm1, %v9957_v56, %v9953_v1  ;;  %v9977_v20 = vrot.slane %v12944_v6, %v13006_v24  ;;  %v9752_v63 = vadd.s32 4294967208, %v12931_v19 }
 0x2c2   : > { %9626 = vperm.xlu1 %10414, %v8603_v22   ;;  %v13028_v50 = vsub.s32 %v9724_v16, %v10790_v58  ;;  %v9972_v41 = vrot.slane %v12936_v49, %v13012_v23  ;;  %v9963_v48 = vsel %vm9701_vm2, %v9962_v25, %v9958_v62  ;;  %v13034_v37 = vsub.s32 %v9745_v5, %v10790_v58  ;;  %v9570_v49 = vpop.permute.xlu1 %9569 }
 0x2c3   : > { %v9968_v14 = vsel %vm9708_vm3, %v9967_v57, %v9963_v48  ;;  %v9987_v54 = vrot.slane %v12971_v31, %v13020_v38  ;;  %v9766_v6 = vadd.s32 4294967192, %v12931_v19  ;;  %v13044_v16 = vsub.s32 %v9759_v45, %v10790_v58 }
 0x2c4   : > { %v9982_v59 = vrot.slane %v12962_v18, %v13028_v50  ;;  %v9973_v15 = vsel %vm9715_vm4, %v9972_v41, %v9968_v14  ;;  %v9997_v11 = vrot.slane %v9564_v28, %v13034_v37  ;;  %v13049_v5 = vsub.s32 %v9752_v63, %v10790_v58  ;;  %v9573_v18 = vpop.permute.xlu0 %9572 }
 0x2c5   : > { %v9978_v21 = vsel %vm9722_vm5, %v9977_v20, %v9973_v15  ;;  %v9992_v31 = vrot.slane %v9561_v47, %v12993_v30  ;;  %v10007_v25 = vrot.slane %v9570_v49, %v13044_v16  ;;  %v13056_v1 = vsub.s32 %v9766_v6, %v10790_v58 }
 0x2c6   : > { %v9983_v22 = vsel %vm9729_vm6, %v9982_v59, %v9978_v21  ;;  %v10002_v28 = vrot.slane %v9567_v43, %v13049_v5  ;;  %v13069_v48 = vpop.permute.xlu1 %9575 }
 0x2c7   : > { %v9988_v56 = vsel %vm9736_vm7, %v9987_v54, %v9983_v22  ;;  %v10012_v47 = vrot.slane %v9573_v18, %v13056_v1 }
 0x2c8   : > { %v9993_v57 = vsel %vm9743_vm8, %v9992_v31, %v9988_v56  ;;  %v13067_v41 = vpop.permute.xlu0 %9578 }
 0x2c9   : > { %v9998_v45 = vsel %vm9750_vm9, %v9997_v11, %v9993_v57  ;;  %13450 = vst [vmem:[#allocation34_spill] sm:$0xff] %v13067_v41 }
 0x2ca   : > { %v10003_v62 = vsel %vm9757_vm10, %v10002_v28, %v9998_v45  ;;  %v13073_v14 = vpop.permute.xlu1 %9581  ;;  %v9681_v45 = vrot.slane %v12335_v3, %v12983_v0  ;;  %v9714_v3 = vrot.slane %v12270_v26, %v13012_v23 }
 0x2cb   : > { %v10008_v20 = vsel %vm9764_vm11, %v10007_v25, %v10003_v62  ;;  %v9693_v62 = vrot.slane %v12196_v42, %v12979_v29 }
 0x2cc   : > { %v13065_v63 = vsel %vm9771_vm12, %v10012_v47, %v10008_v20  ;;  %v13071_v43 = vpop.permute.xlu0 %9584  ;;  %v9686_v47 = vrot.slane %v12170_v4, %v12974_v7  ;;  %v9790_v4 = vrot.slane %v12452_v53, %v12983_v0  ;;  %v9735_v53 = vrot.slane %v12350_v46, %v13020_v38 }
 0x2cd   : > { %v9878_v46 = vrot.slane %v12681_v55, %v12979_v29 }
 0x2ce   : > { %v13077_v6 = vpop.permute.xlu1 %9587  ;;  %v9688_v35 = vsel %vm9687_vm0, %v9686_v47, %v9681_v45  ;;  %v9799_v45 = vrot.slane %v12474_v8, %v12979_v29  ;;  %v9794_v47 = vrot.slane %v12464_v27, %v12974_v7 }
 0x2cf   : > { %v9695_v42 = vsel %vm9694_vm1, %v9693_v62, %v9688_v35 }
 0x2d0   : > { %v13075_v54 = vpop.permute.xlu0 %9590 }
 0x2d2   : > { %v13081_v15 = vpop.permute.xlu1 %9593 }
 0x2d4   : > { %v13079_v59 = vpop.permute.xlu0 %9596 }
 0x2d6   : > { %v13085_v21 = vpop.permute.xlu1 %9599 }
 0x2d8   : > { %v13083_v49 = vpop.permute.xlu0 %9602 }
 0x2d9   : > { %13451 = vst [vmem:[#allocation35_spill] sm:$0xff] %v13083_v49  ;;  %v9707_v49 = vrot.slane %v12246_v61, %v12998_v33  ;;  %v9728_v61 = vrot.slane %v12324_v40, %v13028_v50  ;;  %v9869_v40 = vrot.slane %v12655_v17, %v12983_v0  ;;  %v9873_v17 = vrot.slane %v12672_v13, %v12974_v7 }
 0x2dc   : > { %v13087_v11 = vpop.permute.xlu0 %9608 }
 0x2dd   : > { %13452 = vst [vmem:[#allocation36_spill] sm:$0xff] %v13087_v11  ;;  %v9700_v11 = vrot.slane %v12220_v32, %v12988_v44 }
 0x2de   : > { %v13089_v31 = vpop.permute.xlu1 %9605 }
 0x2df   : > { %13453 = vst [vmem:[#allocation37_spill] sm:$0xff] %v13089_v31  ;;  %v9721_v31 = vrot.slane %v12300_v10, %v13006_v24  ;;  %v9702_v32 = vsel %vm9701_vm2, %v9700_v11, %v9695_v42  ;;  %v9742_v10 = vrot.slane %v12360_v9, %v12993_v30  ;;  %v9795_v11 = vsel %vm9687_vm0, %v9794_v47, %v9790_v4 }
 0x2e0   : > { %v9633_v22 = vpop.permute.xlu0 %9632  ;;  %v9709_v26 = vsel %vm9708_vm3, %v9707_v49, %v9702_v32  ;;  %v9800_v27 = vsel %vm9694_vm1, %v9799_v45, %v9795_v11  ;;  %v13454_v49 = vld [vmem:[#allocation17_spill] sm:$0xff]  ;;  %v9780_v45 = vadd.s32 4294967176, %v12931_v19  ;;  %v13457_v11 = vld [vmem:[#allocation11_spill] sm:$0xff] }
 0x2e1   : > { %v9716_v8 = vsel %vm9715_vm4, %v9714_v3, %v9709_v26  ;;  %v9809_v42 = vrot.slane %v13454_v49, %v12998_v33  ;;  %v13455_v3 = vld [vmem:[#allocation16_spill] sm:$0xff]  ;;  %v13456_v26 = vld [vmem:[#allocation10_spill] sm:$0xff]  ;;  %v9874_v49 = vsel %vm9687_vm0, %v9873_v17, %v9869_v40  ;;  %v10110_v13 = vrot.slane %v9633_v22, %v12974_v7 }
 0x2e2   : > { %v9723_v62 = vsel %vm9722_vm5, %v9721_v31, %v9716_v8  ;;  %v9804_v4 = vrot.slane %v13455_v3, %v12988_v44  ;;  %v9749_v8 = vrot.slane %v13456_v26, %v13034_v37  ;;  %v9819_v3 = vrot.slane %v12524_v52, %v13006_v24 }
 0x2e3   : > { %v9730_v9 = vsel %vm9729_vm6, %v9728_v61, %v9723_v62  ;;  %v9756_v61 = vrot.slane %v13457_v11, %v13049_v5  ;;  %v9883_v22 = vrot.slane %v12698_v51, %v12988_v44  ;;  %v13460_v11 = vld [vmem:[#allocation13_spill] sm:$0xff] }
 0x2e4   : > { %v13091_v56 = vpop.permute.xlu0 %9638  ;;  %v9737_v47 = vsel %vm9736_vm7, %v9735_v53, %v9730_v9  ;;  %v9805_v62 = vsel %vm9701_vm2, %v9804_v4, %v9800_v27  ;;  %v9879_v53 = vsel %vm9694_vm1, %v9878_v46, %v9874_v49  ;;  %v9888_v9 = vrot.slane %v12711_v36, %v12998_v33  ;;  %v13461_v49 = vld [vmem:[#allocation18_spill] sm:$0xff] }
 0x2e5   : > { %v9744_v26 = vsel %vm9743_vm8, %v9742_v10, %v9737_v47  ;;  %v9814_v27 = vrot.slane %v12516_v12, %v13012_v23  ;;  %v13458_v10 = vld [vmem:[#allocation12_spill] sm:$0xff]  ;;  %v9884_v51 = vsel %vm9701_vm2, %v9883_v22, %v9879_v53  ;;  %v13459_v47 = vld [vmem:[#allocation19_spill] sm:$0xff] }
 0x2e6   : > { %v9751_v52 = vsel %vm9750_vm9, %v9749_v8, %v9744_v26  ;;  %v9763_v12 = vrot.slane %v13458_v10, %v13044_v16  ;;  %v9829_v8 = vrot.slane %v13459_v47, %v13020_v38  ;;  %v10036_v47 = vrot.slane %v13077_v6, %v12979_v29 }
 0x2e7   : > { %v9758_v26 = vsel %vm9757_vm10, %v9756_v61, %v9751_v52  ;;  %v9839_v61 = vrot.slane %v12575_v60, %v13034_v37  ;;  %v9773_v60 = vadd.s32 4294967184, %v12931_v19 }
 0x2e8   : > { %v13093_v28 = vpop.permute.xlu0 %9644  ;;  %v13212_v22 = vsel %vm9764_vm11, %v9763_v12, %v9758_v26  ;;  %v13463_v12 = vld [vmem:[#allocation20_spill] sm:$0xff] }
 0x2e9   : > { %v9630_v18 = vpop.permute.xlu1 %9629 }
 0x2ea   : > { %v10106_v31 = vrot.slane %v9630_v18, %v12983_v0  ;;  %v9810_v18 = vsel %vm9708_vm3, %v9809_v42, %v9805_v62  ;;  %v13176_v42 = vsub.s32 %v9780_v45, %v10790_v58  ;;  %v9770_v62 = vrot.slane %v13460_v11, %v13056_v1 }
 0x2eb   : > { %v9815_v17 = vsel %vm9715_vm4, %v9814_v27, %v9810_v18  ;;  %v9893_v18 = vrot.slane %v12724_v34, %v13012_v23 }
 0x2ec   : > { %v13103_v20 = vpop.permute.xlu0 %9650  ;;  %v10111_v40 = vsel %vm9687_vm0, %v10110_v13, %v10106_v31  ;;  %v10120_v31 = vrot.slane %v13091_v56, %v12988_v44  ;;  %v9820_v45 = vsel %vm9722_vm5, %v9819_v3, %v9815_v17  ;;  %v9824_v13 = vrot.slane %v13461_v49, %v13028_v50  ;;  %v13462_v3 = vld [vmem:[#allocation15_spill] sm:$0xff] }
 0x2ed   : > { %v9784_v53 = vrot.slane %v13462_v3, %v13176_v42  ;;  %v9834_v17 = vrot.slane %v13463_v12, %v12993_v30  ;;  %v10031_v49 = vrot.slane %v13071_v43, %v12974_v7 }
 0x2f0   : > { %v13129_v35 = vpop.permute.xlu0 %9656 }
 0x2f3   : > { %v9636_v25 = vpop.permute.xlu1 %9635 }
 0x2f4   : > { %v10115_v55 = vrot.slane %v9636_v25, %v12979_v29  ;;  %v13167_v25 = vpop.permute.xlu0 %9659 }
 0x2f6   : > { %v10116_v46 = vsel %vm9694_vm1, %v10115_v55, %v10111_v40  ;;  %v9889_v55 = vsel %vm9708_vm3, %v9888_v9, %v9884_v51  ;;  %v9825_v40 = vsel %vm9729_vm6, %v9824_v13, %v9820_v45  ;;  %v13464_v51 = vld [vmem:[#allocation26_spill] sm:$0xff]  ;;  %v13466_v13 = vld [vmem:[#allocation28_spill] sm:$0xff] }
 0x2f7   : > { %v10121_v56 = vsel %vm9701_vm2, %v10120_v31, %v10116_v46  ;;  %v9894_v34 = vsel %vm9715_vm4, %v9893_v18, %v9889_v55  ;;  %v10130_v46 = vrot.slane %v13093_v28, %v13012_v23  ;;  %v9830_v10 = vsel %vm9736_vm7, %v9829_v8, %v9825_v40 }
 0x2f8   : > { %v13206_v9 = vpop.permute.xlu0 %9662  ;;  %v9903_v31 = vrot.slane %v13464_v51, %v13028_v50  ;;  %v10027_v28 = vrot.slane %v13073_v14, %v12983_v0  ;;  %v9835_v55 = vsel %vm9743_vm8, %v9834_v17, %v9830_v10  ;;  %v10140_v0 = vrot.slane %v13103_v20, %v13028_v50  ;;  %v13465_v14 = vld [vmem:[#allocation22_spill] sm:$0xff]  ;;  %v13470_v51 = vld [vmem:[#allocation24_spill] sm:$0xff] }
 0x2f9   : > { %v9840_v19 = vsel %vm9750_vm9, %v9839_v61, %v9835_v55  ;;  %v9849_v29 = vrot.slane %v13465_v14, %v13044_v16  ;;  %v13472_v55 = vld [vmem:[#allocation23_spill] sm:$0xff] }
 0x2fa   : > { %v10032_v43 = vsel %vm9687_vm0, %v10031_v49, %v10027_v28  ;;  %v13471_v28 = vld [vmem:[#allocation29_spill] sm:$0xff] }
 0x2fb   : > { %v10037_v40 = vsel %vm9694_vm1, %v10036_v47, %v10032_v43  ;;  %v10056_v47 = vrot.slane %v13085_v21, %v13006_v24 }
 0x2fd   : > { %v13095_v57 = vpop.permute.xlu1 %9641 }
 0x2fe   : > { %v10125_v36 = vrot.slane %v13095_v57, %v12998_v33  ;;  %v9898_v57 = vrot.slane %v12736_v2, %v13006_v24 }
 0x300   : > { %v10126_v2 = vsel %vm9708_vm3, %v10125_v36, %v10121_v56  ;;  %v9899_v52 = vsel %vm9722_vm5, %v9898_v57, %v9894_v34  ;;  %v13467_v56 = vld [vmem:[#allocation21_spill] sm:$0xff]  ;;  %v10046_v34 = vrot.slane %v13081_v15, %v12998_v33  ;;  %v13469_v33 = vld [vmem:[#allocation30_spill] sm:$0xff] }
 0x301   : > { %v10131_v45 = vsel %vm9715_vm4, %v10130_v46, %v10126_v2  ;;  %v9904_v57 = vsel %vm9729_vm6, %v9903_v31, %v9899_v52  ;;  %v9844_v26 = vrot.slane %v13467_v56, %v13049_v5  ;;  %v13468_v2 = vld [vmem:[#allocation27_spill] sm:$0xff]  ;;  %v9928_v15 = vrot.slane %v13469_v33, %v13044_v16 }
 0x302   : > { %v9913_v7 = vrot.slane %v13468_v2, %v12993_v30 }
 0x303   : > { %v9666_v18 = vpop.permute.xlu0 %9665  ;;  %v9845_v61 = vsel %vm9757_vm10, %v9844_v26, %v9840_v19 }
 0x304   : > { %v9850_v12 = vsel %vm9764_vm11, %v9849_v29, %v9845_v61 }
 0x308   : > { %v13110_v41 = vpop.permute.xlu1 %9647 }
 0x309   : > { %v10135_v27 = vrot.slane %v13110_v41, %v13006_v24  ;;  %v9908_v41 = vrot.slane %v12765_v39, %v13020_v38  ;;  %v13474_v24 = vld [vmem:[#allocation32_spill] sm:$0xff] }
 0x30b   : > { %v10136_v39 = vsel %vm9722_vm5, %v10135_v27, %v10131_v45  ;;  %v9909_v6 = vsel %vm9736_vm7, %v9908_v41, %v9904_v57  ;;  %v13258_v27 = vsub.s32 %v9773_v60, %v10790_v58  ;;  %v10041_v41 = vrot.slane %v13075_v54, %v12988_v44 }
 0x30c   : > { %v10141_v20 = vsel %vm9729_vm6, %v10140_v0, %v10136_v39  ;;  %v9914_v52 = vsel %vm9743_vm8, %v9913_v7, %v9909_v6  ;;  %v10150_v58 = vrot.slane %v13129_v35, %v12993_v30  ;;  %v9923_v45 = vrot.slane %v13471_v28, %v13049_v5  ;;  %v13476_v7 = vld [vmem:[#allocation37_spill] sm:$0xff] }
 0x30d   : > { %v9859_v31 = vrot.slane %v13470_v51, %v13258_v27  ;;  %v10042_v60 = vsel %vm9701_vm2, %v10041_v41, %v10037_v40  ;;  %v10017_v54 = vrot.slane %v13069_v48, %v13258_v27  ;;  %v10155_v39 = vrot.slane %v13167_v25, %v13034_v37  ;;  %v13473_v48 = vld [vmem:[#allocation14_spill] sm:$0xff] }
 0x30e   : > { %v10047_v35 = vsel %vm9708_vm3, %v10046_v34, %v10042_v60  ;;  %v9854_v57 = vrot.slane %v13472_v55, %v13056_v1  ;;  %v10051_v0 = vrot.slane %v13079_v59, %v13012_v23  ;;  %v9777_v19 = vrot.slane %v13473_v48, %v13258_v27  ;;  %v13477_v40 = vld [vmem:[#allocation34_spill] sm:$0xff] }
 0x30f   : > { %v9938_v21 = vrot.slane %v13474_v24, %v13258_v27  ;;  %v10160_v23 = vrot.slane %v13206_v9, %v13049_v5  ;;  %v10018_v26 = vsel %vm9778_vm13, %v10017_v54, %v13065_v63  ;;  %v10066_v43 = vrot.slane %v13476_v7, %v13020_v38 }
 0x310   : > { %v9855_v6 = vsel %vm9771_vm12, %v9854_v57, %v9850_v12  ;;  %v10052_v56 = vsel %vm9715_vm4, %v10051_v0, %v10047_v35  ;;  %v10022_v34 = vrot.slane %v13477_v40, %v13176_v42  ;;  %v9772_v63 = vsel %vm9771_vm12, %v9770_v62, %v13212_v22 }
 0x311   : > { %v9860_v59 = vsel %vm9778_vm13, %v9859_v31, %v9855_v6  ;;  %v10057_v2 = vsel %vm9722_vm5, %v10056_v47, %v10052_v56 }
 0x312   : > { %v13143_v32 = vpop.permute.xlu1 %9653 }
 0x313   : > { %v10145_v8 = vrot.slane %v13143_v32, %v13020_v38  ;;  %v9918_v32 = vrot.slane %v13466_v13, %v13034_v37  ;;  %v13475_v13 = vld [vmem:[#allocation31_spill] sm:$0xff] }
 0x315   : > { %v10146_v46 = vsel %vm9736_vm7, %v10145_v8, %v10141_v20  ;;  %v9919_v17 = vsel %vm9750_vm9, %v9918_v32, %v9914_v52  ;;  %v9669_v8 = vpop.permute.xlu0 %9668  ;;  %v9933_v32 = vrot.slane %v13475_v13, %v13056_v1  ;;  %v13479_v52 = vld [vmem:[#allocation25_spill] sm:$0xff] }
 0x316   : > { %v10151_v44 = vsel %vm9743_vm8, %v10150_v58, %v10146_v46  ;;  %v9924_v49 = vsel %vm9757_vm10, %v9923_v45, %v9919_v17  ;;  %v13478_v46 = vld [vmem:[#allocation35_spill] sm:$0xff]  ;;  %v9864_v41 = vrot.slane %v13479_v52, %v13176_v42  ;;  %v10165_v58 = vrot.slane %v9666_v18, %v13044_v16  ;;  %v13481_v45 = vld [vmem:[#allocation36_spill] sm:$0xff] }
 0x317   : > { %v9929_v14 = vsel %vm9764_vm11, %v9928_v15, %v9924_v49  ;;  %v10156_v25 = vsel %vm9750_vm9, %v10155_v39, %v10151_v44  ;;  %v10061_v61 = vrot.slane %v13478_v46, %v13028_v50  ;;  %v9779_v17 = vsel %vm9778_vm13, %v9777_v19, %v9772_v63  ;;  %v13480_v50 = vld [vmem:[#allocation33_spill] sm:$0xff] }
 0x318   : > { %v9934_v20 = vsel %vm9771_vm12, %v9933_v32, %v9929_v14  ;;  %v10161_v9 = vsel %vm9757_vm10, %v10160_v23, %v10156_v25  ;;  %v9943_v33 = vrot.slane %v13480_v50, %v13176_v42  ;;  %v10023_v15 = vsel %vm9785_vm14, %v10022_v34, %v10018_v26 }
 0x319   : > { %v9939_v38 = vsel %vm9778_vm13, %v9938_v21, %v9934_v20  ;;  %v9672_v12 = vpop.permute.xlu0 %9671  ;;  %v10062_v51 = vsel %vm9729_vm6, %v10061_v61, %v10057_v2  ;;  %v9865_v11 = vsel %vm9785_vm14, %v9864_v41, %v9860_v59  ;;  %v10166_v22 = vsel %vm9764_vm11, %v10165_v58, %v10161_v9 }
 0x31a   : > { %v10067_v62 = vsel %vm9736_vm7, %v10066_v43, %v10062_v51  ;;  %v9944_v28 = vsel %vm9785_vm14, %v9943_v33, %v9939_v38  ;;  %v10071_v60 = vrot.slane %v13481_v45, %v12993_v30  ;;  %v10170_v44 = vrot.slane %v9669_v8, %v13056_v1 }
 0x31b   : > { %v10183_v35 = vcombine.low %v9944_v28, %v10023_v15  ;;  %v10175_v55 = vrot.slane %v9672_v12, %v13258_v27  ;;  %v13483_v32 = vlaneseq }
 0x31c   : > { %v10072_v39 = vsel %vm9743_vm8, %v10071_v60, %v10067_v62 }
 0x31d   : > { %v13182_v4 = vpop.permute.xlu1 %9611  ;;  %vm10225_vm15 = vcmp.lt.s32.totalorder %v13483_v32, 768 }
 0x31e   : > { %v10076_v31 = vrot.slane %v13182_v4, %v13034_v37  ;;  %v9786_v37 = vsel %vm9785_vm14, %v9784_v53, %v9779_v17  ;;  %v10171_v4 = vsel %vm9771_vm12, %v10170_v44, %v10166_v22 }
 0x31f   : > { %v10182_v8 = vcombine.low %v9786_v37, %v9865_v11  ;;  %v10176_v53 = vsel %vm9778_vm13, %v10175_v55, %v10171_v4 }
 0x327   : > { %v13224_v36 = vpop.permute.xlu1 %9614 }
 0x328   : > { %v10081_v54 = vrot.slane %v13224_v36, %v13049_v5  ;;  %v10077_v5 = vsel %vm9750_vm9, %v10076_v31, %v10072_v39  ;;  %v9675_v36 = vpop.permute.xlu0 %9674 }
 0x32d   : > { %v13264_v10 = vpop.permute.xlu1 %9617 }
 0x32e   : > { %v10086_v47 = vrot.slane %v13264_v10, %v13044_v16  ;;  %v10082_v16 = vsel %vm9757_vm10, %v10081_v54, %v10077_v5  ;;  %v13482_v10 = vld [vmem:[#allocation9_spill] sm:$0xff] }
 0x32f   : > { %v10198_v3 = vrot.slane %v10183_v35, %v13482_v10  ;;  %v10191_v14 = vrot.slane %v10182_v8, %v13482_v10 }
 0x330   : > { %v10087_v49 = vsel %vm9764_vm11, %v10086_v47, %v10082_v16 }
 0x331   : > { %v10206_v25 = vcombine.low %v10191_v14, %v10198_v3 }
 0x332   : > { %v9621_v29 = vpop.permute.xlu1 %9620 }
 0x333   : > { %v10091_v30 = vrot.slane %v9621_v29, %v13056_v1  ;;  %v10180_v1 = vrot.slane %v9675_v36, %v13176_v42  ;;  %v10213_v13 = vrot.slane %v10206_v25, %v13482_v10 }
 0x335   : > { %v10092_v48 = vsel %vm9771_vm12, %v10091_v30, %v10087_v49  ;;  %v10181_v24 = vsel %vm9785_vm14, %v10180_v1, %v10176_v53 }
 0x337   : > { %v9624_v18 = vpop.permute.xlu1 %9623 }
 0x338   : > { %v10096_v57 = vrot.slane %v9624_v18, %v13258_v27 }
 0x33a   : > { %v10097_v27 = vsel %vm9778_vm13, %v10096_v57, %v10092_v48 }
 0x33d   : > { %v9627_v0 = vpop.permute.xlu1 %9626 }
 0x33e   : > { %v10101_v19 = vrot.slane %v9627_v0, %v13176_v42 }
 0x340   : > { %v10102_v21 = vsel %vm9785_vm14, %v10101_v19, %v10097_v27 }
 0x341   : > { %v10184_v29 = vcombine.low %v10102_v21, %v10181_v24 }
 0x343   : > { %v10205_v6 = vrot.slane %v10184_v29, %v13482_v10 }
 0x345   : > { %v10220_v42 = vrot.slane %v10205_v6, %v13482_v10 }
 0x347   : > { %v10221_v56 = vcombine.low %v10213_v13, %v10220_v42 }
 0x349   : > { %10227 = vst.msk [vmem:[%s162_s25] sm:$0x3f] %vm10225_vm15, %v10221_v56 }
 0x34a   : > { %10456 = shalt.err (!%p10453_p6)
}
 0x34b   : > { %s10457_s5 = scalar_lea.hbm %s10243_s29, 96  ;;  %s10461_s15 = scalar_lea.hbm %s13412_s1, 192 }
 0x34c   : > { %p10458_p4 = scmp.ne.s32.totalorder %s10243_s29, %s10457_s5  ;;  %p10462_p13 = scmp.lt.s32.totalorder %s10243_s29, %s13412_s1 }
 0x34d   : > { %p10463_p2 = scmp.lt.s32.totalorder %s10461_s15, %s10457_s5 }
 0x34e   : > { %p10459_p7 = pnand %p10458_p4, %p10592_p9 }
 0x34f   : > { %p10464_p8 = por %p10463_p2, %p10462_p13 }
 0x350   : > { %p10460_p10 = pneg %p10459_p7 }
 0x352   : > { %p10465_p12 = pnand %p10464_p8, %p10460_p10 }
 0x354   : > { %10468 = shalt.err (!%p10465_p12)
}
 0x355   : > { %10349 = dma.vmem_to_hbm [thread:$0]  (%p10592_p9), %s10246_s26, 96, %s10243_s29, %s10229_s30  }
 0x356 PF: > { %s10257_s22 = sand.u32 1, %s10503_s6   ;;  %p13484_p0 = scmp.ge.s32.totalorder %s10523_s11, 2 }
 0x357   : > { %s10258_s23 = scalar_lea.sflag [#allocation5], %s10257_s22 }
 0x358   : > { %p10356_p1 = pnand %p13484_p0, %p10599_p11 }
 0x35a   : > { %p10357_p3 = pneg %p10356_p1 }
 0x35c   : > { %10498 = dma.done.wait (%p10357_p3), %s10258_s23, 96  }
 0x35d   : > { %10500 = vsyncadd (%p10357_p3), %s10258_s23, 4294967200  ;;  %s17_s11 = sadd.s32 1, %s10523_s11   ;;  %s13485_s6 = smov %s10507_s7 }
 0x35e   : > { %p14_p5 = scmp.ge.s32.totalorder %s17_s11, 4   ;;  %s13486_s7 = smov %s10511_s8 }
 0x35f   : > { %s13487_s8 = smov %s10597_s20  ;;  %s13488_s9 = smov %s10519_s10 }
 0x360   : > { %s13489_s10 = smov %s13491_s14  ;;  %16 = sbr.rel (!%p14_p5) target bundleno = 6 (0x6), region = 77 }
 0x365   :  { %10263 = vsyncpa [#allocation4], 1 }
 0x366   :  { %10265 = vsyncpa [#allocation4 + $0x1], 1 }
 0x367   :  { %10266 = vsyncpa [#allocation5], 1 }
 0x368   :  { %10268 = vsyncpa [#allocation5 + $0x1], 1 }

</bundles_post_ra>
